<compile_context>
chip_gen: v7x
topology: tpu7x:2x2x1
jax: 0.10.0
libtpu: 0.0.40
codegen_flags: <defaults>
</compile_context>

<pallas_src>
import functools

import jax
import jax.numpy as jnp
from jax.experimental import pallas as pl
from jax.experimental.pallas import tpu as pltpu


def _default_vmem_limit():
    # 32 MiB is safe everywhere (v7x: 64 MiB physical); raise to half of the
    # physical VMEM on chips that have more (v5e/v6e: 128 MiB -> 64 MiB).
    try:
        cap = pltpu.get_tpu_info().vmem_capacity_bytes
        return int(min(cap // 2, 100 * 1024 * 1024))
    except Exception:
        return 32 * 1024 * 1024


_VMEM_LIMIT = _default_vmem_limit()


def _round_up(x, m):
    return (x + m - 1) // m * m


def _tile_m(m):
    """M tile for the conv1 matmul: big enough to amortize per-step overhead,
    small enough for several grid steps on large M (feeds both v7x cores), and
    preferring a divisor of m so no wrapper-side padding copy is needed."""
    if m <= 256:
        return m                                  # single step, block == full dim
    target = min(512, max(128, _round_up(m // 8, 128)))
    for cand in (target, 256, 128):
        if m % cand == 0:
            return cand
    return target                                  # rare ragged case -> pad


def _row_tile(h):
    """Output row-slab height for the fused 3x3 conv kernel."""
    return 8 if h % 8 == 0 else h


# ----------------------------------------------------------------------------
# Plain-JAX layout glue (conv1 im2col only; K=49*3 on a tiny 3-channel input).
# ----------------------------------------------------------------------------
def im2col(x, kh, kw, sh, sw, ph, pw):
    """x: (N,H,W,C) -> patches (N*OH*OW, kh*kw*C), OH, OW (keeps x's dtype)."""
    n, h, w, c = x.shape
    xp = jnp.pad(x, ((0, 0), (ph, ph), (pw, pw), (0, 0)))
    oh = (h + 2 * ph - kh) // sh + 1
    ow = (w + 2 * pw - kw) // sw + 1
    cols = []
    for i in range(kh):
        for j in range(kw):
            cols.append(xp[:, i:i + sh * (oh - 1) + 1:sh,
                           j:j + sw * (ow - 1) + 1:sw, :])   # (N,OH,OW,C)
    p = jnp.stack(cols, axis=3)                              # (N,OH,OW,kh*kw,C)
    return p.reshape(n * oh * ow, kh * kw * c), oh, ow


def maxpool_2d(x, kh, kw, sh, sw, ph, pw):
    """Max pool as a fused tree of shifted maxima (no window tensor in HBM)."""
    n, h, w, c = x.shape
    xp = jnp.pad(x, ((0, 0), (ph, ph), (pw, pw), (0, 0)),
                 constant_values=-jnp.inf)
    oh = (h + 2 * ph - kh) // sh + 1
    ow = (w + 2 * pw - kw) // sw + 1
    out = None
    for i in range(kh):
        for j in range(kw):
            v = xp[:, i:i + sh * (oh - 1) + 1:sh,
                   j:j + sw * (ow - 1) + 1:sw, :]
            out = v if out is None else jnp.maximum(out, v)
    return out


# ----------------------------------------------------------------------------
# Pallas kernels.
# ----------------------------------------------------------------------------
def _mm_kernel(p_ref, w_ref, b_ref, o_ref, *, relu):
    acc = jnp.dot(p_ref[...], w_ref[...], preferred_element_type=jnp.float32)
    acc = acc + b_ref[...]
    if relu:
        acc = jnp.maximum(acc, 0.0)
    o_ref[...] = acc.astype(o_ref.dtype)


def matmul_bn_act(patches, w, bias, relu=True, out_dtype=jnp.bfloat16):
    """conv1 as im2col-matmul with fused folded-BN bias + ReLU epilogue."""
    m, k = patches.shape
    co = w.shape[1]
    tm = _tile_m(m)
    mp = _round_up(m, tm)
    grid_steps = mp // tm

    p = patches.astype(jnp.bfloat16)
    if mp != m:
        # TODO(synk): a pl.when-masked ragged final tile would avoid this copy.
        p = jnp.pad(p, ((0, mp - m), (0, 0)))
    wb = w.astype(jnp.bfloat16)
    b2 = bias.reshape(1, co).astype(jnp.float32)

    out_itemsize = jnp.dtype(out_dtype).itemsize
    cost = pl.CostEstimate(                      # weights/bias are resident: count once
        flops=2 * mp * k * co,
        transcendentals=0,
        bytes_accessed=mp * k * 2 + k * co * 2 + co * 4 + mp * co * out_itemsize)

    out = pl.pallas_call(
        functools.partial(_mm_kernel, relu=relu),
        out_shape=jax.ShapeDtypeStruct((mp, co), out_dtype),
        grid=(grid_steps,),
        in_specs=[pl.BlockSpec((tm, k), lambda i: (i, 0)),
                  pl.BlockSpec((k, co), lambda i: (0, 0)),
                  pl.BlockSpec((1, co), lambda i: (0, 0))],
        out_specs=pl.BlockSpec((tm, co), lambda i: (i, 0)),
        compiler_params=pltpu.CompilerParams(
            dimension_semantics=("parallel",),
            vmem_limit_bytes=_VMEM_LIMIT),
        cost_estimate=cost,
    )(p, wb, b2)
    return out[:m] if mp != m else out


def _conv3x3_compute(x_ref, w_ref, b_ref, o_ref, res_f32, *, relu):
    # x_ref: (1, H+2, W+2, C) zero-padded image (resident across row tiles)
    # w_ref: (9, C, Co) per-kernel-position weights; b_ref: (1, Co) f32
    # o_ref: (1, th, W, Co)
    _, th, w_out, co = o_ref.shape
    c = x_ref.shape[3]
    row0 = pl.program_id(1) * th
    acc = None
    for dy in range(3):
        for dx in range(3):
            xs = x_ref[0, pl.ds(row0 + dy, th), pl.ds(dx, w_out), :]   # (th, W, C)
            d = jnp.dot(xs.reshape(th * w_out, c), w_ref[dy * 3 + dx],
                        preferred_element_type=jnp.float32)
            acc = d if acc is None else acc + d
    acc = acc + b_ref[...]
    if res_f32 is not None:
        acc = acc + res_f32
    if relu:
        acc = jnp.maximum(acc, 0.0)
    o_ref[...] = acc.reshape(1, th, w_out, co).astype(o_ref.dtype)


def _conv3x3_kernel(x_ref, w_ref, b_ref, o_ref, *, relu):
    _conv3x3_compute(x_ref, w_ref, b_ref, o_ref, None, relu=relu)


def _conv3x3_res_kernel(x_ref, w_ref, b_ref, r_ref, o_ref, *, relu):
    _, th, w_out, co = o_ref.shape
    res = r_ref[...].reshape(th * w_out, co).astype(jnp.float32)
    _conv3x3_compute(x_ref, w_ref, b_ref, o_ref, res, relu=relu)


def conv3x3_bn_act(x, w9, bias, residual=None, relu=True, out_dtype=jnp.bfloat16):
    """Fused 3x3/s1/p1 conv + folded-BN bias (+ residual) (+ ReLU).

    No im2col in HBM: the kernel reads the padded image once per image
    (resident across row tiles) and accumulates nine shifted MXU dots, writing
    lane-dense bf16/f32 row slabs.  Weights are (9, C, Co) block-diagonal
    across the lane-stacked towers.
    TODO(synk): for n_tasks >= ~4 switch to a per-tower grid axis (block-diag
                weights scale as T^2 in bytes / redundant flops).
    """
    n, h, w, c = x.shape
    co = w9.shape[2]
    xp = jnp.pad(x.astype(jnp.bfloat16), ((0, 0), (1, 1), (1, 1), (0, 0)))
    th = _row_tile(h)
    rt = h // th
    wb = w9.astype(jnp.bfloat16)
    b2 = bias.reshape(1, co).astype(jnp.float32)

    in_specs = [
        pl.BlockSpec((1, h + 2, w + 2, c), lambda b, r: (b, 0, 0, 0)),   # resident over r
        pl.BlockSpec((9, c, co), lambda b, r: (0, 0, 0)),                # resident
        pl.BlockSpec((1, co), lambda b, r: (0, 0)),                      # resident
    ]
    args = [xp, wb, b2]
    if residual is None:
        kernel = functools.partial(_conv3x3_kernel, relu=relu)
        res_bytes = 0
    else:
        in_specs.append(pl.BlockSpec((1, th, w, co), lambda b, r: (b, r, 0, 0)))
        args.append(residual.astype(jnp.bfloat16))
        kernel = functools.partial(_conv3x3_res_kernel, relu=relu)
        res_bytes = n * h * w * co * 2

    out_itemsize = jnp.dtype(out_dtype).itemsize
    cost = pl.CostEstimate(
        flops=2 * n * h * w * 9 * c * co,
        transcendentals=0,
        bytes_accessed=(n * (h + 2) * (w + 2) * c * 2 + 9 * c * co * 2 + co * 4
                        + n * h * w * co * out_itemsize + res_bytes))

    return pl.pallas_call(
        kernel,
        out_shape=jax.ShapeDtypeStruct((n, h, w, co), out_dtype),
        grid=(n, rt),
        in_specs=in_specs,
        out_specs=pl.BlockSpec((1, th, w, co), lambda b, r: (b, r, 0, 0)),
        compiler_params=pltpu.CompilerParams(
            dimension_semantics=("parallel", "arbitrary"),
            vmem_limit_bytes=_VMEM_LIMIT),
        cost_estimate=cost,
    )(*args)


# ----------------------------------------------------------------------------
# Parameter init (deterministic, synthetic) + tower stacking.
# ----------------------------------------------------------------------------
def _conv_w(key, kh, kw, ci, co, std):
    # HWIO flattened to (kh*kw*ci, co), matching im2col patch row ordering.
    return (jax.random.normal(key, (kh, kw, ci, co), jnp.float32) * std
            ).reshape(kh * kw * ci, co)


def _conv_w9(key, ci, co, std):
    # 3x3 conv weights in (kernel_position, ci, co) layout for the halo kernel.
    return jax.random.normal(key, (9, ci, co), jnp.float32) * std


def _bn_fold(key, c):
    k1, k2, k3, k4 = jax.random.split(key, 4)
    gamma = 1.0 + 0.1 * jax.random.normal(k1, (c,), jnp.float32)
    beta = 0.1 * jax.random.normal(k2, (c,), jnp.float32)
    mean = 0.1 * jax.random.normal(k3, (c,), jnp.float32)
    var = 1.0 + 0.1 * jax.random.uniform(k4, (c,), jnp.float32)
    scale = gamma / jnp.sqrt(var + 1e-5)
    bias = beta - mean * scale
    return scale, bias


def _block_diag9(w_list):
    """Per-tower (9, ci, co) -> block-diagonal (9, T*ci, T*co) over stacked lanes."""
    t = len(w_list)
    _, ci, co = w_list[0].shape
    out = jnp.zeros((9, t * ci, t * co), jnp.float32)
    for ti, wt in enumerate(w_list):
        out = out.at[:, ti * ci:(ti + 1) * ci, ti * co:(ti + 1) * co].set(wt)
    return out


def init_params(key, n_tasks):
    conv1_w, conv1_b = [], []
    blocks = [dict(w1=[], b1=[], w2=[], b2=[]) for _ in range(2)]
    conv2_w = []
    for _ in range(n_tasks):
        key, k1, k2, kc2 = jax.random.split(key, 4)
        w1 = _conv_w(k1, 7, 7, 3, 64, 0.03)                 # (147, 64)
        s1, b1 = _bn_fold(k2, 64)
        conv1_w.append(w1 * s1[None, :])                     # fold BN scale
        conv1_b.append(b1)
        for bi in range(2):                                  # resnet18 layer1: 2 blocks
            key, kw1, kb1, kw2, kb2 = jax.random.split(key, 5)
            wa = _conv_w9(kw1, 64, 64, 0.03)
            sa, ba = _bn_fold(kb1, 64)
            wb = _conv_w9(kw2, 64, 64, 0.03)
            sb, bb = _bn_fold(kb2, 64)
            blocks[bi]["w1"].append(wa * sa[None, None, :])
            blocks[bi]["b1"].append(ba)
            blocks[bi]["w2"].append(wb * sb[None, None, :])
            blocks[bi]["b2"].append(bb)
        conv2_w.append(_conv_w9(kc2, 64, 1, 0.03))           # (9, 64, 1)

    # conv2: 64*T -> T, zero-padded on the output axis to 128 lanes so the
    # conv2 store / adaptive-pool tail is lane-dense (real lanes sliced at end).
    co_pad = 128
    c2 = jnp.zeros((9, 64 * n_tasks, co_pad), jnp.float32)
    for ti, wt in enumerate(conv2_w):
        c2 = c2.at[:, ti * 64:(ti + 1) * 64, ti].set(wt[:, :, 0])

    params = {
        "conv1_w": jnp.concatenate(conv1_w, axis=1),         # (147, 64*T)
        "conv1_b": jnp.concatenate(conv1_b, axis=0),         # (64*T,)
        "blocks": [],
        "conv2_w": c2,                                       # (9, 64*T, 128)
        "conv2_b": jnp.zeros((co_pad,), jnp.float32),
    }
    for bi in range(2):
        params["blocks"].append({
            "w1": _block_diag9(blocks[bi]["w1"]),            # (9, 64T, 64T)
            "b1": jnp.concatenate(blocks[bi]["b1"], axis=0),
            "w2": _block_diag9(blocks[bi]["w2"]),
            "b2": jnp.concatenate(blocks[bi]["b2"], axis=0),
        })
    return params


# ----------------------------------------------------------------------------
# Forward pass (all towers batched along the channel/lane axis).
# ----------------------------------------------------------------------------
def model_forward(x_nchw, params, k):
    t = params["conv1_w"].shape[1] // 64                     # n_tasks (static)
    c_stack = 64 * t
    x = jnp.transpose(x_nchw, (0, 2, 3, 1)).astype(jnp.bfloat16)   # NCHW -> NHWC
    n = x.shape[0]

    # conv1 (7x7, s2, p3) + bn1 + relu — one matmul for all towers (shared patches).
    p, oh, ow = im2col(x, 7, 7, 2, 2, 3, 3)
    y = matmul_bn_act(p, params["conv1_w"], params["conv1_b"], relu=True)
    y = y.reshape(n, oh, ow, c_stack)

    # maxpool 3x3, s2, p1 — fused shifted-max tree (no window tensor in HBM).
    y = maxpool_2d(y, 3, 3, 2, 2, 1, 1)

    # layer1: 2 BasicBlocks per tower, fused halo conv kernels (no im2col).
    for blk in params["blocks"]:
        identity = y
        h = conv3x3_bn_act(y, blk["w1"], blk["b1"], relu=True)
        y = conv3x3_bn_act(h, blk["w2"], blk["b2"], residual=identity, relu=True)

    # conv2: 3x3, 64 -> 1 per tower, lane-padded to 128 output channels, f32 out.
    z = conv3x3_bn_act(y, params["conv2_w"], params["conv2_b"], relu=False,
                       out_dtype=jnp.float32)

    # AdaptiveMaxPool2d((k, k)) for evenly dividing spatial dims (reshape-max).
    # TODO(synk): general AdaptiveMaxPool2d with non-divisible (overlapping) windows
    #             is not implemented.
    nh, hh, ww, cpad = z.shape
    assert hh % k == 0 and ww % k == 0
    z = z.reshape(n, k, hh // k, k, ww // k, cpad).max(axis=(2, 4))   # (N,k,k,128)
    z = z[..., :t]                                                    # real towers
    # per tower: squeeze(channel) + reshape(B, -1); stack towers -> (T, N, k*k)
    return jnp.transpose(z.reshape(n, k * k, t), (2, 0, 1))


if __name__ == "__main__":
    key = jax.random.PRNGKey(0)
    kx, kp = jax.random.split(key)

    n_tasks, k = 2, 2
    n, c, h, w = 2, 3, 32, 32                 # ResNet18 conv1 expects 3 input channels
    x = jax.random.normal(kx, (n, c, h, w), jnp.float32)

    params = init_params(kp, n_tasks)
    fwd = jax.jit(model_forward, static_argnums=2)
    out = fwd(x, params, k)
    out = jax.block_until_ready(out)

    assert out.shape == (n_tasks, n, k * k), out.shape
    assert bool(jnp.all(jnp.isfinite(out)))
    print("KERNEL_OK")
</pallas_src>

<mosaic_0001>
module attributes {stable_mosaic.version = 11 : i64} {
  func.func @_mm_kernel(%arg0: i32, %arg1: memref<128x147xbf16, #tpu.memory_space<vmem>>, %arg2: memref<147x128xbf16, #tpu.memory_space<vmem>>, %arg3: memref<1x128xf32, #tpu.memory_space<vmem>>, %arg4: memref<128x128xbf16, #tpu.memory_space<vmem>>) attributes {dimension_semantics = [#tpu.dimension_semantics<parallel>], iteration_bounds = array<i64: 4>, scalar_prefetch = 0 : i64, scratch_operands = 0 : i64, tpu.core_type = #tpu.core_type<tc>, window_params = [{transform_indices = @transform_0, window_bounds = array<i64: 128, 147>}, {pipeline_mode = #tpu.pipeline_mode<synchronous>, transform_indices = @transform_1, window_bounds = array<i64: 147, 128>}, {pipeline_mode = #tpu.pipeline_mode<synchronous>, transform_indices = @transform_2, window_bounds = array<i64: 1, 128>}, {transform_indices = @transform_3, window_bounds = array<i64: 128, 128>}]} {
    %c0 = arith.constant 0 : index
    %c0_0 = arith.constant 0 : index
    %0 = vector.load %arg1[%c0, %c0_0] : memref<128x147xbf16, #tpu.memory_space<vmem>>, vector<128x147xbf16>
    %c0_1 = arith.constant 0 : index
    %c0_2 = arith.constant 0 : index
    %1 = vector.load %arg2[%c0_1, %c0_2] : memref<147x128xbf16, #tpu.memory_space<vmem>>, vector<147x128xbf16>
    %cst = arith.constant dense<0.000000e+00> : vector<128x128xf32>
    %2 = tpu.matmul %0, %1, %cst {dimension_numbers = #tpu.dot_dimension_numbers<[1], [0], [0], [1], [0, 0, 1, 1], [], []>} : vector<128x147xbf16>, vector<147x128xbf16>, vector<128x128xf32> -> vector<128x128xf32>
    %c0_3 = arith.constant 0 : index
    %c0_4 = arith.constant 0 : index
    %3 = vector.load %arg3[%c0_3, %c0_4] : memref<1x128xf32, #tpu.memory_space<vmem>>, vector<1x128xf32>
    %4 = vector.broadcast %3 : vector<1x128xf32> to vector<128x128xf32>
    %5 = arith.addf %2, %4 : vector<128x128xf32>
    %cst_5 = arith.constant 0.000000e+00 : f32
    %6 = vector.broadcast %cst_5 : f32 to vector<128x128xf32>
    %7 = arith.maximumf %5, %6 : vector<128x128xf32>
    %8 = arith.truncf %7 : vector<128x128xf32> to vector<128x128xbf16>
    %c0_6 = arith.constant 0 : index
    %c0_7 = arith.constant 0 : index
    %9 = vector.load %arg4[%c0_6, %c0_7] : memref<128x128xbf16, #tpu.memory_space<vmem>>, vector<128x128xbf16>
    tpu.vector_store %arg4[%c0_6, %c0_7], %8 {strides = array<i32>} : memref<128x128xbf16, #tpu.memory_space<vmem>>, vector<128x128xbf16>,
    return
  }
  func.func @transform_0(%arg0: i32) -> (i32, i32) {
    %c0_i32 = arith.constant 0 : i32
    %c0_i32_0 = arith.constant 0 : i32
    return %arg0, %c0_i32 : i32, i32
  }
  func.func @transform_1(%arg0: i32) -> (i32, i32) {
    %c0_i32 = arith.constant 0 : i32
    %c0_i32_0 = arith.constant 0 : i32
    %c0_i32_1 = arith.constant 0 : i32
    return %c0_i32, %c0_i32_0 : i32, i32
  }
  func.func @transform_2(%arg0: i32) -> (i32, i32) {
    %c0_i32 = arith.constant 0 : i32
    %c0_i32_0 = arith.constant 0 : i32
    %c0_i32_1 = arith.constant 0 : i32
    return %c0_i32, %c0_i32_0 : i32, i32
  }
  func.func @transform_3(%arg0: i32) -> (i32, i32) {
    %c0_i32 = arith.constant 0 : i32
    %c0_i32_0 = arith.constant 0 : i32
    return %arg0, %c0_i32 : i32, i32
  }
}

module attributes {stable_mosaic.version = 11 : i64} {
  func.func @_conv3x3_kernel(%arg0: i32, %arg1: i32, %arg2: memref<1x10x10x128xbf16, #tpu.memory_space<vmem>>, %arg3: memref<9x128x128xbf16, #tpu.memory_space<vmem>>, %arg4: memref<1x128xf32, #tpu.memory_space<vmem>>, %arg5: memref<1x8x8x128xbf16, #tpu.memory_space<vmem>>) attributes {dimension_semantics = [#tpu.dimension_semantics<parallel>, #tpu.dimension_semantics<arbitrary>], iteration_bounds = array<i64: 2, 1>, scalar_prefetch = 0 : i64, scratch_operands = 0 : i64, tpu.core_type = #tpu.core_type<tc>, window_params = [{transform_indices = @transform_0, window_bounds = array<i64: 1, 10, 10, 128>}, {pipeline_mode = #tpu.pipeline_mode<synchronous>, transform_indices = @transform_1, window_bounds = array<i64: 9, 128, 128>}, {pipeline_mode = #tpu.pipeline_mode<synchronous>, transform_indices = @transform_2, window_bounds = array<i64: 1, 128>}, {transform_indices = @transform_3, window_bounds = array<i64: 1, 8, 8, 128>}]} {
    %c8_i32 = arith.constant 8 : i32
    %0 = arith.muli %arg1, %c8_i32 : i32
    %c0_i32 = arith.constant 0 : i32
    %1 = arith.addi %0, %c0_i32 : i32
    %c0 = arith.constant 0 : index
    %2 = arith.index_cast %1 : i32 to index
    %c0_0 = arith.constant 0 : index
    %c0_1 = arith.constant 0 : index
    %3 = vector.load %arg2[%c0, %2, %c0_0, %c0_1] : memref<1x10x10x128xbf16, #tpu.memory_space<vmem>>, vector<1x8x8x128xbf16>
    %4 = vector.shape_cast %3 : vector<1x8x8x128xbf16> to vector<8x8x128xbf16>
    %5 = vector.shape_cast %4 : vector<8x8x128xbf16> to vector<64x128xbf16>
    %c0_2 = arith.constant 0 : index
    %c0_3 = arith.constant 0 : index
    %c0_4 = arith.constant 0 : index
    %6 = vector.load %arg3[%c0_2, %c0_3, %c0_4] : memref<9x128x128xbf16, #tpu.memory_space<vmem>>, vector<1x128x128xbf16>
    %7 = vector.shape_cast %6 : vector<1x128x128xbf16> to vector<128x128xbf16>
    %cst = arith.constant dense<0.000000e+00> : vector<64x128xf32>
    %8 = tpu.matmul %5, %7, %cst {dimension_numbers = #tpu.dot_dimension_numbers<[1], [0], [0], [1], [0, 0, 1, 1], [], []>} : vector<64x128xbf16>, vector<128x128xbf16>, vector<64x128xf32> -> vector<64x128xf32>
    %c0_i32_5 = arith.constant 0 : i32
    %9 = arith.addi %0, %c0_i32_5 : i32
    %c0_6 = arith.constant 0 : index
    %10 = arith.index_cast %9 : i32 to index
    %c1 = arith.constant 1 : index
    %c0_7 = arith.constant 0 : index
    %11 = vector.load %arg2[%c0_6, %10, %c1, %c0_7] : memref<1x10x10x128xbf16, #tpu.memory_space<vmem>>, vector<1x8x8x128xbf16>
    %12 = vector.shape_cast %11 : vector<1x8x8x128xbf16> to vector<8x8x128xbf16>
    %13 = vector.shape_cast %12 : vector<8x8x128xbf16> to vector<64x128xbf16>
    %c1_8 = arith.constant 1 : index
    %c0_9 = arith.constant 0 : index
    %c0_10 = arith.constant 0 : index
    %14 = vector.load %arg3[%c1_8, %c0_9, %c0_10] : memref<9x128x128xbf16, #tpu.memory_space<vmem>>, vector<1x128x128xbf16>
    %15 = vector.shape_cast %14 : vector<1x128x128xbf16> to vector<128x128xbf16>
    %cst_11 = arith.constant dense<0.000000e+00> : vector<64x128xf32>
    %16 = tpu.matmul %13, %15, %cst_11 {dimension_numbers = #tpu.dot_dimension_numbers<[1], [0], [0], [1], [0, 0, 1, 1], [], []>} : vector<64x128xbf16>, vector<128x128xbf16>, vector<64x128xf32> -> vector<64x128xf32>
    %17 = arith.addf %8, %16 : vector<64x128xf32>
    %c0_i32_12 = arith.constant 0 : i32
    %18 = arith.addi %0, %c0_i32_12 : i32
    %c0_13 = arith.constant 0 : index
    %19 = arith.index_cast %18 : i32 to index
    %c2 = arith.constant 2 : index
    %c0_14 = arith.constant 0 : index
    %20 = vector.load %arg2[%c0_13, %19, %c2, %c0_14] : memref<1x10x10x128xbf16, #tpu.memory_space<vmem>>, vector<1x8x8x128xbf16>
    %21 = vector.shape_cast %20 : vector<1x8x8x128xbf16> to vector<8x8x128xbf16>
    %22 = vector.shape_cast %21 : vector<8x8x128xbf16> to vector<64x128xbf16>
    %c2_15 = arith.constant 2 : index
    %c0_16 = arith.constant 0 : index
    %c0_17 = arith.constant 0 : index
    %23 = vector.load %arg3[%c2_15, %c0_16, %c0_17] : memref<9x128x128xbf16, #tpu.memory_space<vmem>>, vector<1x128x128xbf16>
    %24 = vector.shape_cast %23 : vector<1x128x128xbf16> to vector<128x128xbf16>
    %cst_18 = arith.constant dense<0.000000e+00> : vector<64x128xf32>
    %25 = tpu.matmul %22, %24, %cst_18 {dimension_numbers = #tpu.dot_dimension_numbers<[1], [0], [0], [1], [0, 0, 1, 1], [], []>} : vector<64x128xbf16>, vector<128x128xbf16>, vector<64x128xf32> -> vector<64x128xf32>
    %26 = arith.addf %17, %25 : vector<64x128xf32>
    %c1_i32 = arith.constant 1 : i32
    %27 = arith.addi %0, %c1_i32 : i32
    %c0_19 = arith.constant 0 : index
    %28 = arith.index_cast %27 : i32 to index
    %c0_20 = arith.constant 0 : index
    %c0_21 = arith.constant 0 : index
    %29 = vector.load %arg2[%c0_19, %28, %c0_20, %c0_21] : memref<1x10x10x128xbf16, #tpu.memory_space<vmem>>, vector<1x8x8x128xbf16>
    %30 = vector.shape_cast %29 : vector<1x8x8x128xbf16> to vector<8x8x128xbf16>
    %31 = vector.shape_cast %30 : vector<8x8x128xbf16> to vector<64x128xbf16>
    %c3 = arith.constant 3 : index
    %c0_22 = arith.constant 0 : index
    %c0_23 = arith.constant 0 : index
    %32 = vector.load %arg3[%c3, %c0_22, %c0_23] : memref<9x128x128xbf16, #tpu.memory_space<vmem>>, vector<1x128x128xbf16>
    %33 = vector.shape_cast %32 : vector<1x128x128xbf16> to vector<128x128xbf16>
    %cst_24 = arith.constant dense<0.000000e+00> : vector<64x128xf32>
    %34 = tpu.matmul %31, %33, %cst_24 {dimension_numbers = #tpu.dot_dimension_numbers<[1], [0], [0], [1], [0, 0, 1, 1], [], []>} : vector<64x128xbf16>, vector<128x128xbf16>, vector<64x128xf32> -> vector<64x128xf32>
    %35 = arith.addf %26, %34 : vector<64x128xf32>
    %c1_i32_25 = arith.constant 1 : i32
    %36 = arith.addi %0, %c1_i32_25 : i32
    %c0_26 = arith.constant 0 : index
    %37 = arith.index_cast %36 : i32 to index
    %c1_27 = arith.constant 1 : index
    %c0_28 = arith.constant 0 : index
    %38 = vector.load %arg2[%c0_26, %37, %c1_27, %c0_28] : memref<1x10x10x128xbf16, #tpu.memory_space<vmem>>, vector<1x8x8x128xbf16>
    %39 = vector.shape_cast %38 : vector<1x8x8x128xbf16> to vector<8x8x128xbf16>
    %40 = vector.shape_cast %39 : vector<8x8x128xbf16> to vector<64x128xbf16>
    %c4 = arith.constant 4 : index
    %c0_29 = arith.constant 0 : index
    %c0_30 = arith.constant 0 : index
    %41 = vector.load %arg3[%c4, %c0_29, %c0_30] : memref<9x128x128xbf16, #tpu.memory_space<vmem>>, vector<1x128x128xbf16>
    %42 = vector.shape_cast %41 : vector<1x128x128xbf16> to vector<128x128xbf16>
    %cst_31 = arith.constant dense<0.000000e+00> : vector<64x128xf32>
    %43 = tpu.matmul %40, %42, %cst_31 {dimension_numbers = #tpu.dot_dimension_numbers<[1], [0], [0], [1], [0, 0, 1, 1], [], []>} : vector<64x128xbf16>, vector<128x128xbf16>, vector<64x128xf32> -> vector<64x128xf32>
    %44 = arith.addf %35, %43 : vector<64x128xf32>
    %c1_i32_32 = arith.constant 1 : i32
    %45 = arith.addi %0, %c1_i32_32 : i32
    %c0_33 = arith.constant 0 : index
    %46 = arith.index_cast %45 : i32 to index
    %c2_34 = arith.constant 2 : index
    %c0_35 = arith.constant 0 : index
    %47 = vector.load %arg2[%c0_33, %46, %c2_34, %c0_35] : memref<1x10x10x128xbf16, #tpu.memory_space<vmem>>, vector<1x8x8x128xbf16>
    %48 = vector.shape_cast %47 : vector<1x8x8x128xbf16> to vector<8x8x128xbf16>
    %49 = vector.shape_cast %48 : vector<8x8x128xbf16> to vector<64x128xbf16>
    %c5 = arith.constant 5 : index
    %c0_36 = arith.constant 0 : index
    %c0_37 = arith.constant 0 : index
    %50 = vector.load %arg3[%c5, %c0_36, %c0_37] : memref<9x128x128xbf16, #tpu.memory_space<vmem>>, vector<1x128x128xbf16>
    %51 = vector.shape_cast %50 : vector<1x128x128xbf16> to vector<128x128xbf16>
    %cst_38 = arith.constant dense<0.000000e+00> : vector<64x128xf32>
    %52 = tpu.matmul %49, %51, %cst_38 {dimension_numbers = #tpu.dot_dimension_numbers<[1], [0], [0], [1], [0, 0, 1, 1], [], []>} : vector<64x128xbf16>, vector<128x128xbf16>, vector<64x128xf32> -> vector<64x128xf32>
    %53 = arith.addf %44, %52 : vector<64x128xf32>
    %c2_i32 = arith.constant 2 : i32
    %54 = arith.addi %0, %c2_i32 : i32
    %c0_39 = arith.constant 0 : index
    %55 = arith.index_cast %54 : i32 to index
    %c0_40 = arith.constant 0 : index
    %c0_41 = arith.constant 0 : index
    %56 = vector.load %arg2[%c0_39, %55, %c0_40, %c0_41] : memref<1x10x10x128xbf16, #tpu.memory_space<vmem>>, vector<1x8x8x128xbf16>
    %57 = vector.shape_cast %56 : vector<1x8x8x128xbf16> to vector<8x8x128xbf16>
    %58 = vector.shape_cast %57 : vector<8x8x128xbf16> to vector<64x128xbf16>
    %c6 = arith.constant 6 : index
    %c0_42 = arith.constant 0 : index
    %c0_43 = arith.constant 0 : index
    %59 = vector.load %arg3[%c6, %c0_42, %c0_43] : memref<9x128x128xbf16, #tpu.memory_space<vmem>>, vector<1x128x128xbf16>
    %60 = vector.shape_cast %59 : vector<1x128x128xbf16> to vector<128x128xbf16>
    %cst_44 = arith.constant dense<0.000000e+00> : vector<64x128xf32>
    %61 = tpu.matmul %58, %60, %cst_44 {dimension_numbers = #tpu.dot_dimension_numbers<[1], [0], [0], [1], [0, 0, 1, 1], [], []>} : vector<64x128xbf16>, vector<128x128xbf16>, vector<64x128xf32> -> vector<64x128xf32>
    %62 = arith.addf %53, %61 : vector<64x128xf32>
    %c2_i32_45 = arith.constant 2 : i32
    %63 = arith.addi %0, %c2_i32_45 : i32
    %c0_46 = arith.constant 0 : index
    %64 = arith.index_cast %63 : i32 to index
    %c1_47 = arith.constant 1 : index
    %c0_48 = arith.constant 0 : index
    %65 = vector.load %arg2[%c0_46, %64, %c1_47, %c0_48] : memref<1x10x10x128xbf16, #tpu.memory_space<vmem>>, vector<1x8x8x128xbf16>
    %66 = vector.shape_cast %65 : vector<1x8x8x128xbf16> to vector<8x8x128xbf16>
    %67 = vector.shape_cast %66 : vector<8x8x128xbf16> to vector<64x128xbf16>
    %c7 = arith.constant 7 : index
    %c0_49 = arith.constant 0 : index
    %c0_50 = arith.constant 0 : index
    %68 = vector.load %arg3[%c7, %c0_49, %c0_50] : memref<9x128x128xbf16, #tpu.memory_space<vmem>>, vector<1x128x128xbf16>
    %69 = vector.shape_cast %68 : vector<1x128x128xbf16> to vector<128x128xbf16>
    %cst_51 = arith.constant dense<0.000000e+00> : vector<64x128xf32>
    %70 = tpu.matmul %67, %69, %cst_51 {dimension_numbers = #tpu.dot_dimension_numbers<[1], [0], [0], [1], [0, 0, 1, 1], [], []>} : vector<64x128xbf16>, vector<128x128xbf16>, vector<64x128xf32> -> vector<64x128xf32>
    %71 = arith.addf %62, %70 : vector<64x128xf32>
    %c2_i32_52 = arith.constant 2 : i32
    %72 = arith.addi %0, %c2_i32_52 : i32
    %c0_53 = arith.constant 0 : index
    %73 = arith.index_cast %72 : i32 to index
    %c2_54 = arith.constant 2 : index
    %c0_55 = arith.constant 0 : index
    %74 = vector.load %arg2[%c0_53, %73, %c2_54, %c0_55] : memref<1x10x10x128xbf16, #tpu.memory_space<vmem>>, vector<1x8x8x128xbf16>
    %75 = vector.shape_cast %74 : vector<1x8x8x128xbf16> to vector<8x8x128xbf16>
    %76 = vector.shape_cast %75 : vector<8x8x128xbf16> to vector<64x128xbf16>
    %c8 = arith.constant 8 : index
    %c0_56 = arith.constant 0 : index
    %c0_57 = arith.constant 0 : index
    %77 = vector.load %arg3[%c8, %c0_56, %c0_57] : memref<9x128x128xbf16, #tpu.memory_space<vmem>>, vector<1x128x128xbf16>
    %78 = vector.shape_cast %77 : vector<1x128x128xbf16> to vector<128x128xbf16>
    %cst_58 = arith.constant dense<0.000000e+00> : vector<64x128xf32>
    %79 = tpu.matmul %76, %78, %cst_58 {dimension_numbers = #tpu.dot_dimension_numbers<[1], [0], [0], [1], [0, 0, 1, 1], [], []>} : vector<64x128xbf16>, vector<128x128xbf16>, vector<64x128xf32> -> vector<64x128xf32>
    %80 = arith.addf %71, %79 : vector<64x128xf32>
    %c0_59 = arith.constant 0 : index
    %c0_60 = arith.constant 0 : index
    %81 = vector.load %arg4[%c0_59, %c0_60] : memref<1x128xf32, #tpu.memory_space<vmem>>, vector<1x128xf32>
    %82 = vector.broadcast %81 : vector<1x128xf32> to vector<64x128xf32>
    %83 = arith.addf %80, %82 : vector<64x128xf32>
    %cst_61 = arith.constant 0.000000e+00 : f32
    %84 = vector.broadcast %cst_61 : f32 to vector<64x128xf32>
    %85 = arith.maximumf %83, %84 : vector<64x128xf32>
    %86 = vector.shape_cast %85 : vector<64x128xf32> to vector<1x8x8x128xf32>
    %87 = arith.truncf %86 : vector<1x8x8x128xf32> to vector<1x8x8x128xbf16>
    %c0_62 = arith.constant 0 : index
    %c0_63 = arith.constant 0 : index
    %c0_64 = arith.constant 0 : index
    %c0_65 = arith.constant 0 : index
    %88 = vector.load %arg5[%c0_62, %c0_63, %c0_64, %c0_65] : memref<1x8x8x128xbf16, #tpu.memory_space<vmem>>, vector<1x8x8x128xbf16>
    tpu.vector_store %arg5[%c0_62, %c0_63, %c0_64, %c0_65], %87 {strides = array<i32>} : memref<1x8x8x128xbf16, #tpu.memory_space<vmem>>, vector<1x8x8x128xbf16>,
    return
  }
  func.func @transform_0(%arg0: i32, %arg1: i32) -> (i32, i32, i32, i32) {
    %c0_i32 = arith.constant 0 : i32
    %c0_i32_0 = arith.constant 0 : i32
    %c0_i32_1 = arith.constant 0 : i32
    %c0_i32_2 = arith.constant 0 : i32
    return %arg0, %c0_i32, %c0_i32_0, %c0_i32_1 : i32, i32, i32, i32
  }
  func.func @transform_1(%arg0: i32, %arg1: i32) -> (i32, i32, i32) {
    %c0_i32 = arith.constant 0 : i32
    %c0_i32_0 = arith.constant 0 : i32
    %c0_i32_1 = arith.constant 0 : i32
    %c0_i32_2 = arith.constant 0 : i32
    return %c0_i32, %c0_i32_0, %c0_i32_1 : i32, i32, i32
  }
  func.func @transform_2(%arg0: i32, %arg1: i32) -> (i32, i32) {
    %c0_i32 = arith.constant 0 : i32
    %c0_i32_0 = arith.constant 0 : i32
    %c0_i32_1 = arith.constant 0 : i32
    return %c0_i32, %c0_i32_0 : i32, i32
  }
  func.func @transform_3(%arg0: i32, %arg1: i32) -> (i32, i32, i32, i32) {
    %c0_i32 = arith.constant 0 : i32
    %c0_i32_0 = arith.constant 0 : i32
    %c0_i32_1 = arith.constant 0 : i32
    return %arg0, %arg1, %c0_i32, %c0_i32_0 : i32, i32, i32, i32
  }
}

module attributes {stable_mosaic.version = 11 : i64} {
  func.func @_conv3x3_res_kernel(%arg0: i32, %arg1: i32, %arg2: memref<1x10x10x128xbf16, #tpu.memory_space<vmem>>, %arg3: memref<9x128x128xbf16, #tpu.memory_space<vmem>>, %arg4: memref<1x128xf32, #tpu.memory_space<vmem>>, %arg5: memref<1x8x8x128xbf16, #tpu.memory_space<vmem>>, %arg6: memref<1x8x8x128xbf16, #tpu.memory_space<vmem>>) attributes {dimension_semantics = [#tpu.dimension_semantics<parallel>, #tpu.dimension_semantics<arbitrary>], iteration_bounds = array<i64: 2, 1>, scalar_prefetch = 0 : i64, scratch_operands = 0 : i64, tpu.core_type = #tpu.core_type<tc>, window_params = [{transform_indices = @transform_0, window_bounds = array<i64: 1, 10, 10, 128>}, {pipeline_mode = #tpu.pipeline_mode<synchronous>, transform_indices = @transform_1, window_bounds = array<i64: 9, 128, 128>}, {pipeline_mode = #tpu.pipeline_mode<synchronous>, transform_indices = @transform_2, window_bounds = array<i64: 1, 128>}, {transform_indices = @transform_3, window_bounds = array<i64: 1, 8, 8, 128>}, {transform_indices = @transform_4, window_bounds = array<i64: 1, 8, 8, 128>}]} {
    %c0 = arith.constant 0 : index
    %c0_0 = arith.constant 0 : index
    %c0_1 = arith.constant 0 : index
    %c0_2 = arith.constant 0 : index
    %0 = vector.load %arg5[%c0, %c0_0, %c0_1, %c0_2] : memref<1x8x8x128xbf16, #tpu.memory_space<vmem>>, vector<1x8x8x128xbf16>
    %1 = vector.shape_cast %0 : vector<1x8x8x128xbf16> to vector<64x128xbf16>
    %2 = arith.extf %1 : vector<64x128xbf16> to vector<64x128xf32>
    %c8_i32 = arith.constant 8 : i32
    %3 = arith.muli %arg1, %c8_i32 : i32
    %c0_i32 = arith.constant 0 : i32
    %4 = arith.addi %3, %c0_i32 : i32
    %c0_3 = arith.constant 0 : index
    %5 = arith.index_cast %4 : i32 to index
    %c0_4 = arith.constant 0 : index
    %c0_5 = arith.constant 0 : index
    %6 = vector.load %arg2[%c0_3, %5, %c0_4, %c0_5] : memref<1x10x10x128xbf16, #tpu.memory_space<vmem>>, vector<1x8x8x128xbf16>
    %7 = vector.shape_cast %6 : vector<1x8x8x128xbf16> to vector<8x8x128xbf16>
    %8 = vector.shape_cast %7 : vector<8x8x128xbf16> to vector<64x128xbf16>
    %c0_6 = arith.constant 0 : index
    %c0_7 = arith.constant 0 : index
    %c0_8 = arith.constant 0 : index
    %9 = vector.load %arg3[%c0_6, %c0_7, %c0_8] : memref<9x128x128xbf16, #tpu.memory_space<vmem>>, vector<1x128x128xbf16>
    %10 = vector.shape_cast %9 : vector<1x128x128xbf16> to vector<128x128xbf16>
    %cst = arith.constant dense<0.000000e+00> : vector<64x128xf32>
    %11 = tpu.matmul %8, %10, %cst {dimension_numbers = #tpu.dot_dimension_numbers<[1], [0], [0], [1], [0, 0, 1, 1], [], []>} : vector<64x128xbf16>, vector<128x128xbf16>, vector<64x128xf32> -> vector<64x128xf32>
    %c0_i32_9 = arith.constant 0 : i32
    %12 = arith.addi %3, %c0_i32_9 : i32
    %c0_10 = arith.constant 0 : index
    %13 = arith.index_cast %12 : i32 to index
    %c1 = arith.constant 1 : index
    %c0_11 = arith.constant 0 : index
    %14 = vector.load %arg2[%c0_10, %13, %c1, %c0_11] : memref<1x10x10x128xbf16, #tpu.memory_space<vmem>>, vector<1x8x8x128xbf16>
    %15 = vector.shape_cast %14 : vector<1x8x8x128xbf16> to vector<8x8x128xbf16>
    %16 = vector.shape_cast %15 : vector<8x8x128xbf16> to vector<64x128xbf16>
    %c1_12 = arith.constant 1 : index
    %c0_13 = arith.constant 0 : index
    %c0_14 = arith.constant 0 : index
    %17 = vector.load %arg3[%c1_12, %c0_13, %c0_14] : memref<9x128x128xbf16, #tpu.memory_space<vmem>>, vector<1x128x128xbf16>
    %18 = vector.shape_cast %17 : vector<1x128x128xbf16> to vector<128x128xbf16>
    %cst_15 = arith.constant dense<0.000000e+00> : vector<64x128xf32>
    %19 = tpu.matmul %16, %18, %cst_15 {dimension_numbers = #tpu.dot_dimension_numbers<[1], [0], [0], [1], [0, 0, 1, 1], [], []>} : vector<64x128xbf16>, vector<128x128xbf16>, vector<64x128xf32> -> vector<64x128xf32>
    %20 = arith.addf %11, %19 : vector<64x128xf32>
    %c0_i32_16 = arith.constant 0 : i32
    %21 = arith.addi %3, %c0_i32_16 : i32
    %c0_17 = arith.constant 0 : index
    %22 = arith.index_cast %21 : i32 to index
    %c2 = arith.constant 2 : index
    %c0_18 = arith.constant 0 : index
    %23 = vector.load %arg2[%c0_17, %22, %c2, %c0_18] : memref<1x10x10x128xbf16, #tpu.memory_space<vmem>>, vector<1x8x8x128xbf16>
    %24 = vector.shape_cast %23 : vector<1x8x8x128xbf16> to vector<8x8x128xbf16>
    %25 = vector.shape_cast %24 : vector<8x8x128xbf16> to vector<64x128xbf16>
    %c2_19 = arith.constant 2 : index
    %c0_20 = arith.constant 0 : index
    %c0_21 = arith.constant 0 : index
    %26 = vector.load %arg3[%c2_19, %c0_20, %c0_21] : memref<9x128x128xbf16, #tpu.memory_space<vmem>>, vector<1x128x128xbf16>
    %27 = vector.shape_cast %26 : vector<1x128x128xbf16> to vector<128x128xbf16>
    %cst_22 = arith.constant dense<0.000000e+00> : vector<64x128xf32>
    %28 = tpu.matmul %25, %27, %cst_22 {dimension_numbers = #tpu.dot_dimension_numbers<[1], [0], [0], [1], [0, 0, 1, 1], [], []>} : vector<64x128xbf16>, vector<128x128xbf16>, vector<64x128xf32> -> vector<64x128xf32>
    %29 = arith.addf %20, %28 : vector<64x128xf32>
    %c1_i32 = arith.constant 1 : i32
    %30 = arith.addi %3, %c1_i32 : i32
    %c0_23 = arith.constant 0 : index
    %31 = arith.index_cast %30 : i32 to index
    %c0_24 = arith.constant 0 : index
    %c0_25 = arith.constant 0 : index
    %32 = vector.load %arg2[%c0_23, %31, %c0_24, %c0_25] : memref<1x10x10x128xbf16, #tpu.memory_space<vmem>>, vector<1x8x8x128xbf16>
    %33 = vector.shape_cast %32 : vector<1x8x8x128xbf16> to vector<8x8x128xbf16>
    %34 = vector.shape_cast %33 : vector<8x8x128xbf16> to vector<64x128xbf16>
    %c3 = arith.constant 3 : index
    %c0_26 = arith.constant 0 : index
    %c0_27 = arith.constant 0 : index
    %35 = vector.load %arg3[%c3, %c0_26, %c0_27] : memref<9x128x128xbf16, #tpu.memory_space<vmem>>, vector<1x128x128xbf16>
    %36 = vector.shape_cast %35 : vector<1x128x128xbf16> to vector<128x128xbf16>
    %cst_28 = arith.constant dense<0.000000e+00> : vector<64x128xf32>
    %37 = tpu.matmul %34, %36, %cst_28 {dimension_numbers = #tpu.dot_dimension_numbers<[1], [0], [0], [1], [0, 0, 1, 1], [], []>} : vector<64x128xbf16>, vector<128x128xbf16>, vector<64x128xf32> -> vector<64x128xf32>
    %38 = arith.addf %29, %37 : vector<64x128xf32>
    %c1_i32_29 = arith.constant 1 : i32
    %39 = arith.addi %3, %c1_i32_29 : i32
    %c0_30 = arith.constant 0 : index
    %40 = arith.index_cast %39 : i32 to index
    %c1_31 = arith.constant 1 : index
    %c0_32 = arith.constant 0 : index
    %41 = vector.load %arg2[%c0_30, %40, %c1_31, %c0_32] : memref<1x10x10x128xbf16, #tpu.memory_space<vmem>>, vector<1x8x8x128xbf16>
    %42 = vector.shape_cast %41 : vector<1x8x8x128xbf16> to vector<8x8x128xbf16>
    %43 = vector.shape_cast %42 : vector<8x8x128xbf16> to vector<64x128xbf16>
    %c4 = arith.constant 4 : index
    %c0_33 = arith.constant 0 : index
    %c0_34 = arith.constant 0 : index
    %44 = vector.load %arg3[%c4, %c0_33, %c0_34] : memref<9x128x128xbf16, #tpu.memory_space<vmem>>, vector<1x128x128xbf16>
    %45 = vector.shape_cast %44 : vector<1x128x128xbf16> to vector<128x128xbf16>
    %cst_35 = arith.constant dense<0.000000e+00> : vector<64x128xf32>
    %46 = tpu.matmul %43, %45, %cst_35 {dimension_numbers = #tpu.dot_dimension_numbers<[1], [0], [0], [1], [0, 0, 1, 1], [], []>} : vector<64x128xbf16>, vector<128x128xbf16>, vector<64x128xf32> -> vector<64x128xf32>
    %47 = arith.addf %38, %46 : vector<64x128xf32>
    %c1_i32_36 = arith.constant 1 : i32
    %48 = arith.addi %3, %c1_i32_36 : i32
    %c0_37 = arith.constant 0 : index
    %49 = arith.index_cast %48 : i32 to index
    %c2_38 = arith.constant 2 : index
    %c0_39 = arith.constant 0 : index
    %50 = vector.load %arg2[%c0_37, %49, %c2_38, %c0_39] : memref<1x10x10x128xbf16, #tpu.memory_space<vmem>>, vector<1x8x8x128xbf16>
    %51 = vector.shape_cast %50 : vector<1x8x8x128xbf16> to vector<8x8x128xbf16>
    %52 = vector.shape_cast %51 : vector<8x8x128xbf16> to vector<64x128xbf16>
    %c5 = arith.constant 5 : index
    %c0_40 = arith.constant 0 : index
    %c0_41 = arith.constant 0 : index
    %53 = vector.load %arg3[%c5, %c0_40, %c0_41] : memref<9x128x128xbf16, #tpu.memory_space<vmem>>, vector<1x128x128xbf16>
    %54 = vector.shape_cast %53 : vector<1x128x128xbf16> to vector<128x128xbf16>
    %cst_42 = arith.constant dense<0.000000e+00> : vector<64x128xf32>
    %55 = tpu.matmul %52, %54, %cst_42 {dimension_numbers = #tpu.dot_dimension_numbers<[1], [0], [0], [1], [0, 0, 1, 1], [], []>} : vector<64x128xbf16>, vector<128x128xbf16>, vector<64x128xf32> -> vector<64x128xf32>
    %56 = arith.addf %47, %55 : vector<64x128xf32>
    %c2_i32 = arith.constant 2 : i32
    %57 = arith.addi %3, %c2_i32 : i32
    %c0_43 = arith.constant 0 : index
    %58 = arith.index_cast %57 : i32 to index
    %c0_44 = arith.constant 0 : index
    %c0_45 = arith.constant 0 : index
    %59 = vector.load %arg2[%c0_43, %58, %c0_44, %c0_45] : memref<1x10x10x128xbf16, #tpu.memory_space<vmem>>, vector<1x8x8x128xbf16>
    %60 = vector.shape_cast %59 : vector<1x8x8x128xbf16> to vector<8x8x128xbf16>
    %61 = vector.shape_cast %60 : vector<8x8x128xbf16> to vector<64x128xbf16>
    %c6 = arith.constant 6 : index
    %c0_46 = arith.constant 0 : index
    %c0_47 = arith.constant 0 : index
    %62 = vector.load %arg3[%c6, %c0_46, %c0_47] : memref<9x128x128xbf16, #tpu.memory_space<vmem>>, vector<1x128x128xbf16>
    %63 = vector.shape_cast %62 : vector<1x128x128xbf16> to vector<128x128xbf16>
    %cst_48 = arith.constant dense<0.000000e+00> : vector<64x128xf32>
    %64 = tpu.matmul %61, %63, %cst_48 {dimension_numbers = #tpu.dot_dimension_numbers<[1], [0], [0], [1], [0, 0, 1, 1], [], []>} : vector<64x128xbf16>, vector<128x128xbf16>, vector<64x128xf32> -> vector<64x128xf32>
    %65 = arith.addf %56, %64 : vector<64x128xf32>
    %c2_i32_49 = arith.constant 2 : i32
    %66 = arith.addi %3, %c2_i32_49 : i32
    %c0_50 = arith.constant 0 : index
    %67 = arith.index_cast %66 : i32 to index
    %c1_51 = arith.constant 1 : index
    %c0_52 = arith.constant 0 : index
    %68 = vector.load %arg2[%c0_50, %67, %c1_51, %c0_52] : memref<1x10x10x128xbf16, #tpu.memory_space<vmem>>, vector<1x8x8x128xbf16>
    %69 = vector.shape_cast %68 : vector<1x8x8x128xbf16> to vector<8x8x128xbf16>
    %70 = vector.shape_cast %69 : vector<8x8x128xbf16> to vector<64x128xbf16>
    %c7 = arith.constant 7 : index
    %c0_53 = arith.constant 0 : index
    %c0_54 = arith.constant 0 : index
    %71 = vector.load %arg3[%c7, %c0_53, %c0_54] : memref<9x128x128xbf16, #tpu.memory_space<vmem>>, vector<1x128x128xbf16>
    %72 = vector.shape_cast %71 : vector<1x128x128xbf16> to vector<128x128xbf16>
    %cst_55 = arith.constant dense<0.000000e+00> : vector<64x128xf32>
    %73 = tpu.matmul %70, %72, %cst_55 {dimension_numbers = #tpu.dot_dimension_numbers<[1], [0], [0], [1], [0, 0, 1, 1], [], []>} : vector<64x128xbf16>, vector<128x128xbf16>, vector<64x128xf32> -> vector<64x128xf32>
    %74 = arith.addf %65, %73 : vector<64x128xf32>
    %c2_i32_56 = arith.constant 2 : i32
    %75 = arith.addi %3, %c2_i32_56 : i32
    %c0_57 = arith.constant 0 : index
    %76 = arith.index_cast %75 : i32 to index
    %c2_58 = arith.constant 2 : index
    %c0_59 = arith.constant 0 : index
    %77 = vector.load %arg2[%c0_57, %76, %c2_58, %c0_59] : memref<1x10x10x128xbf16, #tpu.memory_space<vmem>>, vector<1x8x8x128xbf16>
    %78 = vector.shape_cast %77 : vector<1x8x8x128xbf16> to vector<8x8x128xbf16>
    %79 = vector.shape_cast %78 : vector<8x8x128xbf16> to vector<64x128xbf16>
    %c8 = arith.constant 8 : index
    %c0_60 = arith.constant 0 : index
    %c0_61 = arith.constant 0 : index
    %80 = vector.load %arg3[%c8, %c0_60, %c0_61] : memref<9x128x128xbf16, #tpu.memory_space<vmem>>, vector<1x128x128xbf16>
    %81 = vector.shape_cast %80 : vector<1x128x128xbf16> to vector<128x128xbf16>
    %cst_62 = arith.constant dense<0.000000e+00> : vector<64x128xf32>
    %82 = tpu.matmul %79, %81, %cst_62 {dimension_numbers = #tpu.dot_dimension_numbers<[1], [0], [0], [1], [0, 0, 1, 1], [], []>} : vector<64x128xbf16>, vector<128x128xbf16>, vector<64x128xf32> -> vector<64x128xf32>
    %83 = arith.addf %74, %82 : vector<64x128xf32>
    %c0_63 = arith.constant 0 : index
    %c0_64 = arith.constant 0 : index
    %84 = vector.load %arg4[%c0_63, %c0_64] : memref<1x128xf32, #tpu.memory_space<vmem>>, vector<1x128xf32>
    %85 = vector.broadcast %84 : vector<1x128xf32> to vector<64x128xf32>
    %86 = arith.addf %83, %85 : vector<64x128xf32>
    %87 = arith.addf %86, %2 : vector<64x128xf32>
    %cst_65 = arith.constant 0.000000e+00 : f32
    %88 = vector.broadcast %cst_65 : f32 to vector<64x128xf32>
    %89 = arith.maximumf %87, %88 : vector<64x128xf32>
    %90 = vector.shape_cast %89 : vector<64x128xf32> to vector<1x8x8x128xf32>
    %91 = arith.truncf %90 : vector<1x8x8x128xf32> to vector<1x8x8x128xbf16>
    %c0_66 = arith.constant 0 : index
    %c0_67 = arith.constant 0 : index
    %c0_68 = arith.constant 0 : index
    %c0_69 = arith.constant 0 : index
    %92 = vector.load %arg6[%c0_66, %c0_67, %c0_68, %c0_69] : memref<1x8x8x128xbf16, #tpu.memory_space<vmem>>, vector<1x8x8x128xbf16>
    tpu.vector_store %arg6[%c0_66, %c0_67, %c0_68, %c0_69], %91 {strides = array<i32>} : memref<1x8x8x128xbf16, #tpu.memory_space<vmem>>, vector<1x8x8x128xbf16>,
    return
  }
  func.func @transform_0(%arg0: i32, %arg1: i32) -> (i32, i32, i32, i32) {
    %c0_i32 = arith.constant 0 : i32
    %c0_i32_0 = arith.constant 0 : i32
    %c0_i32_1 = arith.constant 0 : i32
    %c0_i32_2 = arith.constant 0 : i32
    return %arg0, %c0_i32, %c0_i32_0, %c0_i32_1 : i32, i32, i32, i32
  }
  func.func @transform_1(%arg0: i32, %arg1: i32) -> (i32, i32, i32) {
    %c0_i32 = arith.constant 0 : i32
    %c0_i32_0 = arith.constant 0 : i32
    %c0_i32_1 = arith.constant 0 : i32
    %c0_i32_2 = arith.constant 0 : i32
    return %c0_i32, %c0_i32_0, %c0_i32_1 : i32, i32, i32
  }
  func.func @transform_2(%arg0: i32, %arg1: i32) -> (i32, i32) {
    %c0_i32 = arith.constant 0 : i32
    %c0_i32_0 = arith.constant 0 : i32
    %c0_i32_1 = arith.constant 0 : i32
    return %c0_i32, %c0_i32_0 : i32, i32
  }
  func.func @transform_3(%arg0: i32, %arg1: i32) -> (i32, i32, i32, i32) {
    %c0_i32 = arith.constant 0 : i32
    %c0_i32_0 = arith.constant 0 : i32
    %c0_i32_1 = arith.constant 0 : i32
    return %arg0, %arg1, %c0_i32, %c0_i32_0 : i32, i32, i32, i32
  }
  func.func @transform_4(%arg0: i32, %arg1: i32) -> (i32, i32, i32, i32) {
    %c0_i32 = arith.constant 0 : i32
    %c0_i32_0 = arith.constant 0 : i32
    %c0_i32_1 = arith.constant 0 : i32
    return %arg0, %arg1, %c0_i32, %c0_i32_0 : i32, i32, i32, i32
  }
}

module attributes {stable_mosaic.version = 11 : i64} {
  func.func @_conv3x3_kernel(%arg0: i32, %arg1: i32, %arg2: memref<1x10x10x128xbf16, #tpu.memory_space<vmem>>, %arg3: memref<9x128x128xbf16, #tpu.memory_space<vmem>>, %arg4: memref<1x128xf32, #tpu.memory_space<vmem>>, %arg5: memref<1x8x8x128xf32, #tpu.memory_space<vmem>>) attributes {dimension_semantics = [#tpu.dimension_semantics<parallel>, #tpu.dimension_semantics<arbitrary>], iteration_bounds = array<i64: 2, 1>, scalar_prefetch = 0 : i64, scratch_operands = 0 : i64, tpu.core_type = #tpu.core_type<tc>, window_params = [{transform_indices = @transform_0, window_bounds = array<i64: 1, 10, 10, 128>}, {pipeline_mode = #tpu.pipeline_mode<synchronous>, transform_indices = @transform_1, window_bounds = array<i64: 9, 128, 128>}, {pipeline_mode = #tpu.pipeline_mode<synchronous>, transform_indices = @transform_2, window_bounds = array<i64: 1, 128>}, {transform_indices = @transform_3, window_bounds = array<i64: 1, 8, 8, 128>}]} {
    %c8_i32 = arith.constant 8 : i32
    %0 = arith.muli %arg1, %c8_i32 : i32
    %c0_i32 = arith.constant 0 : i32
    %1 = arith.addi %0, %c0_i32 : i32
    %c0 = arith.constant 0 : index
    %2 = arith.index_cast %1 : i32 to index
    %c0_0 = arith.constant 0 : index
    %c0_1 = arith.constant 0 : index
    %3 = vector.load %arg2[%c0, %2, %c0_0, %c0_1] : memref<1x10x10x128xbf16, #tpu.memory_space<vmem>>, vector<1x8x8x128xbf16>
    %4 = vector.shape_cast %3 : vector<1x8x8x128xbf16> to vector<8x8x128xbf16>
    %5 = vector.shape_cast %4 : vector<8x8x128xbf16> to vector<64x128xbf16>
    %c0_2 = arith.constant 0 : index
    %c0_3 = arith.constant 0 : index
    %c0_4 = arith.constant 0 : index
    %6 = vector.load %arg3[%c0_2, %c0_3, %c0_4] : memref<9x128x128xbf16, #tpu.memory_space<vmem>>, vector<1x128x128xbf16>
    %7 = vector.shape_cast %6 : vector<1x128x128xbf16> to vector<128x128xbf16>
    %cst = arith.constant dense<0.000000e+00> : vector<64x128xf32>
    %8 = tpu.matmul %5, %7, %cst {dimension_numbers = #tpu.dot_dimension_numbers<[1], [0], [0], [1], [0, 0, 1, 1], [], []>} : vector<64x128xbf16>, vector<128x128xbf16>, vector<64x128xf32> -> vector<64x128xf32>
    %c0_i32_5 = arith.constant 0 : i32
    %9 = arith.addi %0, %c0_i32_5 : i32
    %c0_6 = arith.constant 0 : index
    %10 = arith.index_cast %9 : i32 to index
    %c1 = arith.constant 1 : index
    %c0_7 = arith.constant 0 : index
    %11 = vector.load %arg2[%c0_6, %10, %c1, %c0_7] : memref<1x10x10x128xbf16, #tpu.memory_space<vmem>>, vector<1x8x8x128xbf16>
    %12 = vector.shape_cast %11 : vector<1x8x8x128xbf16> to vector<8x8x128xbf16>
    %13 = vector.shape_cast %12 : vector<8x8x128xbf16> to vector<64x128xbf16>
    %c1_8 = arith.constant 1 : index
    %c0_9 = arith.constant 0 : index
    %c0_10 = arith.constant 0 : index
    %14 = vector.load %arg3[%c1_8, %c0_9, %c0_10] : memref<9x128x128xbf16, #tpu.memory_space<vmem>>, vector<1x128x128xbf16>
    %15 = vector.shape_cast %14 : vector<1x128x128xbf16> to vector<128x128xbf16>
    %cst_11 = arith.constant dense<0.000000e+00> : vector<64x128xf32>
    %16 = tpu.matmul %13, %15, %cst_11 {dimension_numbers = #tpu.dot_dimension_numbers<[1], [0], [0], [1], [0, 0, 1, 1], [], []>} : vector<64x128xbf16>, vector<128x128xbf16>, vector<64x128xf32> -> vector<64x128xf32>
    %17 = arith.addf %8, %16 : vector<64x128xf32>
    %c0_i32_12 = arith.constant 0 : i32
    %18 = arith.addi %0, %c0_i32_12 : i32
    %c0_13 = arith.constant 0 : index
    %19 = arith.index_cast %18 : i32 to index
    %c2 = arith.constant 2 : index
    %c0_14 = arith.constant 0 : index
    %20 = vector.load %arg2[%c0_13, %19, %c2, %c0_14] : memref<1x10x10x128xbf16, #tpu.memory_space<vmem>>, vector<1x8x8x128xbf16>
    %21 = vector.shape_cast %20 : vector<1x8x8x128xbf16> to vector<8x8x128xbf16>
    %22 = vector.shape_cast %21 : vector<8x8x128xbf16> to vector<64x128xbf16>
    %c2_15 = arith.constant 2 : index
    %c0_16 = arith.constant 0 : index
    %c0_17 = arith.constant 0 : index
    %23 = vector.load %arg3[%c2_15, %c0_16, %c0_17] : memref<9x128x128xbf16, #tpu.memory_space<vmem>>, vector<1x128x128xbf16>
    %24 = vector.shape_cast %23 : vector<1x128x128xbf16> to vector<128x128xbf16>
    %cst_18 = arith.constant dense<0.000000e+00> : vector<64x128xf32>
    %25 = tpu.matmul %22, %24, %cst_18 {dimension_numbers = #tpu.dot_dimension_numbers<[1], [0], [0], [1], [0, 0, 1, 1], [], []>} : vector<64x128xbf16>, vector<128x128xbf16>, vector<64x128xf32> -> vector<64x128xf32>
    %26 = arith.addf %17, %25 : vector<64x128xf32>
    %c1_i32 = arith.constant 1 : i32
    %27 = arith.addi %0, %c1_i32 : i32
    %c0_19 = arith.constant 0 : index
    %28 = arith.index_cast %27 : i32 to index
    %c0_20 = arith.constant 0 : index
    %c0_21 = arith.constant 0 : index
    %29 = vector.load %arg2[%c0_19, %28, %c0_20, %c0_21] : memref<1x10x10x128xbf16, #tpu.memory_space<vmem>>, vector<1x8x8x128xbf16>
    %30 = vector.shape_cast %29 : vector<1x8x8x128xbf16> to vector<8x8x128xbf16>
    %31 = vector.shape_cast %30 : vector<8x8x128xbf16> to vector<64x128xbf16>
    %c3 = arith.constant 3 : index
    %c0_22 = arith.constant 0 : index
    %c0_23 = arith.constant 0 : index
    %32 = vector.load %arg3[%c3, %c0_22, %c0_23] : memref<9x128x128xbf16, #tpu.memory_space<vmem>>, vector<1x128x128xbf16>
    %33 = vector.shape_cast %32 : vector<1x128x128xbf16> to vector<128x128xbf16>
    %cst_24 = arith.constant dense<0.000000e+00> : vector<64x128xf32>
    %34 = tpu.matmul %31, %33, %cst_24 {dimension_numbers = #tpu.dot_dimension_numbers<[1], [0], [0], [1], [0, 0, 1, 1], [], []>} : vector<64x128xbf16>, vector<128x128xbf16>, vector<64x128xf32> -> vector<64x128xf32>
    %35 = arith.addf %26, %34 : vector<64x128xf32>
    %c1_i32_25 = arith.constant 1 : i32
    %36 = arith.addi %0, %c1_i32_25 : i32
    %c0_26 = arith.constant 0 : index
    %37 = arith.index_cast %36 : i32 to index
    %c1_27 = arith.constant 1 : index
    %c0_28 = arith.constant 0 : index
    %38 = vector.load %arg2[%c0_26, %37, %c1_27, %c0_28] : memref<1x10x10x128xbf16, #tpu.memory_space<vmem>>, vector<1x8x8x128xbf16>
    %39 = vector.shape_cast %38 : vector<1x8x8x128xbf16> to vector<8x8x128xbf16>
    %40 = vector.shape_cast %39 : vector<8x8x128xbf16> to vector<64x128xbf16>
    %c4 = arith.constant 4 : index
    %c0_29 = arith.constant 0 : index
    %c0_30 = arith.constant 0 : index
    %41 = vector.load %arg3[%c4, %c0_29, %c0_30] : memref<9x128x128xbf16, #tpu.memory_space<vmem>>, vector<1x128x128xbf16>
    %42 = vector.shape_cast %41 : vector<1x128x128xbf16> to vector<128x128xbf16>
    %cst_31 = arith.constant dense<0.000000e+00> : vector<64x128xf32>
    %43 = tpu.matmul %40, %42, %cst_31 {dimension_numbers = #tpu.dot_dimension_numbers<[1], [0], [0], [1], [0, 0, 1, 1], [], []>} : vector<64x128xbf16>, vector<128x128xbf16>, vector<64x128xf32> -> vector<64x128xf32>
    %44 = arith.addf %35, %43 : vector<64x128xf32>
    %c1_i32_32 = arith.constant 1 : i32
    %45 = arith.addi %0, %c1_i32_32 : i32
    %c0_33 = arith.constant 0 : index
    %46 = arith.index_cast %45 : i32 to index
    %c2_34 = arith.constant 2 : index
    %c0_35 = arith.constant 0 : index
    %47 = vector.load %arg2[%c0_33, %46, %c2_34, %c0_35] : memref<1x10x10x128xbf16, #tpu.memory_space<vmem>>, vector<1x8x8x128xbf16>
    %48 = vector.shape_cast %47 : vector<1x8x8x128xbf16> to vector<8x8x128xbf16>
    %49 = vector.shape_cast %48 : vector<8x8x128xbf16> to vector<64x128xbf16>
    %c5 = arith.constant 5 : index
    %c0_36 = arith.constant 0 : index
    %c0_37 = arith.constant 0 : index
    %50 = vector.load %arg3[%c5, %c0_36, %c0_37] : memref<9x128x128xbf16, #tpu.memory_space<vmem>>, vector<1x128x128xbf16>
    %51 = vector.shape_cast %50 : vector<1x128x128xbf16> to vector<128x128xbf16>
    %cst_38 = arith.constant dense<0.000000e+00> : vector<64x128xf32>
    %52 = tpu.matmul %49, %51, %cst_38 {dimension_numbers = #tpu.dot_dimension_numbers<[1], [0], [0], [1], [0, 0, 1, 1], [], []>} : vector<64x128xbf16>, vector<128x128xbf16>, vector<64x128xf32> -> vector<64x128xf32>
    %53 = arith.addf %44, %52 : vector<64x128xf32>
    %c2_i32 = arith.constant 2 : i32
    %54 = arith.addi %0, %c2_i32 : i32
    %c0_39 = arith.constant 0 : index
    %55 = arith.index_cast %54 : i32 to index
    %c0_40 = arith.constant 0 : index
    %c0_41 = arith.constant 0 : index
    %56 = vector.load %arg2[%c0_39, %55, %c0_40, %c0_41] : memref<1x10x10x128xbf16, #tpu.memory_space<vmem>>, vector<1x8x8x128xbf16>
    %57 = vector.shape_cast %56 : vector<1x8x8x128xbf16> to vector<8x8x128xbf16>
    %58 = vector.shape_cast %57 : vector<8x8x128xbf16> to vector<64x128xbf16>
    %c6 = arith.constant 6 : index
    %c0_42 = arith.constant 0 : index
    %c0_43 = arith.constant 0 : index
    %59 = vector.load %arg3[%c6, %c0_42, %c0_43] : memref<9x128x128xbf16, #tpu.memory_space<vmem>>, vector<1x128x128xbf16>
    %60 = vector.shape_cast %59 : vector<1x128x128xbf16> to vector<128x128xbf16>
    %cst_44 = arith.constant dense<0.000000e+00> : vector<64x128xf32>
    %61 = tpu.matmul %58, %60, %cst_44 {dimension_numbers = #tpu.dot_dimension_numbers<[1], [0], [0], [1], [0, 0, 1, 1], [], []>} : vector<64x128xbf16>, vector<128x128xbf16>, vector<64x128xf32> -> vector<64x128xf32>
    %62 = arith.addf %53, %61 : vector<64x128xf32>
    %c2_i32_45 = arith.constant 2 : i32
    %63 = arith.addi %0, %c2_i32_45 : i32
    %c0_46 = arith.constant 0 : index
    %64 = arith.index_cast %63 : i32 to index
    %c1_47 = arith.constant 1 : index
    %c0_48 = arith.constant 0 : index
    %65 = vector.load %arg2[%c0_46, %64, %c1_47, %c0_48] : memref<1x10x10x128xbf16, #tpu.memory_space<vmem>>, vector<1x8x8x128xbf16>
    %66 = vector.shape_cast %65 : vector<1x8x8x128xbf16> to vector<8x8x128xbf16>
    %67 = vector.shape_cast %66 : vector<8x8x128xbf16> to vector<64x128xbf16>
    %c7 = arith.constant 7 : index
    %c0_49 = arith.constant 0 : index
    %c0_50 = arith.constant 0 : index
    %68 = vector.load %arg3[%c7, %c0_49, %c0_50] : memref<9x128x128xbf16, #tpu.memory_space<vmem>>, vector<1x128x128xbf16>
    %69 = vector.shape_cast %68 : vector<1x128x128xbf16> to vector<128x128xbf16>
    %cst_51 = arith.constant dense<0.000000e+00> : vector<64x128xf32>
    %70 = tpu.matmul %67, %69, %cst_51 {dimension_numbers = #tpu.dot_dimension_numbers<[1], [0], [0], [1], [0, 0, 1, 1], [], []>} : vector<64x128xbf16>, vector<128x128xbf16>, vector<64x128xf32> -> vector<64x128xf32>
    %71 = arith.addf %62, %70 : vector<64x128xf32>
    %c2_i32_52 = arith.constant 2 : i32
    %72 = arith.addi %0, %c2_i32_52 : i32
    %c0_53 = arith.constant 0 : index
    %73 = arith.index_cast %72 : i32 to index
    %c2_54 = arith.constant 2 : index
    %c0_55 = arith.constant 0 : index
    %74 = vector.load %arg2[%c0_53, %73, %c2_54, %c0_55] : memref<1x10x10x128xbf16, #tpu.memory_space<vmem>>, vector<1x8x8x128xbf16>
    %75 = vector.shape_cast %74 : vector<1x8x8x128xbf16> to vector<8x8x128xbf16>
    %76 = vector.shape_cast %75 : vector<8x8x128xbf16> to vector<64x128xbf16>
    %c8 = arith.constant 8 : index
    %c0_56 = arith.constant 0 : index
    %c0_57 = arith.constant 0 : index
    %77 = vector.load %arg3[%c8, %c0_56, %c0_57] : memref<9x128x128xbf16, #tpu.memory_space<vmem>>, vector<1x128x128xbf16>
    %78 = vector.shape_cast %77 : vector<1x128x128xbf16> to vector<128x128xbf16>
    %cst_58 = arith.constant dense<0.000000e+00> : vector<64x128xf32>
    %79 = tpu.matmul %76, %78, %cst_58 {dimension_numbers = #tpu.dot_dimension_numbers<[1], [0], [0], [1], [0, 0, 1, 1], [], []>} : vector<64x128xbf16>, vector<128x128xbf16>, vector<64x128xf32> -> vector<64x128xf32>
    %80 = arith.addf %71, %79 : vector<64x128xf32>
    %c0_59 = arith.constant 0 : index
    %c0_60 = arith.constant 0 : index
    %81 = vector.load %arg4[%c0_59, %c0_60] : memref<1x128xf32, #tpu.memory_space<vmem>>, vector<1x128xf32>
    %82 = vector.broadcast %81 : vector<1x128xf32> to vector<64x128xf32>
    %83 = arith.addf %80, %82 : vector<64x128xf32>
    %84 = vector.shape_cast %83 : vector<64x128xf32> to vector<1x8x8x128xf32>
    %c0_61 = arith.constant 0 : index
    %c0_62 = arith.constant 0 : index
    %c0_63 = arith.constant 0 : index
    %c0_64 = arith.constant 0 : index
    %85 = vector.load %arg5[%c0_61, %c0_62, %c0_63, %c0_64] : memref<1x8x8x128xf32, #tpu.memory_space<vmem>>, vector<1x8x8x128xf32>
    tpu.vector_store %arg5[%c0_61, %c0_62, %c0_63, %c0_64], %84 {strides = array<i32>} : memref<1x8x8x128xf32, #tpu.memory_space<vmem>>, vector<1x8x8x128xf32>,
    return
  }
  func.func @transform_0(%arg0: i32, %arg1: i32) -> (i32, i32, i32, i32) {
    %c0_i32 = arith.constant 0 : i32
    %c0_i32_0 = arith.constant 0 : i32
    %c0_i32_1 = arith.constant 0 : i32
    %c0_i32_2 = arith.constant 0 : i32
    return %arg0, %c0_i32, %c0_i32_0, %c0_i32_1 : i32, i32, i32, i32
  }
  func.func @transform_1(%arg0: i32, %arg1: i32) -> (i32, i32, i32) {
    %c0_i32 = arith.constant 0 : i32
    %c0_i32_0 = arith.constant 0 : i32
    %c0_i32_1 = arith.constant 0 : i32
    %c0_i32_2 = arith.constant 0 : i32
    return %c0_i32, %c0_i32_0, %c0_i32_1 : i32, i32, i32
  }
  func.func @transform_2(%arg0: i32, %arg1: i32) -> (i32, i32) {
    %c0_i32 = arith.constant 0 : i32
    %c0_i32_0 = arith.constant 0 : i32
    %c0_i32_1 = arith.constant 0 : i32
    return %c0_i32, %c0_i32_0 : i32, i32
  }
  func.func @transform_3(%arg0: i32, %arg1: i32) -> (i32, i32, i32, i32) {
    %c0_i32 = arith.constant 0 : i32
    %c0_i32_0 = arith.constant 0 : i32
    %c0_i32_1 = arith.constant 0 : i32
    return %arg0, %arg1, %c0_i32, %c0_i32_0 : i32, i32, i32, i32
  }
}

</mosaic_0001>

<bundles_post_ra>
// kernel: model_forward.6
= control target key start
LH: loop header
LB: loop body
LE: loop exit
PB: predicated region body
PF: predicated region fallthrough
CT: control target
= control target key end

     0   :  { %s851_s12 = smov 0   ;;  %s959_s0 = inlined_call_operand.vmem [shape: bf16[512,147], index: 0, kind: input, shape index: {}]   ;;  %s960_s1 = inlined_call_operand.vmem [shape: bf16[147,128], index: 1, kind: input, shape index: {}]   ;;  %s961_s2 = inlined_call_operand.vmem [shape: f32[1,128], index: 2, kind: input, shape index: {}]   ;;  %s962_s3 = inlined_call_operand.vmem [shape: bf16[512,128], index: 3, kind: output, shape index: {}]  }
   0x1 LB: > { %s630_s13 = sadd.s32 4294967295, %s827_s12   ;;  %p634_p0 = scmp.ge.s32.totalorder %s827_s12, 1  ;;  %s827_s12 = sphi %s851_s12, %s13_s12  }
   0x2   : > { %p139_p1 = scmp.lt.s32.totalorder %s827_s12, 5 }
   0x4   : > { %p140_p2 = pnand %p634_p0, %p139_p1 }
   0x5   : > { %v787_v0 = vld [vmem:[%s960_s1] sm:$0xff] (!%p140_p2)   ;;  %v829_v1 = vmov (!%p140_p2), 0   ;;  %v788_v2 = vld [vmem:[%s960_s1 + $0x8] sm:$0xff] (!%p140_p2)   ;;  %v789_v3 = vld [vmem:[%s960_s1 + $0x10] sm:$0xff] (!%p140_p2)   ;;  %s635_s20 = sshll.u32 (!%p140_p2), %s630_s13, 4  ;;  %vm349_vm0 = vcmask (!%p140_p2), 154624  }
   0x6   : > { %143 = sbr.rel (%p140_p2) target bundleno = 291 (0x123), region = 32  ;;  %381 = vmatprep.subr.bf16.mxu0 (!%p140_p2), %v829_v1  ;;  %757 = vmatprep.subr.bf16.mxu1 (!%p140_p2), %v829_v1  ;;  %p165_p3 = scmp.lt.s32.totalorder (!%p140_p2), %s635_s20, 63  ;;  %v790_v4 = vld [vmem:[%s960_s1 + $0x18] sm:$0xff] (!%p140_p2)   ;;  %v791_v5 = vld [vmem:[%s960_s1 + $0x20] sm:$0xff] (!%p140_p2)   ;;  %v792_v8 = vld [vmem:[%s960_s1 + $0x28] sm:$0xff] (!%p140_p2)   ;;  %vm374_vm1 = vcmask (!%p140_p2), 1040384  }
   0x7   : > { %382 = vmatpush1.bf16.msra.mxu0 (!%p140_p2), %v787_v0  ;;  %767 = vmatpush1.bf16.msra.mxu1 (!%p140_p2), %v787_v0  ;;  %v793_v9 = vld [vmem:[%s960_s1 + $0x30] sm:$0xff] (!%p140_p2)   ;;  %v794_v10 = vld [vmem:[%s960_s1 + $0x38] sm:$0xff] (!%p140_p2)   ;;  %vm375_vm2 = vcmask (!%p140_p2), 1041408   ;;  %v830_v11 = vmov (!%p140_p2), 65535   ;;  %v795_v13 = vld [vmem:[%s960_s1 + $0x40] sm:$0xff] (!%p140_p2)  }
   0x8   : > { %383 = vmatprep.subr.bf16.mxu0 (!%p140_p2), %v829_v1  ;;  %758 = vmatprep.subr.bf16.mxu1 (!%p140_p2), %v829_v1  ;;  %v376_v12 = vsel (!%p140_p2), %vm374_vm1, 4294967295, %v830_v11  ;;  %v796_v14 = vld [vmem:[%s960_s1 + $0x48] ss:$0 sps:$4 sm:$0x33] (!%p140_p2)   ;;  %v924_v31 = vld [vmem:[%s961_s2] ss:$0 sm:$0xff] (!%p140_p2) }
   0x9   : > { %v377_v15 = vsel (!%p140_p2), %vm375_vm2, %v376_v12, 0 }
   0xa   : > { %v379_v16 = vand.u32 (!%p140_p2), %v796_v14, %v377_v15 }
   0xb   : > { %384 = vmatpush1.bf16.msra.mxu0 (!%p140_p2), %v788_v2  ;;  %768 = vmatpush1.bf16.msra.mxu1 (!%p140_p2), %v788_v2 }
   0xc   : > { %385 = vmatprep.subr.bf16.mxu0 (!%p140_p2), %v829_v1  ;;  %759 = vmatprep.subr.bf16.mxu1 (!%p140_p2), %v829_v1 }
   0xd   : > { %s964_s20 = smov (!%p165_p3, %s635_s20), 63 }
   0xe   : > { %s693_s23 = sshll.u32 %s964_s20, 3  ;;  %s639_s15 = sshll.u32 %s964_s20, 2 }
   0xf   : > { %386 = vmatpush1.bf16.msra.mxu0 %v789_v3  ;;  %769 = vmatpush1.bf16.msra.mxu1 %v789_v3  ;;  %s877_s26 = scalar_lea.vmem %s959_s0, %s693_s23  ;;  %s934_s18 = scalar_lea.vmem %s962_s3, %s639_s15 }
  0x10   : > { %387 = vmatprep.subr.bf16.mxu0 %v829_v1  ;;  %760 = vmatprep.subr.bf16.mxu1 %v829_v1  ;;  %v799_v6 = vld [vmem:[%s877_s26 + $0x4] ss:$8 sps:$4 sm:$0xff]   ;;  %v797_v17 = vld [vmem:[%s877_s26] ss:$8 sps:$4 sm:$0xff]   ;;  %v803_v19 = vld [vmem:[%s877_s26 + $0x14] ss:$8 sps:$4 sm:$0xff]  }
  0x11   : > { %v802_v7 = vld [vmem:[%s877_s26 + $0x44] ss:$8 sps:$4 sm:$0xff]   ;;  %667 = vmatprep.mubr.msk.bf16.mxu0 %vm349_vm0, %v799_v6  ;;  %v800_v18 = vld [vmem:[%s877_s26 + $0x40] ss:$8 sps:$4 sm:$0xff]   ;;  %v805_v20 = vld [vmem:[%s877_s26 + $0x54] ss:$8 sps:$4 sm:$0xff]  }
  0x12   : > { %671 = vmatprep.mubr.msk.bf16.mxu1 %vm349_vm0, %v802_v7  ;;  %v807_v21 = vld [vmem:[%s877_s26 + $0x10] ss:$8 sps:$4 sm:$0xff]   ;;  %v809_v23 = vld [vmem:[%s877_s26 + $0x24] ss:$8 sps:$4 sm:$0xff]   ;;  %v813_v25 = vld [vmem:[%s877_s26 + $0x20] ss:$8 sps:$4 sm:$0xff]  }
  0x13   : > { %388 = vmatpush1.bf16.msra.mxu0 %v790_v4  ;;  %770 = vmatpush1.bf16.msra.mxu1 %v790_v4  ;;  %v808_v22 = vld [vmem:[%s877_s26 + $0x50] ss:$8 sps:$4 sm:$0xff]   ;;  %v811_v24 = vld [vmem:[%s877_s26 + $0x64] ss:$8 sps:$4 sm:$0xff]   ;;  %v814_v26 = vld [vmem:[%s877_s26 + $0x60] ss:$8 sps:$4 sm:$0xff]  }
  0x14   : > { %389 = vmatprep.subr.bf16.mxu0 %v829_v1  ;;  %761 = vmatprep.subr.bf16.mxu1 %v829_v1  ;;  %v815_v27 = vld [vmem:[%s877_s26 + $0x34] ss:$8 sps:$4 sm:$0xff]   ;;  %v819_v29 = vld [vmem:[%s877_s26 + $0x30] ss:$8 sps:$4 sm:$0xff]  }
  0x15   : > { %v817_v28 = vld [vmem:[%s877_s26 + $0x74] ss:$8 sps:$4 sm:$0xff]   ;;  %v820_v30 = vld [vmem:[%s877_s26 + $0x70] ss:$8 sps:$4 sm:$0xff]  }
  0x17   : > { %390 = vmatpush1.bf16.msra.mxu0 %v791_v5  ;;  %771 = vmatpush1.bf16.msra.mxu1 %v791_v5 }
  0x18   : > { %391 = vmatprep.subr.bf16.mxu0 %v829_v1  ;;  %762 = vmatprep.subr.bf16.mxu1 %v829_v1 }
  0x1b   : > { %392 = vmatpush1.bf16.msra.mxu0 %v792_v8  ;;  %772 = vmatpush1.bf16.msra.mxu1 %v792_v8 }
  0x1c   : > { %393 = vmatprep.subr.bf16.mxu0 %v829_v1  ;;  %763 = vmatprep.subr.bf16.mxu1 %v829_v1 }
  0x1f   : > { %394 = vmatpush1.bf16.msra.mxu0 %v793_v9  ;;  %773 = vmatpush1.bf16.msra.mxu1 %v793_v9 }
  0x20   : > { %395 = vmatprep.subr.bf16.mxu0 %v829_v1  ;;  %764 = vmatprep.subr.bf16.mxu1 %v829_v1 }
  0x23   : > { %396 = vmatpush1.bf16.msra.mxu0 %v794_v10  ;;  %774 = vmatpush1.bf16.msra.mxu1 %v794_v10 }
  0x24   : > { %397 = vmatprep.subr.bf16.mxu0 %v829_v1  ;;  %765 = vmatprep.subr.bf16.mxu1 %v829_v1 }
  0x27   : > { %398 = vmatpush1.bf16.msra.mxu0 %v795_v13  ;;  %775 = vmatpush1.bf16.msra.mxu1 %v795_v13 }
  0x28   : > { %399 = vmatprep.subr.bf16.mxu0 %v829_v1  ;;  %766 = vmatprep.subr.bf16.mxu1 %v829_v1 }
  0x2b   : > { %400 = vmatpush1.bf16.msra.mxu0 %v379_v16  ;;  %776 = vmatpush1.bf16.msra.mxu1 %v379_v16 }
  0x2e   : > { %414 = vmatmul.mubr.bf16.vlgmr.msra.gmra.mrb[0].mxu0 %v797_v17  ;;  %446 = vmatmul.mubr.bf16.vlgmr.msra.gmra.mrb[0].mxu1 %v800_v18 }
  0x2f   : > { %668 = vmatprep.mubr.msk.bf16.mxu0 %vm349_vm0, %v803_v19  ;;  %672 = vmatprep.mubr.msk.bf16.mxu1 %vm349_vm0, %v805_v20 }
  0x36   : > { %422 = vmatmul.mubr.bf16.gmra.mrb[4].mxu0 %v807_v21  ;;  %454 = vmatmul.mubr.bf16.gmra.mrb[4].mxu1 %v808_v22 }
  0x37   : > { %669 = vmatprep.mubr.msk.bf16.mxu0 %vm349_vm0, %v809_v23  ;;  %673 = vmatprep.mubr.msk.bf16.mxu1 %vm349_vm0, %v811_v24 }
  0x3e   : > { %430 = vmatmul.mubr.bf16.gmra.mrb[8].mxu0 %v813_v25  ;;  %462 = vmatmul.mubr.bf16.gmra.mrb[8].mxu1 %v814_v26 }
  0x3f   : > { %670 = vmatprep.mubr.msk.bf16.mxu0 %vm349_vm0, %v815_v27  ;;  %674 = vmatprep.mubr.msk.bf16.mxu1 %vm349_vm0, %v817_v28 }
  0x46   : > { %438 = vmatmul.mubr.bf16.gmra.mrb[12].mxu0 %v819_v29  ;;  %470 = vmatmul.mubr.bf16.gmra.mrb[12].mxu1 %v820_v30 }
 0x101   : > { %v415_v32 = vpop.f32.mrb[0].mxu0  ;;  %v447_v33 = vpop.f32.mrb[0].mxu1 }
 0x102   : > { %v416_v34 = vadd.f32 %v924_v31, %v415_v32  ;;  %v448_v35 = vadd.f32 %v924_v31, %v447_v33  ;;  %v417_v36 = vpop.f32.mrb[1].mxu0  ;;  %v449_v37 = vpop.f32.mrb[1].mxu1 }
 0x103   : > { %v418_v38 = vpop.f32.mrb[2].mxu0  ;;  %v450_v39 = vpop.f32.mrb[2].mxu1 }
 0x104   : > { %v419_v40 = vadd.f32 %v924_v31, %v418_v38  ;;  %v451_v41 = vadd.f32 %v924_v31, %v450_v39  ;;  %v420_v42 = vpop.f32.mrb[3].mxu0  ;;  %v452_v43 = vpop.f32.mrb[3].mxu1  ;;  %v478_v44 = vmax.f32 %v416_v34, 0.0  ;;  %v486_v45 = vmax.f32 %v448_v35, 0.0 }
 0x106   : > { %v479_v46 = vmax.f32 %v419_v40, 0.0  ;;  %v487_v47 = vmax.f32 %v451_v41, 0.0 }
 0x108   : > { %v713_v48 = vpack.c.bf16 %v479_v46, %v478_v44  ;;  %v733_v49 = vpack.c.bf16 %v487_v47, %v486_v45 }
 0x109   : > { %v423_v50 = vpop.f32.mrb[4].mxu0  ;;  %v455_v51 = vpop.f32.mrb[4].mxu1 }
 0x10a   : > { %714 = vst [vmem:[%s934_s18] sm:$0xff] %v713_v48   ;;  %753 = vst [vmem:[%s934_s18 + $0x20] sm:$0xff] %v733_v49   ;;  %v424_v52 = vadd.f32 %v924_v31, %v423_v50  ;;  %v456_v53 = vadd.f32 %v924_v31, %v455_v51  ;;  %v425_v54 = vpop.f32.mrb[5].mxu0  ;;  %v457_v55 = vpop.f32.mrb[5].mxu1 }
 0x10b   : > { %v426_v56 = vpop.f32.mrb[6].mxu0  ;;  %v458_v57 = vpop.f32.mrb[6].mxu1 }
 0x10c   : > { %v427_v58 = vadd.f32 %v924_v31, %v426_v56  ;;  %v459_v59 = vadd.f32 %v924_v31, %v458_v57  ;;  %v428_v60 = vpop.f32.mrb[7].mxu0  ;;  %v460_v61 = vpop.f32.mrb[7].mxu1  ;;  %v480_v62 = vmax.f32 %v424_v52, 0.0  ;;  %v488_v63 = vmax.f32 %v456_v53, 0.0 }
 0x10e   : > { %v481_v0 = vmax.f32 %v427_v58, 0.0  ;;  %v489_v1 = vmax.f32 %v459_v59, 0.0 }
 0x110   : > { %v718_v2 = vpack.c.bf16 %v481_v0, %v480_v62  ;;  %v738_v3 = vpack.c.bf16 %v489_v1, %v488_v63 }
 0x111   : > { %v431_v4 = vpop.f32.mrb[8].mxu0  ;;  %v463_v5 = vpop.f32.mrb[8].mxu1 }
 0x112   : > { %750 = vst [vmem:[%s934_s18 + $0x8] sm:$0xff] %v718_v2   ;;  %754 = vst [vmem:[%s934_s18 + $0x28] sm:$0xff] %v738_v3   ;;  %v432_v6 = vadd.f32 %v924_v31, %v431_v4  ;;  %v464_v7 = vadd.f32 %v924_v31, %v463_v5  ;;  %v433_v8 = vpop.f32.mrb[9].mxu0  ;;  %v465_v9 = vpop.f32.mrb[9].mxu1 }
 0x113   : > { %v434_v10 = vpop.f32.mrb[10].mxu0  ;;  %v466_v11 = vpop.f32.mrb[10].mxu1 }
 0x114   : > { %v435_v12 = vadd.f32 %v924_v31, %v434_v10  ;;  %v467_v13 = vadd.f32 %v924_v31, %v466_v11  ;;  %v436_v14 = vpop.f32.mrb[11].mxu0  ;;  %v468_v15 = vpop.f32.mrb[11].mxu1  ;;  %v482_v16 = vmax.f32 %v432_v6, 0.0  ;;  %v490_v17 = vmax.f32 %v464_v7, 0.0 }
 0x116   : > { %v483_v18 = vmax.f32 %v435_v12, 0.0  ;;  %v491_v19 = vmax.f32 %v467_v13, 0.0 }
 0x118   : > { %v723_v20 = vpack.c.bf16 %v483_v18, %v482_v16  ;;  %v743_v21 = vpack.c.bf16 %v491_v19, %v490_v17 }
 0x119   : > { %v439_v22 = vpop.f32.mrb[12].mxu0  ;;  %v471_v23 = vpop.f32.mrb[12].mxu1 }
 0x11a   : > { %751 = vst [vmem:[%s934_s18 + $0x10] sm:$0xff] %v723_v20   ;;  %755 = vst [vmem:[%s934_s18 + $0x30] sm:$0xff] %v743_v21   ;;  %v440_v24 = vadd.f32 %v924_v31, %v439_v22  ;;  %v472_v25 = vadd.f32 %v924_v31, %v471_v23  ;;  %v441_v26 = vpop.f32.mrb[13].mxu0  ;;  %v473_v27 = vpop.f32.mrb[13].mxu1 }
 0x11b   : > { %v442_v28 = vpop.f32.mrb[14].mxu0  ;;  %v474_v29 = vpop.f32.mrb[14].mxu1 }
 0x11c   : > { %v443_v30 = vadd.f32 %v924_v31, %v442_v28  ;;  %v475_v32 = vadd.f32 %v924_v31, %v474_v29  ;;  %v444_v33 = vpop.f32.mrb[15].mxu0  ;;  %v476_v34 = vpop.f32.mrb[15].mxu1  ;;  %v484_v35 = vmax.f32 %v440_v24, 0.0  ;;  %v492_v36 = vmax.f32 %v472_v25, 0.0 }
 0x11e   : > { %v485_v37 = vmax.f32 %v443_v30, 0.0  ;;  %v493_v38 = vmax.f32 %v475_v32, 0.0 }
 0x120   : > { %v728_v39 = vpack.c.bf16 %v485_v37, %v484_v35  ;;  %v748_v40 = vpack.c.bf16 %v493_v38, %v492_v36 }
 0x122   : > { %752 = vst [vmem:[%s934_s18 + $0x18] sm:$0xff] %v728_v39   ;;  %756 = vst [vmem:[%s934_s18 + $0x38] sm:$0xff] %v748_v40  }
 0x123 PF: > { %s13_s12 = sadd.s32 1, %s827_s12  }
 0x124   : > { %p10_p4 = scmp.ge.s32.totalorder %s13_s12, 6  }
 0x126   :  { %12 = sbr.rel (!%p10_p4) target bundleno = 1 (0x1), region = 62 }

// kernel: model_forward.7
= control target key start
LH: loop header
LB: loop body
LE: loop exit
PB: predicated region body
PF: predicated region fallthrough
CT: control target
= control target key end

     0   :  { %s3220_s12 = smov 0   ;;  %s3222_s13 = smov 0   ;;  %s3808_s0 = inlined_call_operand.vmem [shape: bf16[2,10,10,128], index: 0, kind: input, shape index: {}]   ;;  %s3809_s1 = inlined_call_operand.vmem [shape: bf16[9,128,128], index: 1, kind: input, shape index: {}]   ;;  %s3810_s2 = inlined_call_operand.vmem [shape: f32[1,128], index: 2, kind: input, shape index: {}]   ;;  %s3811_s3 = inlined_call_operand.vmem [shape: bf16[2,8,8,128], index: 3, kind: output, shape index: {}]  }
   0x1   :  { %s3224_s14 = smov 0  }
   0x2 LB: > { %s25_s15 = sadd.s32 1, %s3194_s13  ;;  %p2308_p0 = scmp.ge.s32.totalorder %s3198_s14, 1  ;;  %s3198_s14 = sphi %s3224_s14, %s13_s14   ;;  %s3194_s13 = sphi %s3222_s13, %s3817_s13   ;;  %s3190_s12 = sphi %s3220_s12, %s3816_s12  }
   0x3   : > { %p27_p1 = scmp.ge.s32.totalorder %s25_s15, 2  ;;  %p151_p2 = scmp.lt.s32.totalorder %s3198_s14, 3 }
   0x5   : > { %s3819_s15 = smov (%p27_p1, %s25_s15), 0  ;;  %p152_p3 = pnand %p2308_p0, %p151_p2 }
   0x6   : > { %v3092_v0 = vld [vmem:[%s3809_s1 + $0x40] sm:$0xff] (!%p152_p3)   ;;  %p179_p4 = scmp.lt.s32.totalorder (!%p152_p3), %s3190_s12, 1  ;;  %v3094_v2 = vld [vmem:[%s3809_s1 + $0x48] sm:$0xff] (!%p152_p3)   ;;  %v3096_v4 = vld [vmem:[%s3809_s1 + $0x50] sm:$0xff] (!%p152_p3)   ;;  %vm231_vm0 = vsmask.f32 (!%p152_p3), 3328 }
   0x7   : > { %155 = sbr.rel (%p152_p3) target bundleno = 397 (0x18d), region = 32  ;;  %v3093_v1 = vld [vmem:[%s3809_s1 + $0x100] sm:$0xff] (!%p152_p3)   ;;  %2771 = vmatprep.subr.bf16.mxu1 (!%p152_p3), %v3092_v0  ;;  %v3095_v3 = vld [vmem:[%s3809_s1 + $0x108] sm:$0xff] (!%p152_p3)   ;;  %v3097_v5 = vld [vmem:[%s3809_s1 + $0x110] sm:$0xff] (!%p152_p3)   ;;  %vm232_vm1 = vsmask.f32 (!%p152_p3), 7440 }
   0x8   : > { %2867 = vmatprep.subr.bf16.mxu0 (!%p152_p3), %v3093_v1  ;;  %2772 = vmatpush3.bf16.msra.mxu1 (!%p152_p3), %v3092_v0  ;;  %v3098_v6 = vld [vmem:[%s3809_s1 + $0x58] sm:$0xff] (!%p152_p3)   ;;  %v3100_v8 = vld [vmem:[%s3809_s1 + $0x60] sm:$0xff] (!%p152_p3)   ;;  %v3102_v10 = vld [vmem:[%s3809_s1 + $0x68] sm:$0xff] (!%p152_p3)   ;;  %vm653_vm3 = vcmask (!%p152_p3), 1042432   ;;  %vm654_vm4 = vcmask (!%p152_p3), 1046532  }
   0x9   : > { %2868 = vmatpush3.bf16.msra.mxu0 (!%p152_p3), %v3093_v1  ;;  %2773 = vmatprep.subr.bf16.mxu1 (!%p152_p3), %v3094_v2  ;;  %v3099_v7 = vld [vmem:[%s3809_s1 + $0x118] sm:$0xff] (!%p152_p3)   ;;  %v3101_v9 = vld [vmem:[%s3809_s1 + $0x120] sm:$0xff] (!%p152_p3)   ;;  %v3103_v14 = vld [vmem:[%s3809_s1 + $0x128] sm:$0xff] (!%p152_p3)  }
   0xa   : > { %2869 = vmatprep.subr.bf16.mxu0 (!%p152_p3), %v3095_v3  ;;  %v3104_v22 = vld [vmem:[%s3809_s1 + $0x70] sm:$0xff] (!%p152_p3)   ;;  %v3106_v37 = vld [vmem:[%s3809_s1 + $0x78] sm:$0xff] (!%p152_p3)   ;;  %vm3319_vm2 = vmor (!%p152_p3), %vm231_vm0, %vm232_vm1 }
   0xb   : > { %v3105_v23 = vld [vmem:[%s3809_s1 + $0x130] sm:$0xff] (!%p152_p3)   ;;  %v3107_v47 = vld [vmem:[%s3809_s1 + $0x138] sm:$0xff] (!%p152_p3)   ;;  %v3108_v63 = vld [vmem:[%s3809_s1] sm:$0xff] (!%p152_p3)  }
   0xc   : > { %2774 = vmatpush3.bf16.msra.mxu1 (!%p152_p3), %v3094_v2  ;;  %v3351_v1 = vld [vmem:[%s3809_s1 + $0x140] sm:$0xff] (!%p152_p3)   ;;  %vm3493_vm5 = vmor (!%p152_p3), %vm653_vm3, %vm654_vm4 }
   0xd   : > { %2870 = vmatpush3.bf16.msra.mxu0 (!%p152_p3), %v3095_v3  ;;  %2775 = vmatprep.subr.bf16.mxu1 (!%p152_p3), %v3096_v4  ;;  %v3172_v38 = vld [vmem:[%s3809_s1 + $0x220] sm:$0xff] (!%p152_p3)  }
   0xe   : > { %s3821_s12 = smov (!%p179_p4, %s3190_s12), 1  ;;  %2871 = vmatprep.subr.bf16.mxu0 %v3097_v5 }
   0xf   : > { %s3067_s5 = smul.u32 80, %s3821_s12 }
  0x10   : > { %2776 = vmatpush3.bf16.msra.mxu1 %v3096_v4 }
  0x11   : > { %2872 = vmatpush3.bf16.msra.mxu0 %v3097_v5  ;;  %2777 = vmatprep.subr.bf16.mxu1 %v3098_v6  ;;  %s3274_s16 = scalar_lea.vmem %s3808_s0, %s3067_s5  ;;  %s2639_s5 = sshll.u32 %s3821_s12, 5 }
  0x12   : > { %2873 = vmatprep.subr.bf16.mxu0 %v3099_v7  ;;  %v3280_v11 = vld [vmem:[%s3274_s16] sm:$0xf]  ;;  %v3283_v12 = vld [vmem:[%s3274_s16 + $0x8] sm:$0xf]  ;;  %v3286_v13 = vld [vmem:[%s3274_s16 + $0x4] sm:$0x1]  ;;  %s192_s8 = scalar_lea.vmem %s3811_s3, %s2639_s5 }
  0x13   : > { %v3292_v15 = vld [vmem:[%s3274_s16 + $0xc] sm:$0x1]  ;;  %v235_v16 = vshrl.u32 %v3280_v11, 16  ;;  %v238_v17 = vshll.u32 %v3280_v11, 16  ;;  %v244_v18 = vshll.u32 %v3286_v13, 16  ;;  %v249_v19 = vshrl.u32 %v3283_v12, 16 }
  0x14   : > { %2778 = vmatpush3.bf16.msra.mxu1 %v3098_v6  ;;  %v252_v20 = vshll.u32 %v3283_v12, 16  ;;  %v258_v21 = vshll.u32 %v3292_v15, 16  ;;  %v2424_v30 = vld [vmem:[%s3274_s16 + $0x8] sm:$0xf]  ;;  %v3308_v31 = vld [vmem:[%s3274_s16 + $0xc] sm:$0x1] }
  0x15   : > { %2874 = vmatpush3.bf16.msra.mxu0 %v3099_v7  ;;  %2779 = vmatprep.subr.bf16.mxu1 %v3100_v8  ;;  %v237_v24 = vrot.slane %v235_v16, 4  ;;  %v240_v25 = vrot.slane %v238_v17, 5  ;;  %v246_v26 = vrot.slane %v244_v18, 5  ;;  %v251_v27 = vrot.slane %v249_v19, 4  ;;  %v2426_v33 = vld [vmem:[%s3274_s16 + $0x10] sm:$0xf] }
  0x16   : > { %2875 = vmatprep.subr.bf16.mxu0 %v3101_v9  ;;  %v254_v28 = vrot.slane %v252_v20, 5  ;;  %v260_v29 = vrot.slane %v258_v21, 5  ;;  %v3312_v34 = vld [vmem:[%s3274_s16 + $0x14] sm:$0x1]  ;;  %v1033_v35 = vshrl.u32 %v2424_v30, 16  ;;  %v1036_v36 = vshll.u32 %v2424_v30, 16 }
  0x17   : > { %v241_v32 = vor.u32 %v240_v25, %v237_v24  ;;  %v1042_v40 = vshll.u32 %v3308_v31, 16  ;;  %v1047_v41 = vshrl.u32 %v2426_v33, 16  ;;  %v1050_v42 = vshll.u32 %v2426_v33, 16  ;;  %v3329_v51 = vld [vmem:[%s3274_s16 + $0x10] sm:$0xf] }
  0x18   : > { %2780 = vmatpush3.bf16.msra.mxu1 %v3100_v8  ;;  %v255_v39 = vor.u32 %v254_v28, %v251_v27  ;;  %v1035_v44 = vrot.slane %v1033_v35, 4  ;;  %v1038_v45 = vrot.slane %v1036_v36, 5  ;;  %v1056_v46 = vshll.u32 %v3312_v34, 16  ;;  %v3334_v55 = vld [vmem:[%s3274_s16 + $0x18] sm:$0xf] }
  0x19   : > { %2876 = vmatpush3.bf16.msra.mxu0 %v3101_v9  ;;  %2781 = vmatprep.subr.bf16.mxu1 %v3102_v10  ;;  %v242_v43 = vrot.slane %v241_v32, 4  ;;  %v1049_v49 = vrot.slane %v1047_v41, 4  ;;  %v1052_v50 = vrot.slane %v1050_v42, 5  ;;  %v1044_v54 = vrot.slane %v1042_v40, 5  ;;  %v3337_v56 = vld [vmem:[%s3274_s16 + $0x14] sm:$0x1] }
  0x1a   : > { %2877 = vmatprep.subr.bf16.mxu0 %v3103_v14  ;;  %v256_v48 = vrot.slane %v255_v39, 4  ;;  %v1039_v53 = vor.u32 %v1038_v45, %v1035_v44  ;;  %v1058_v59 = vrot.slane %v1056_v46, 5  ;;  %v3342_v60 = vld [vmem:[%s3274_s16 + $0x1c] sm:$0x1]  ;;  %v263_v61 = vshrl.u32 %v3329_v51, 16 }
  0x1b   : > { %v247_v52 = vsel %vm3319_vm2, %v242_v43, %v246_v26  ;;  %v1053_v58 = vor.u32 %v1052_v50, %v1049_v49  ;;  %v266_v2 = vshll.u32 %v3329_v51, 16  ;;  %v272_v3 = vshll.u32 %v3337_v56, 16  ;;  %v2428_v8 = vld [vmem:[%s3274_s16 + $0x18] sm:$0xf]  ;;  %v3362_v16 = vld [vmem:[%s3274_s16 + $0x1c] sm:$0x1] }
  0x1c   : > { %2782 = vmatpush3.bf16.msra.mxu1 %v3102_v10  ;;  %v261_v57 = vsel %vm3319_vm2, %v256_v48, %v260_v29  ;;  %v1040_v0 = vrot.slane %v1039_v53, 4  ;;  %v265_v5 = vrot.slane %v263_v61, 4  ;;  %v277_v6 = vshrl.u32 %v3334_v55, 16  ;;  %v2430_v17 = vld [vmem:[%s3274_s16 + $0x20] sm:$0xf]  ;;  %v3110_v43 = vld [vmem:[%s3809_s1 + $0x8] sm:$0xff]  }
  0x1d   : > { %2878 = vmatpush3.bf16.msra.mxu0 %v3103_v14  ;;  %2783 = vmatprep.subr.bf16.mxu1 %v3104_v22  ;;  %v2328_v62 = vcombine.low %v247_v52, %v261_v57  ;;  %v1054_v4 = vrot.slane %v1053_v58, 4  ;;  %v280_v7 = vshll.u32 %v3334_v55, 16  ;;  %v268_v10 = vrot.slane %v266_v2, 5  ;;  %v3368_v21 = vld [vmem:[%s3274_s16 + $0x24] sm:$0x1] }
  0x1e   : > { %2879 = vmatprep.subr.bf16.mxu0 %v3105_v23  ;;  %v1045_v9 = vsel %vm3319_vm2, %v1040_v0, %v1044_v54  ;;  %v286_v14 = vshll.u32 %v3342_v60, 16  ;;  %v279_v19 = vrot.slane %v277_v6, 4  ;;  %v274_v24 = vrot.slane %v272_v3, 5  ;;  %v3111_v54 = vld [vmem:[%s3809_s1 + $0x148] sm:$0xff]   ;;  %v3398_v0 = vld [vmem:[%s3274_s16 + $0x24] sm:$0x1] }
  0x1f   : > { %2787 = vmatprep.mubr.bf16.mxu1 %v2328_v62  ;;  %v1059_v18 = vsel %vm3319_vm2, %v1054_v4, %v1058_v59  ;;  %v282_v20 = vrot.slane %v280_v7, 5  ;;  %v1061_v27 = vshrl.u32 %v2428_v8, 16  ;;  %v1064_v28 = vshll.u32 %v2428_v8, 16  ;;  %v3112_v59 = vld [vmem:[%s3809_s1 + $0x10] sm:$0xff]   ;;  %v3392_v62 = vld [vmem:[%s3274_s16 + $0x20] sm:$0xf] }
  0x20   : > { %2784 = vmatpush3.bf16.msra.mxu1 %v3104_v22  ;;  %v2456_v22 = vcombine.low %v1045_v9, %v1059_v18  ;;  %v288_v25 = vrot.slane %v286_v14, 5  ;;  %v1070_v29 = vshll.u32 %v3362_v16, 16  ;;  %v1075_v32 = vshrl.u32 %v2430_v17, 16  ;;  %v3401_v2 = vld [vmem:[%s3274_s16 + $0x2c] sm:$0x1]  ;;  %v3113_v9 = vld [vmem:[%s3809_s1 + $0x150] sm:$0xff]  }
  0x21   : > { %2880 = vmatpush3.bf16.msra.mxu0 %v3105_v23  ;;  %2785 = vmatprep.subr.bf16.mxu1 %v3106_v37  ;;  %v269_v23 = vor.u32 %v268_v10, %v265_v5  ;;  %v283_v26 = vor.u32 %v282_v20, %v279_v19  ;;  %v1078_v33 = vshll.u32 %v2430_v17, 16  ;;  %v1084_v35 = vshll.u32 %v3368_v21, 16  ;;  %v3114_v10 = vld [vmem:[%s3809_s1 + $0x18] sm:$0xff]  }
  0x22   : > { %2881 = vmatprep.subr.bf16.mxu0 %v3107_v47  ;;  %2883 = vmatprep.mubr.bf16.mxu0 %v2456_v22  ;;  %v1066_v39 = vrot.slane %v1064_v28, 5  ;;  %v1077_v41 = vrot.slane %v1075_v32, 4  ;;  %v1072_v46 = vrot.slane %v1070_v29, 5  ;;  %v1324_v57 = vrot.slane %v3308_v31, 5  ;;  %v3115_v29 = vld [vmem:[%s3809_s1 + $0x158] sm:$0xff]  }
  0x23   : > { %v270_v30 = vrot.slane %v269_v23, 4  ;;  %v284_v36 = vrot.slane %v283_v26, 4  ;;  %v1080_v42 = vrot.slane %v1078_v33, 5  ;;  %v291_v3 = vshrl.u32 %v3392_v62, 16  ;;  %v2432_v23 = vld [vmem:[%s3274_s16 + $0x28] sm:$0xf] }
  0x24   : > { %2786 = vmatpush3.bf16.msra.mxu1 %v3106_v37  ;;  %v1063_v37 = vrot.slane %v1061_v27, 4  ;;  %v294_v4 = vshll.u32 %v3392_v62, 16  ;;  %v300_v5 = vshll.u32 %v3398_v0, 16  ;;  %v314_v8 = vshll.u32 %v3401_v2, 16  ;;  %v3422_v26 = vld [vmem:[%s3274_s16 + $0x34] sm:$0x1] }
  0x25   : > { %2882 = vmatpush3.bf16.msra.mxu0 %v3107_v47  ;;  %2795 = vmatprep.subr.bf16.mxu1 %v3108_v63  ;;  %v275_v40 = vsel %vm3319_vm2, %v270_v30, %v274_v24  ;;  %v289_v44 = vsel %vm3319_vm2, %v284_v36, %v288_v25  ;;  %v1086_v47 = vrot.slane %v1084_v35, 5  ;;  %v1081_v49 = vor.u32 %v1080_v42, %v1077_v41  ;;  %v3418_v24 = vld [vmem:[%s3274_s16 + $0x2c] sm:$0x1]  ;;  %v2434_v25 = vld [vmem:[%s3274_s16 + $0x30] sm:$0xf]  ;;  %v3116_v30 = vld [vmem:[%s3809_s1 + $0x20] sm:$0xff]  }
  0x26   : > { %2891 = vmatprep.subr.bf16.mxu0 %v3351_v1  ;;  %v1067_v45 = vor.u32 %v1066_v39, %v1063_v37  ;;  %v2329_v48 = vcombine.low %v275_v40, %v289_v44  ;;  %v293_v14 = vrot.slane %v291_v3, 4  ;;  %v296_v17 = vrot.slane %v294_v4, 5 }
  0x27   : > { %v1082_v52 = vrot.slane %v1081_v49, 4  ;;  %v302_v18 = vrot.slane %v300_v5, 5  ;;  %v316_v22 = vrot.slane %v314_v8, 5  ;;  %v1089_v27 = vshrl.u32 %v2432_v23, 16  ;;  %v2436_v5 = vld [vmem:[%s3274_s16 + $0x38] sm:$0xf] }
  0x28   : > { %v1068_v50 = vrot.slane %v1067_v45, 4  ;;  %2788 = vmatmul.mubr.bf16.vlgmr.msra.gmra.mrb[0].mxu1 %v2329_v48  ;;  %v1092_v28 = vshll.u32 %v2432_v23, 16  ;;  %v1098_v33 = vshll.u32 %v3418_v24, 16  ;;  %v1103_v35 = vshrl.u32 %v2434_v25, 16 }
  0x29   : > { %2796 = vmatpush3.bf16.msra.mxu1 %v3108_v63  ;;  %v1087_v58 = vsel %vm3319_vm2, %v1082_v52, %v1086_v47  ;;  %v3395_v63 = vld [vmem:[%s3274_s16 + $0x28] sm:$0xf]  ;;  %v1106_v36 = vshll.u32 %v2434_v25, 16  ;;  %v1091_v39 = vrot.slane %v1089_v27, 4  ;;  %v1112_v41 = vshll.u32 %v3422_v26, 16 }
  0x2a   : > { %v1073_v53 = vsel %vm3319_vm2, %v1068_v50, %v1072_v46  ;;  %2797 = vmatprep.subr.bf16.mxu1 %v3110_v43  ;;  %v305_v6 = vshrl.u32 %v3395_v63, 16  ;;  %v308_v7 = vshll.u32 %v3395_v63, 16  ;;  %v1094_v40 = vrot.slane %v1092_v28, 5  ;;  %v3433_v46 = vld [vmem:[%s3274_s16 + $0x30] sm:$0xf] }
  0x2b   : > { %v2457_v61 = vcombine.low %v1073_v53, %v1087_v58  ;;  %v1105_v44 = vrot.slane %v1103_v35, 4  ;;  %v1108_v45 = vrot.slane %v1106_v36, 5  ;;  %v1114_v49 = vrot.slane %v1112_v41, 5  ;;  %v3438_v50 = vld [vmem:[%s3274_s16 + $0x38] sm:$0xf] }
  0x2c   : > { %v307_v19 = vrot.slane %v305_v6, 4  ;;  %v310_v20 = vrot.slane %v308_v7, 5  ;;  %v1095_v48 = vor.u32 %v1094_v40, %v1091_v39  ;;  %v3441_v52 = vld [vmem:[%s3274_s16 + $0x34] sm:$0x1]  ;;  %v319_v53 = vshrl.u32 %v3433_v46, 16  ;;  %v3118_v6 = vld [vmem:[%s3809_s1 + $0x28] sm:$0xff]  }
  0x2d   : > { %2884 = vmatmul.mubr.bf16.vlgmr.msra.gmra.mrb[0].mxu0 %v2457_v61  ;;  %2798 = vmatpush3.bf16.msra.mxu1 %v3110_v43  ;;  %v1100_v43 = vrot.slane %v1098_v33, 5  ;;  %v3450_v61 = vld [vmem:[%s3274_s16 + $0x3c] sm:$0x1]  ;;  %v322_v3 = vshll.u32 %v3433_v46, 16  ;;  %v328_v4 = vshll.u32 %v3441_v52, 16  ;;  %v1117_v28 = vshrl.u32 %v2436_v5, 16 }
  0x2e   : > { %2892 = vmatpush3.bf16.msra.mxu0 %v3351_v1  ;;  %2799 = vmatprep.subr.bf16.mxu1 %v3112_v59  ;;  %v297_v1 = vor.u32 %v296_v17, %v293_v14  ;;  %v311_v32 = vor.u32 %v310_v20, %v307_v19  ;;  %v1096_v8 = vrot.slane %v1095_v48, 4  ;;  %v333_v14 = vshrl.u32 %v3438_v50, 16  ;;  %v3460_v17 = vld [vmem:[%s3274_s16 + $0x3c] sm:$0x1]  ;;  %v3468_v27 = vld [vmem:[%s3274_s16 + $0x44] sm:$0x1] }
  0x2f   : > { %2893 = vmatprep.subr.bf16.mxu0 %v3111_v54  ;;  %v324_v19 = vrot.slane %v322_v3, 5  ;;  %v330_v20 = vrot.slane %v328_v4, 5  ;;  %v342_v25 = vshll.u32 %v3450_v61, 16  ;;  %v1120_v36 = vshll.u32 %v2436_v5, 16 }
  0x30   : > { %v298_v37 = vrot.slane %v297_v1, 4  ;;  %v312_v42 = vrot.slane %v311_v32, 4  ;;  %v1101_v23 = vsel %vm3319_vm2, %v1096_v8, %v1100_v43  ;;  %v335_v1 = vrot.slane %v333_v14, 4 }
  0x31   : > { %2800 = vmatpush3.bf16.msra.mxu1 %v3112_v59  ;;  %v1109_v59 = vor.u32 %v1108_v45, %v1105_v44  ;;  %v344_v40 = vrot.slane %v342_v25, 5  ;;  %v1119_v41 = vrot.slane %v1117_v28, 4  ;;  %v1122_v45 = vrot.slane %v1120_v36, 5  ;;  %v2470_v25 = vld [vmem:[%s3274_s16 + $0x18] sm:$0xe] }
  0x32   : > { %2894 = vmatpush3.bf16.msra.mxu0 %v3111_v54  ;;  %2801 = vmatprep.subr.bf16.mxu1 %v3114_v10  ;;  %v303_v47 = vsel %vm3319_vm2, %v298_v37, %v302_v18  ;;  %v3117_v54 = vld [vmem:[%s3809_s1 + $0x160] sm:$0xff]   ;;  %v317_v58 = vsel %vm3319_vm2, %v312_v42, %v316_v22  ;;  %v336_v22 = vshll.u32 %v3438_v50, 16  ;;  %v3120_v37 = vld [vmem:[%s3809_s1 + $0x30] sm:$0xff]   ;;  %v1126_v42 = vshll.u32 %v3460_v17, 16  ;;  %v3123_v28 = vld [vmem:[%s3809_s1 + $0x178] sm:$0xff]  }
  0x33   : > { %2895 = vmatprep.subr.bf16.mxu0 %v3113_v9  ;;  %v2330_v7 = vcombine.low %v303_v47, %v317_v58  ;;  %v1110_v18 = vrot.slane %v1109_v59, 4  ;;  %v1328_v47 = vrot.slane %v3312_v34, 5  ;;  %v1332_v48 = vrot.slane %v3362_v16, 5  ;;  %v3121_v58 = vld [vmem:[%s3809_s1 + $0x170] sm:$0xff]  }
  0x34   : > { %v338_v35 = vrot.slane %v336_v22, 5  ;;  %v1123_v4 = vor.u32 %v1122_v45, %v1119_v41  ;;  %v1128_v34 = vrot.slane %v1126_v42, 5  ;;  %v1336_v22 = vrot.slane %v3368_v21, 5  ;;  %v3126_v41 = vld [vmem:[%s3809_s1 + $0x180] sm:$0xff]  }
  0x35   : > { %2802 = vmatpush3.bf16.msra.mxu1 %v3114_v10  ;;  %v321_v10 = vrot.slane %v319_v53, 4  ;;  %2791 = vmatprep.mubr.bf16.mxu1 %v2330_v7  ;;  %v1115_v32 = vsel %vm3319_vm2, %v1110_v18, %v1114_v49  ;;  %v1140_v53 = vshll.u32 %v3468_v27, 16  ;;  %v2468_v7 = vld [vmem:[%s3274_s16 + $0x8] sm:$0xe]  ;;  %v2478_v36 = vrot.slane %v2470_v25, 9 }
  0x36   : > { %2896 = vmatpush3.bf16.msra.mxu0 %v3113_v9  ;;  %2803 = vmatprep.subr.bf16.mxu1 %v3116_v30  ;;  %v2438_v9 = vld [vmem:[%s3274_s16 + $0x40] sm:$0xf]  ;;  %v2458_v39 = vcombine.low %v1101_v23, %v1115_v32  ;;  %v339_v44 = vor.u32 %v338_v35, %v335_v1  ;;  %v2476_v14 = vrot.slane %v2468_v7, 9  ;;  %v1124_v18 = vrot.slane %v1123_v4, 4 }
  0x37   : > { %2897 = vmatprep.subr.bf16.mxu0 %v3115_v29  ;;  %v325_v33 = vor.u32 %v324_v19, %v321_v10  ;;  %v1134_v49 = vshll.u32 %v2438_v9, 16  ;;  %v2469_v10 = vld [vmem:[%s3274_s16 + $0x10] sm:$0xe]  ;;  %v2340_v19 = vcombine.low %v3280_v11, %v3283_v12  ;;  %v1142_v1 = vrot.slane %v1140_v53, 5  ;;  %v2471_v12 = vld [vmem:[%s3274_s16 + $0x20] sm:$0xe] }
  0x38   : > { %2887 = vmatprep.mubr.bf16.mxu0 %v2458_v39  ;;  %v340_v3 = vrot.slane %v339_v44, 4  ;;  %v1325_v32 = vsel %vm3493_vm5, %v2476_v14, %v1324_v57  ;;  %v1129_v21 = vsel %vm3319_vm2, %v1124_v18, %v1128_v34  ;;  %v3125_v35 = vld [vmem:[%s3809_s1 + $0x80] sm:$0xff]   ;;  %v1333_v42 = vsel %vm3493_vm5, %v2478_v36, %v1332_v48  ;;  %v3130_v44 = vld [vmem:[%s3809_s1 + $0x90] sm:$0xff]  }
  0x39   : > { %2804 = vmatpush3.bf16.msra.mxu1 %v3116_v30  ;;  %v3119_v30 = vld [vmem:[%s3809_s1 + $0x168] sm:$0xff]   ;;  %v326_v43 = vrot.slane %v325_v33, 4  ;;  %v1136_v16 = vrot.slane %v1134_v49, 5  ;;  %v1340_v45 = vrot.slane %v3418_v24, 5  ;;  %v1348_v53 = vrot.slane %v3460_v17, 5  ;;  %v3134_v18 = vld [vmem:[%s3809_s1 + $0xa0] sm:$0xff]  }
  0x3a   : > { %2898 = vmatpush3.bf16.msra.mxu0 %v3115_v29  ;;  %2805 = vmatprep.subr.bf16.mxu1 %v3118_v6  ;;  %v1131_v29 = vshrl.u32 %v2438_v9, 16  ;;  %v1352_v24 = vrot.slane %v3468_v27, 5  ;;  %v662_v34 = vrot.slane %v3292_v15, 5  ;;  %v666_v17 = vrot.slane %v3337_v56, 5  ;;  %v630_v15 = vld [vmem:[%s3274_s16 + $0x8] sm:$0xe] }
  0x3b   : > { %2899 = vmatprep.subr.bf16.mxu0 %v3117_v54  ;;  %v331_v59 = vsel %vm3319_vm2, %v326_v43, %v330_v20  ;;  %v2477_v20 = vrot.slane %v2469_v10, 9  ;;  %v3128_v43 = vld [vmem:[%s3809_s1 + $0x88] sm:$0xff]   ;;  %v3131_v10 = vld [vmem:[%s3809_s1 + $0x190] sm:$0xff]   ;;  %v2353_v14 = vrot.slane %v630_v15, 9  ;;  %v674_v36 = vrot.slane %v3398_v0, 5  ;;  %v3144_v0 = vld [vmem:[%s3809_s1 + $0xc0] sm:$0xff]  }
  0x3c   : > { %v1133_v5 = vrot.slane %v1131_v29, 4  ;;  %v1344_v29 = vrot.slane %v3422_v26, 5  ;;  %v2343_v26 = vcombine.low %v3433_v46, %v3438_v50  ;;  %v3132_v46 = vld [vmem:[%s3809_s1 + $0x98] sm:$0xff]   ;;  %v3149_v15 = vld [vmem:[%s3809_s1 + $0x1c8] sm:$0xff]  }
  0x3d   : > { %2806 = vmatpush3.bf16.msra.mxu1 %v3118_v6  ;;  %v3122_v6 = vld [vmem:[%s3809_s1 + $0x38] sm:$0xff]   ;;  %v1329_v11 = vsel %vm3493_vm5, %v2477_v20, %v1328_v47 }
  0x3e   : > { %2900 = vmatpush3.bf16.msra.mxu0 %v3117_v54  ;;  %2807 = vmatprep.subr.bf16.mxu1 %v3120_v37  ;;  %v345_v54 = vsel %vm3319_vm2, %v340_v3, %v344_v40  ;;  %v1137_v23 = vor.u32 %v1136_v16, %v1133_v5  ;;  %v2500_v57 = vcombine.low %v1325_v32, %v1329_v11  ;;  %v629_v16 = vld [vmem:[%s3274_s16] sm:$0xe]  ;;  %v3133_v20 = vld [vmem:[%s3809_s1 + $0x198] sm:$0xff]  }
  0x3f   : > { %2901 = vmatprep.subr.bf16.mxu0 %v3119_v30  ;;  %v2331_v9 = vcombine.low %v331_v59, %v345_v54  ;;  %v2341_v40 = vcombine.low %v3329_v51, %v3334_v55  ;;  %v2342_v51 = vcombine.low %v3392_v62, %v3395_v63  ;;  %v658_v55 = vrot.slane %v3286_v13, 5  ;;  %v3129_v62 = vld [vmem:[%s3809_s1 + $0x188] sm:$0xff]   ;;  %v2473_v63 = vld [vmem:[%s3274_s16 + $0x30] sm:$0xe]  ;;  %v2475_v59 = vld [vmem:[%s3274_s16 + $0x40] sm:$0xe] }
  0x40   : > { %v1138_v33 = vrot.slane %v1137_v23, 4  ;;  %v2472_v13 = vld [vmem:[%s3274_s16 + $0x28] sm:$0xe]  ;;  %v2481_v49 = vrot.slane %v2473_v63, 9  ;;  %v2483_v7 = vrot.slane %v2475_v59, 9  ;;  %v2352_v56 = vrot.slane %v629_v16, 9 }
  0x41   : > { %2808 = vmatpush3.bf16.msra.mxu1 %v3120_v37  ;;  %v2479_v37 = vrot.slane %v2471_v12, 9  ;;  %v2480_v48 = vrot.slane %v2472_v13, 9  ;;  %v670_v54 = vrot.slane %v3342_v60, 5  ;;  %v631_v23 = vld [vmem:[%s3274_s16 + $0x10] sm:$0xe] }
  0x42   : > { %2902 = vmatpush3.bf16.msra.mxu0 %v3119_v30  ;;  %2792 = vmatmul.mubr.bf16.gmra.mrb[4].mxu1 %v2331_v9  ;;  %v1143_v31 = vsel %vm3319_vm2, %v1138_v33, %v1142_v1  ;;  %v1345_v4 = vsel %vm3493_vm5, %v2481_v49, %v1344_v29  ;;  %v663_v9 = vsel %vm3493_vm5, %v2353_v14, %v662_v34  ;;  %v632_v60 = vld [vmem:[%s3274_s16 + $0x18] sm:$0xe]  ;;  %v2354_v25 = vrot.slane %v631_v23, 9  ;;  %v3136_v33 = vld [vmem:[%s3809_s1 + $0xa8] sm:$0xff]  }
  0x43   : > { %2903 = vmatprep.subr.bf16.mxu0 %v3121_v58  ;;  %2809 = vmatprep.subr.bf16.mxu1 %v3122_v6  ;;  %v2459_v39 = vcombine.low %v1129_v21, %v1143_v31  ;;  %v1337_v30 = vsel %vm3493_vm5, %v2479_v37, %v1336_v22  ;;  %v1341_v3 = vsel %vm3493_vm5, %v2480_v48, %v1340_v45  ;;  %v3145_v32 = vld [vmem:[%s3274_s16 + $0x10] ss:$8 sps:$4 sm:$0xff]   ;;  %v682_v29 = vrot.slane %v3441_v52, 5  ;;  %v3148_v49 = vld [vmem:[%s3809_s1 + $0xc8] sm:$0xff]  }
  0x44   : > { %2811 = vmatprep.mubr.bf16.mxu1 %v2340_v19  ;;  %v2501_v47 = vcombine.low %v1333_v42, %v1337_v30  ;;  %v2502_v27 = vcombine.low %v1341_v3, %v1345_v4  ;;  %v659_v19 = vsel %vm3493_vm5, %v2352_v56, %v658_v55  ;;  %v667_v11 = vsel %vm3493_vm5, %v2354_v25, %v666_v17  ;;  %v3139_v31 = vld [vmem:[%s3809_s1 + $0xb0] sm:$0xff]   ;;  %v3142_v37 = vld [vmem:[%s3809_s1 + $0xb8] sm:$0xff]   ;;  %v2554_v25 = vld [vmem:[%s3274_s16 + $0x28] sm:$0xf] }
  0x45   : > { %2810 = vmatpush3.bf16.msra.mxu1 %v3122_v6  ;;  %2888 = vmatmul.mubr.bf16.gmra.mrb[4].mxu0 %v2459_v39  ;;  %v1353_v6 = vsel %vm3493_vm5, %v2483_v7, %v1352_v24  ;;  %v2376_v1 = vcombine.low %v659_v19, %v663_v9  ;;  %v633_v39 = vld [vmem:[%s3274_s16 + $0x20] sm:$0xe]  ;;  %v3143_v45 = vld [vmem:[%s3809_s1 + $0x1b8] sm:$0xff]   ;;  %v3632_v24 = vld [vmem:[%s3274_s16 + $0x14] sm:$0x1] }
  0x46   : > { %2904 = vmatpush3.bf16.msra.mxu0 %v3121_v58  ;;  %2819 = vmatprep.subr.bf16.mxu1 %v3125_v35  ;;  %v2474_v58 = vld [vmem:[%s3274_s16 + $0x38] sm:$0xe]  ;;  %v2356_v42 = vrot.slane %v633_v39, 9  ;;  %v1708_v59 = vshll.u32 %v3632_v24, 16  ;;  %v3147_v7 = vld [vmem:[%s3274_s16 + $0x20] ss:$8 sps:$4 sm:$0xff]  }
  0x47   : > { %2905 = vmatprep.subr.bf16.mxu0 %v3123_v28  ;;  %2907 = vmatprep.mubr.bf16.mxu0 %v2500_v57  ;;  %v2482_v5 = vrot.slane %v2474_v58, 9  ;;  %v3137_v57 = vld [vmem:[%s3809_s1 + $0x1a8] sm:$0xff]   ;;  %v2550_v52 = vld [vmem:[%s3274_s16 + $0x18] sm:$0xf]  ;;  %v3151_v9 = vld [vmem:[%s3809_s1 + $0x1d0] sm:$0xff]  }
  0x48   : > { %v1713_v3 = vshrl.u32 %v2550_v52, 16  ;;  %v1716_v4 = vshll.u32 %v2550_v52, 16  ;;  %v3158_v56 = vld [vmem:[%s3274_s16 + $0x30] ss:$8 sps:$4 sm:$0xff]   ;;  %v3157_v52 = vld [vmem:[%s3809_s1 + $0x1e8] sm:$0xff]  }
  0x49   : > { %v1349_v50 = vsel %vm3493_vm5, %v2482_v5, %v1348_v53  ;;  %v2548_v53 = vld [vmem:[%s3274_s16 + $0x10] sm:$0xf]  ;;  %v3152_v23 = vld [vmem:[%s3809_s1 + $0xd8] sm:$0xff]  }
  0x4a   : > { %2906 = vmatpush3.bf16.msra.mxu0 %v3123_v28  ;;  %2812 = vmatmul.mubr.bf16.vlgmr.msra.gmra.mrb[0].mxu1 %v2341_v40  ;;  %v2503_v22 = vcombine.low %v1349_v50, %v1353_v6  ;;  %v2355_v28 = vrot.slane %v632_v60, 9  ;;  %v634_v40 = vld [vmem:[%s3274_s16 + $0x28] sm:$0xe]  ;;  %v1702_v58 = vshll.u32 %v2548_v53, 16  ;;  %v1715_v50 = vrot.slane %v1713_v3, 4 }
  0x4b   : > { %2915 = vmatprep.subr.bf16.mxu0 %v3126_v41  ;;  %2820 = vmatpush3.bf16.msra.mxu1 %v3125_v35  ;;  %v3135_v35 = vld [vmem:[%s3809_s1 + $0x1a0] sm:$0xff]   ;;  %v2357_v30 = vrot.slane %v634_v40, 9  ;;  %v1718_v6 = vrot.slane %v1716_v4, 5 }
  0x4c   : > { %2821 = vmatprep.subr.bf16.mxu1 %v3128_v43  ;;  %2815 = vmatprep.mubr.bf16.mxu1 %v2342_v51  ;;  %v671_v12 = vsel %vm3493_vm5, %v2355_v28, %v670_v54  ;;  %v635_v51 = vld [vmem:[%s3274_s16 + $0x30] sm:$0xe]  ;;  %v1704_v16 = vrot.slane %v1702_v58, 5  ;;  %v1710_v54 = vrot.slane %v1708_v59, 5 }
  0x4d   : > { %2908 = vmatmul.mubr.bf16.vlgmr.msra.gmra.mrb[0].mxu0 %v2501_v47  ;;  %v2377_v21 = vcombine.low %v667_v11, %v671_v12  ;;  %v686_v47 = vrot.slane %v3450_v61, 5  ;;  %v2358_v63 = vrot.slane %v635_v51, 9  ;;  %v3636_v61 = vld [vmem:[%s3274_s16 + $0x1c] sm:$0x1]  ;;  %v3160_v11 = vld [vmem:[%s3274_s16 + $0x40] ss:$8 sps:$4 sm:$0xff]  }
  0x4e   : > { %2916 = vmatpush3.bf16.msra.mxu0 %v3126_v41  ;;  %2911 = vmatprep.mubr.bf16.mxu0 %v2502_v27  ;;  %v678_v41 = vrot.slane %v3401_v2, 5  ;;  %v675_v2 = vsel %vm3493_vm5, %v2356_v42, %v674_v36  ;;  %v1722_v5 = vshll.u32 %v3636_v61, 16  ;;  %v2556_v12 = vld [vmem:[%s3274_s16 + $0x30] sm:$0xf]  ;;  %v1744_v36 = vshll.u32 %v2554_v25, 16 }
  0x4f   : > { %2822 = vmatpush3.bf16.msra.mxu1 %v3128_v43  ;;  %2917 = vmatprep.subr.bf16.mxu0 %v3129_v62  ;;  %v3140_v43 = vld [vmem:[%s3809_s1 + $0x1b0] sm:$0xff]   ;;  %v683_v34 = vsel %vm3493_vm5, %v2358_v63, %v682_v29  ;;  %v1755_v40 = vshrl.u32 %v2556_v12, 16  ;;  %v3681_v51 = vld [vmem:[%s3274_s16 + $0x24] sm:$0x1] }
  0x50   : > { %2823 = vmatprep.subr.bf16.mxu1 %v3130_v44  ;;  %v679_v55 = vsel %vm3493_vm5, %v2357_v30, %v678_v41  ;;  %v1724_v19 = vrot.slane %v1722_v5, 5  ;;  %v1758_v41 = vshll.u32 %v2556_v12, 16  ;;  %v1746_v29 = vrot.slane %v1744_v36, 5  ;;  %v2562_v5 = vld [vmem:[%s3274_s16 + $0x48] sm:$0xf]  ;;  %v3163_v12 = vld [vmem:[%s3809_s1 + $0x1f8] sm:$0xff]  }
  0x51   : > { %v2378_v13 = vcombine.low %v675_v2, %v679_v55  ;;  %v3684_v2 = vld [vmem:[%s3274_s16 + $0x2c] sm:$0x1]  ;;  %v1736_v58 = vshll.u32 %v3681_v51, 16 }
  0x52   : > { %2816 = vmatmul.mubr.bf16.gmra.mrb[4].mxu1 %v2343_v26  ;;  %2918 = vmatpush3.bf16.msra.mxu0 %v3129_v62  ;;  %v3146_v62 = vld [vmem:[%s3809_s1 + $0x1c0] sm:$0xff]   ;;  %v1699_v26 = vshrl.u32 %v2548_v53, 16  ;;  %v1760_v63 = vrot.slane %v1758_v41, 5  ;;  %v1750_v59 = vshll.u32 %v3684_v2, 16 }
  0x53   : > { %2824 = vmatpush3.bf16.msra.mxu1 %v3130_v44  ;;  %2919 = vmatprep.subr.bf16.mxu0 %v3131_v10  ;;  %v636_v44 = vld [vmem:[%s3274_s16 + $0x38] sm:$0xe]  ;;  %v2560_v53 = vld [vmem:[%s3274_s16 + $0x40] sm:$0xf] }
  0x54   : > { %2825 = vmatprep.subr.bf16.mxu1 %v3132_v46  ;;  %2835 = vmatprep.mubr.bf16.mxu1 %v2376_v1  ;;  %v2359_v48 = vrot.slane %v636_v44, 9  ;;  %v1701_v27 = vrot.slane %v1699_v26, 4  ;;  %v2552_v1 = vld [vmem:[%s3274_s16 + $0x20] sm:$0xf]  ;;  %v3159_v26 = vld [vmem:[%s3809_s1 + $0xf0] sm:$0xff]  }
  0x55   : > { %2912 = vmatmul.mubr.bf16.gmra.mrb[4].mxu0 %v2503_v22 }
  0x56   : > { %2920 = vmatpush3.bf16.msra.mxu0 %v3131_v10  ;;  %2931 = vmatprep.mubr.bf16.mxu0 %v3145_v32  ;;  %v687_v17 = vsel %vm3493_vm5, %v2359_v48, %v686_v47  ;;  %v1705_v10 = vor.u32 %v1704_v16, %v1701_v27  ;;  %v3687_v47 = vld [vmem:[%s3274_s16 + $0x34] sm:$0x1]  ;;  %v1786_v27 = vshll.u32 %v2560_v53, 16 }
  0x57   : > { %2826 = vmatpush3.bf16.msra.mxu1 %v3132_v46  ;;  %2921 = vmatprep.subr.bf16.mxu0 %v3133_v20  ;;  %v3150_v46 = vld [vmem:[%s3809_s1 + $0xd0] sm:$0xff]   ;;  %v2379_v14 = vcombine.low %v683_v34, %v687_v17  ;;  %v1764_v3 = vshll.u32 %v3687_v47, 16  ;;  %v1783_v17 = vshrl.u32 %v2560_v53, 16  ;;  %v2593_v53 = vld [vmem:[%s3274_s16 + $0x18] sm:$0xe] }
  0x58   : > { %2827 = vmatprep.subr.bf16.mxu1 %v3134_v18  ;;  %v1706_v22 = vrot.slane %v1705_v10, 4 }
  0x5a   : > { %2922 = vmatpush3.bf16.msra.mxu0 %v3133_v20  ;;  %v3164_v20 = vld [vmem:[%s3274_s16 + $0x8] ss:$8 sps:$4 sm:$0xff]   ;;  %v1711_v28 = vsel %vm3319_vm2, %v1706_v22, %v1710_v54 }
  0x5b   : > { %2828 = vmatpush3.bf16.msra.mxu1 %v3134_v18  ;;  %2923 = vmatprep.subr.bf16.mxu0 %v3135_v35  ;;  %v1719_v18 = vor.u32 %v1718_v6, %v1715_v50  ;;  %v1797_v50 = vshrl.u32 %v2562_v5, 16  ;;  %v1800_v6 = vshll.u32 %v2562_v5, 16  ;;  %v2601_v5 = vrot.slane %v2593_v53, 9 }
  0x5c   : > { %2829 = vmatprep.subr.bf16.mxu1 %v3136_v33 }
  0x5d   : > { %v1720_v60 = vrot.slane %v1719_v18, 4  ;;  %v1752_v18 = vrot.slane %v1750_v59, 5  ;;  %v3169_v59 = vld [vmem:[%s3274_s16 + $0x38] ss:$8 sps:$4 sm:$0xff]  }
  0x5e   : > { %2924 = vmatpush3.bf16.msra.mxu0 %v3135_v35  ;;  %v1727_v35 = vshrl.u32 %v2552_v1, 16 }
  0x5f   : > { %2830 = vmatpush3.bf16.msra.mxu1 %v3136_v33  ;;  %2925 = vmatprep.subr.bf16.mxu0 %v3137_v57  ;;  %v1725_v32 = vsel %vm3319_vm2, %v1720_v60, %v1724_v19  ;;  %v3154_v33 = vld [vmem:[%s3809_s1 + $0xe0] sm:$0xff]   ;;  %v3714_v60 = vld [vmem:[%s3274_s16 + $0x4c] sm:$0x1] }
  0x60   : > { %2831 = vmatprep.subr.bf16.mxu1 %v3139_v31  ;;  %v2580_v39 = vcombine.low %v1711_v28, %v1725_v32  ;;  %v1729_v55 = vrot.slane %v1727_v35, 4  ;;  %v1799_v28 = vrot.slane %v1797_v50, 4  ;;  %v1802_v32 = vrot.slane %v1800_v6, 5  ;;  %v3165_v35 = vld [vmem:[%s3274_s16 + $0x18] ss:$8 sps:$4 sm:$0xff]   ;;  %v3173_v6 = vld [vmem:[%s3809_s1 + $0x228] sm:$0xff]  }
  0x62   : > { %2926 = vmatpush3.bf16.msra.mxu0 %v3137_v57  ;;  %v1741_v57 = vshrl.u32 %v2554_v25, 16  ;;  %v1788_v25 = vrot.slane %v1786_v27, 5 }
  0x63   : > { %2832 = vmatpush3.bf16.msra.mxu1 %v3139_v31  ;;  %2927 = vmatprep.subr.bf16.mxu0 %v3140_v43  ;;  %v1730_v31 = vshll.u32 %v2552_v1, 16  ;;  %v1785_v1 = vrot.slane %v1783_v17, 4 }
  0x64   : > { %2833 = vmatprep.subr.bf16.mxu1 %v3142_v37 }
  0x65   : > { %v1732_v44 = vrot.slane %v1730_v31, 5 }
  0x66   : > { %2928 = vmatpush3.bf16.msra.mxu0 %v3140_v43  ;;  %v3155_v43 = vld [vmem:[%s3809_s1 + $0x1e0] sm:$0xff]  }
  0x67   : > { %2834 = vmatpush3.bf16.msra.mxu1 %v3142_v37  ;;  %2929 = vmatprep.subr.bf16.mxu0 %v3143_v45  ;;  %v3153_v37 = vld [vmem:[%s3809_s1 + $0x1d8] sm:$0xff]  }
  0x68   : > { %2843 = vmatprep.subr.bf16.mxu1 %v3144_v0 }
  0x6a   : > { %2836 = vmatmul.mubr.bf16.vlgmr.msra.gmra.mrb[0].mxu1 %v2377_v21  ;;  %2930 = vmatpush3.bf16.msra.mxu0 %v3143_v45  ;;  %v2558_v21 = vld [vmem:[%s3274_s16 + $0x38] sm:$0xf]  ;;  %v1743_v45 = vrot.slane %v1741_v57, 4 }
  0x6b   : > { %2844 = vmatpush3.bf16.msra.mxu1 %v3144_v0  ;;  %2839 = vmatprep.mubr.bf16.mxu1 %v2378_v13  ;;  %v1769_v42 = vshrl.u32 %v2558_v21, 16  ;;  %v1772_v30 = vshll.u32 %v2558_v21, 16  ;;  %v3156_v0 = vld [vmem:[%s3809_s1 + $0xe8] sm:$0xff]   ;;  %v1757_v13 = vrot.slane %v1755_v40, 4  ;;  %v2596_v21 = vld [vmem:[%s3274_s16 + $0x30] sm:$0xe] }
  0x6c   : > { %2845 = vmatprep.subr.bf16.mxu1 %v3148_v49  ;;  %2939 = vmatprep.subr.bf16.mxu0 %v3146_v62  ;;  %v1747_v34 = vor.u32 %v1746_v29, %v1743_v45 }
  0x6d   : > { %2932 = vmatmul.mubr.bf16.vlgmr.msra.gmra.mrb[0].mxu0 %v3147_v7  ;;  %v1771_v48 = vrot.slane %v1769_v42, 4  ;;  %v1733_v7 = vor.u32 %v1732_v44, %v1729_v55  ;;  %v1761_v16 = vor.u32 %v1760_v63, %v1757_v13  ;;  %v1789_v42 = vor.u32 %v1788_v25, %v1785_v1 }
  0x6e   : > { %2940 = vmatpush3.bf16.msra.mxu0 %v3146_v62  ;;  %2935 = vmatprep.mubr.bf16.mxu0 %v3158_v56  ;;  %v3690_v62 = vld [vmem:[%s3274_s16 + $0x3c] sm:$0x1]  ;;  %v3161_v56 = vld [vmem:[%s3809_s1 + $0x1f0] sm:$0xff]   ;;  %v1748_v54 = vrot.slane %v1747_v34, 4  ;;  %v2006_v55 = vrot.slane %v3687_v47, 5  ;;  %v1998_v25 = vrot.slane %v3681_v51, 5 }
  0x6f   : > { %2846 = vmatpush3.bf16.msra.mxu1 %v3148_v49  ;;  %2941 = vmatprep.subr.bf16.mxu0 %v3149_v15  ;;  %v1774_v49 = vrot.slane %v1772_v30, 5  ;;  %v1778_v4 = vshll.u32 %v3690_v62, 16  ;;  %v1734_v10 = vrot.slane %v1733_v7, 4  ;;  %v1762_v19 = vrot.slane %v1761_v16, 4  ;;  %v3171_v16 = vld [vmem:[%s3809_s1 + $0x218] sm:$0xff]  }
  0x70   : > { %2847 = vmatprep.subr.bf16.mxu1 %v3150_v46  ;;  %v1753_v57 = vsel %vm3319_vm2, %v1748_v54, %v1752_v18  ;;  %v1803_v30 = vor.u32 %v1802_v32, %v1799_v28  ;;  %v2010_v45 = vrot.slane %v3690_v62, 5  ;;  %v1994_v7 = vrot.slane %v3636_v61, 5 }
  0x71   : > { %v2018_v54 = vrot.slane %v3714_v60, 5  ;;  %v2002_v32 = vrot.slane %v3684_v2, 5 }
  0x72   : > { %2840 = vmatmul.mubr.bf16.gmra.mrb[4].mxu1 %v2379_v14  ;;  %2942 = vmatpush3.bf16.msra.mxu0 %v3149_v15  ;;  %v3162_v15 = vld [vmem:[%s3809_s1 + $0xf8] sm:$0xff]   ;;  %v1738_v14 = vrot.slane %v1736_v58, 5  ;;  %v3170_v58 = vld [vmem:[%s3809_s1 + $0x210] sm:$0xff]   ;;  %v1995_v61 = vsel %vm3493_vm5, %v2601_v5, %v1994_v7 }
  0x73   : > { %2848 = vmatpush3.bf16.msra.mxu1 %v3150_v46  ;;  %2859 = vmatprep.mubr.bf16.mxu1 %v3164_v20  ;;  %v1775_v46 = vor.u32 %v1774_v49, %v1771_v48  ;;  %v1766_v20 = vrot.slane %v1764_v3, 5  ;;  %v2592_v49 = vld [vmem:[%s3274_s16 + $0x10] sm:$0xe] }
  0x74   : > { %2849 = vmatprep.subr.bf16.mxu1 %v3152_v23  ;;  %2943 = vmatprep.subr.bf16.mxu0 %v3151_v9  ;;  %v1739_v31 = vsel %vm3319_vm2, %v1734_v10, %v1738_v14  ;;  %v2600_v3 = vrot.slane %v2592_v49, 9  ;;  %v2599_v10 = vld [vmem:[%s3274_s16 + $0x48] sm:$0xe] }
  0x75   : > { %2936 = vmatmul.mubr.bf16.gmra.mrb[4].mxu0 %v3160_v11  ;;  %v1776_v22 = vrot.slane %v1775_v46, 4  ;;  %v3166_v11 = vld [vmem:[%s3809_s1 + $0x200] sm:$0xff]   ;;  %v1767_v40 = vsel %vm3319_vm2, %v1762_v19, %v1766_v20  ;;  %v2581_v29 = vcombine.low %v1739_v31, %v1753_v57  ;;  %v2607_v19 = vrot.slane %v2599_v10, 9  ;;  %v3175_v20 = vld [vmem:[%s3809_s1 + $0x238] sm:$0xff]  }
  0x76   : > { %2944 = vmatpush3.bf16.msra.mxu0 %v3151_v9  ;;  %2955 = vmatprep.mubr.bf16.mxu0 %v2580_v39  ;;  %v1780_v9 = vrot.slane %v1778_v4, 5  ;;  %v3168_v39 = vld [vmem:[%s3274_s16 + $0x28] ss:$8 sps:$4 sm:$0xff]   ;;  %v1990_v4 = vrot.slane %v3632_v24, 5 }
  0x77   : > { %2850 = vmatpush3.bf16.msra.mxu1 %v3152_v23  ;;  %2945 = vmatprep.subr.bf16.mxu0 %v3153_v37  ;;  %v3711_v23 = vld [vmem:[%s3274_s16 + $0x44] sm:$0x1] }
  0x78   : > { %2851 = vmatprep.subr.bf16.mxu1 %v3154_v33  ;;  %v1792_v36 = vshll.u32 %v3711_v23, 16  ;;  %v1781_v41 = vsel %vm3319_vm2, %v1776_v22, %v1780_v9  ;;  %v1991_v24 = vsel %vm3493_vm5, %v2600_v3, %v1990_v4  ;;  %v2014_v14 = vrot.slane %v3711_v23, 5  ;;  %v2594_v22 = vld [vmem:[%s3274_s16 + $0x20] sm:$0xe]  ;;  %v2595_v9 = vld [vmem:[%s3274_s16 + $0x28] sm:$0xe] }
  0x79   : > { %v2582_v13 = vcombine.low %v1767_v40, %v1781_v41  ;;  %v2624_v50 = vcombine.low %v1991_v24, %v1995_v61  ;;  %v2019_v23 = vsel %vm3493_vm5, %v2607_v19, %v2018_v54  ;;  %v2603_v28 = vrot.slane %v2595_v9, 9 }
  0x7a   : > { %2946 = vmatpush3.bf16.msra.mxu0 %v3153_v37  ;;  %v1806_v37 = vshll.u32 %v3714_v60, 16  ;;  %v1794_v63 = vrot.slane %v1792_v36, 5  ;;  %v2602_v60 = vrot.slane %v2594_v22, 9 }
  0x7b   : > { %2852 = vmatpush3.bf16.msra.mxu1 %v3154_v33  ;;  %2947 = vmatprep.subr.bf16.mxu0 %v3155_v43  ;;  %v2597_v33 = vld [vmem:[%s3274_s16 + $0x38] sm:$0xe] }
  0x7c   : > { %2853 = vmatprep.subr.bf16.mxu1 %v3156_v0  ;;  %v2605_v44 = vrot.slane %v2597_v33, 9  ;;  %v1808_v48 = vrot.slane %v1806_v37, 5 }
  0x7e   : > { %2948 = vmatpush3.bf16.msra.mxu0 %v3155_v43  ;;  %v3167_v43 = vld [vmem:[%s3809_s1 + $0x208] sm:$0xff]   ;;  %v2011_v62 = vsel %vm3493_vm5, %v2605_v44, %v2010_v45  ;;  %v2636_v44 = vld [vmem:[%s3810_s2] ss:$0 sm:$0xff] }
  0x7f   : > { %2854 = vmatpush3.bf16.msra.mxu1 %v3156_v0  ;;  %2949 = vmatprep.subr.bf16.mxu0 %v3157_v52  ;;  %v2604_v0 = vrot.slane %v2596_v21, 9  ;;  %v2003_v21 = vsel %vm3493_vm5, %v2603_v28, %v2002_v32 }
  0x80   : > { %2855 = vmatprep.subr.bf16.mxu1 %v3159_v26 }
  0x81   : > { %v2007_v47 = vsel %vm3493_vm5, %v2604_v0, %v2006_v55 }
  0x82   : > { %2950 = vmatpush3.bf16.msra.mxu0 %v3157_v52  ;;  %v1790_v52 = vrot.slane %v1789_v42, 4  ;;  %v2626_v34 = vcombine.low %v2007_v47, %v2011_v62 }
  0x83   : > { %2856 = vmatpush3.bf16.msra.mxu1 %v3159_v26  ;;  %2951 = vmatprep.subr.bf16.mxu0 %v3161_v56  ;;  %v1804_v26 = vrot.slane %v1803_v30, 4 }
  0x84   : > { %2857 = vmatprep.subr.bf16.mxu1 %v3162_v15  ;;  %v1795_v17 = vsel %vm3319_vm2, %v1790_v52, %v1794_v63 }
  0x85   : > { %v1809_v27 = vsel %vm3319_vm2, %v1804_v26, %v1808_v48 }
  0x86   : > { %2952 = vmatpush3.bf16.msra.mxu0 %v3161_v56  ;;  %v2583_v46 = vcombine.low %v1795_v17, %v1809_v27  ;;  %v2598_v56 = vld [vmem:[%s3274_s16 + $0x40] sm:$0xe] }
  0x87   : > { %2858 = vmatpush3.bf16.msra.mxu1 %v3162_v15  ;;  %2953 = vmatprep.subr.bf16.mxu0 %v3163_v12  ;;  %v3174_v15 = vld [vmem:[%s3809_s1 + $0x230] sm:$0xff]   ;;  %v2606_v18 = vrot.slane %v2598_v56, 9 }
  0x88   : > { %2987 = vmatprep.subr.bf16.mxu1 %v3166_v11 }
  0x89   : > { %v2015_v1 = vsel %vm3493_vm5, %v2606_v18, %v2014_v14 }
  0x8a   : > { %2860 = vmatmul.mubr.bf16.vlgmr.msra.gmra.mrb[0].mxu1 %v3165_v35  ;;  %2954 = vmatpush3.bf16.msra.mxu0 %v3163_v12  ;;  %v1999_v12 = vsel %vm3493_vm5, %v2602_v60, %v1998_v25 }
  0x8b   : > { %2995 = vmatpush3.bf16.msra.mxu1 %v3166_v11  ;;  %2863 = vmatprep.mubr.bf16.mxu1 %v3168_v39  ;;  %v2625_v33 = vcombine.low %v1999_v12, %v2003_v21 }
  0x8c   : > { %2988 = vmatprep.subr.bf16.mxu1 %v3167_v43  ;;  %2963 = vmatprep.subr.bf16.mxu0 %v3166_v11 }
  0x8d   : > { %2956 = vmatmul.mubr.bf16.vlgmr.msra.gmra.mrb[0].mxu0 %v2581_v29 }
  0x8e   : > { %2964 = vmatpush3.bf16.msra.mxu0 %v3166_v11  ;;  %2959 = vmatprep.mubr.bf16.mxu0 %v2582_v13  ;;  %v2627_v11 = vcombine.low %v2015_v1, %v2019_v23 }
  0x8f   : > { %2996 = vmatpush3.bf16.msra.mxu1 %v3167_v43  ;;  %2965 = vmatprep.subr.bf16.mxu0 %v3167_v43 }
  0x90   : > { %2989 = vmatprep.subr.bf16.mxu1 %v3170_v58 }
  0x92   : > { %2864 = vmatmul.mubr.bf16.gmra.mrb[4].mxu1 %v3169_v59  ;;  %2966 = vmatpush3.bf16.msra.mxu0 %v3167_v43 }
  0x93   : > { %2997 = vmatpush3.bf16.msra.mxu1 %v3170_v58  ;;  %2983 = vmatprep.mubr.bf16.mxu1 %v2626_v34 }
  0x94   : > { %2990 = vmatprep.subr.bf16.mxu1 %v3171_v16  ;;  %2967 = vmatprep.subr.bf16.mxu0 %v3170_v58 }
  0x95   : > { %2960 = vmatmul.mubr.bf16.gmra.mrb[4].mxu0 %v2583_v46 }
  0x96   : > { %2968 = vmatpush3.bf16.msra.mxu0 %v3170_v58  ;;  %2979 = vmatprep.mubr.bf16.mxu0 %v2624_v50 }
  0x97   : > { %2998 = vmatpush3.bf16.msra.mxu1 %v3171_v16  ;;  %2969 = vmatprep.subr.bf16.mxu0 %v3171_v16 }
  0x98   : > { %2991 = vmatprep.subr.bf16.mxu1 %v3172_v38 }
  0x9a   : > { %2970 = vmatpush3.bf16.msra.mxu0 %v3171_v16 }
  0x9b   : > { %2999 = vmatpush3.bf16.msra.mxu1 %v3172_v38  ;;  %2971 = vmatprep.subr.bf16.mxu0 %v3172_v38 }
  0x9c   : > { %2992 = vmatprep.subr.bf16.mxu1 %v3173_v6 }
  0x9e   : > { %2972 = vmatpush3.bf16.msra.mxu0 %v3172_v38 }
  0x9f   : > { %3000 = vmatpush3.bf16.msra.mxu1 %v3173_v6  ;;  %2973 = vmatprep.subr.bf16.mxu0 %v3173_v6 }
  0xa0   : > { %2993 = vmatprep.subr.bf16.mxu1 %v3174_v15 }
  0xa2   : > { %2974 = vmatpush3.bf16.msra.mxu0 %v3173_v6 }
  0xa3   : > { %3001 = vmatpush3.bf16.msra.mxu1 %v3174_v15  ;;  %2975 = vmatprep.subr.bf16.mxu0 %v3174_v15 }
  0xa4   : > { %2994 = vmatprep.subr.bf16.mxu1 %v3175_v20 }
  0xa6   : > { %2976 = vmatpush3.bf16.msra.mxu0 %v3174_v15 }
  0xa7   : > { %3002 = vmatpush3.bf16.msra.mxu1 %v3175_v20  ;;  %2977 = vmatprep.subr.bf16.mxu0 %v3175_v20 }
  0xaa   : > { %2984 = vmatmul.mubr.bf16.vlgmr.msra.gmra.mrb[8].mxu1 %v2627_v11  ;;  %2978 = vmatpush3.bf16.msra.mxu0 %v3175_v20 }
  0xad   : > { %2980 = vmatmul.mubr.bf16.vlgmr.msra.gmra.mrb[0].mxu0 %v2625_v33 }
 0x15d   : > { %v2861_v35 = vpop.f32.mrb[0].mxu1 }
 0x15e   : > { %v977_v51 = vpop.f32.mrb[1].mxu1 }
 0x15f   : > { %v2862_v31 = vpop.f32.mrb[2].mxu1 }
 0x160   : > { %v980_v57 = vpop.f32.mrb[3].mxu1 }
 0x165   : > { %v2865_v2 = vpop.f32.mrb[4].mxu1 }
 0x166   : > { %v993_v36 = vpop.f32.mrb[5].mxu1 }
 0x167   : > { %v2866_v37 = vpop.f32.mrb[6].mxu1 }
 0x168   : > { %v996_v39 = vpop.f32.mrb[7].mxu1  ;;  %v2961_v40 = vpop.f32.mrb[4].mxu0 }
 0x169   : > { %v3007_v41 = vadd.f32 %v2961_v40, %v2865_v2  ;;  %v1941_v42 = vpop.f32.mrb[5].mxu0 }
 0x16a   : > { %v3009_v30 = vadd.f32 %v1941_v42, %v993_v36  ;;  %v2962_v43 = vpop.f32.mrb[6].mxu0 }
 0x16b   : > { %v3011_v8 = vadd.f32 %v2962_v43, %v2866_v37  ;;  %v1944_v0 = vpop.f32.mrb[7].mxu0 }
 0x16c   : > { %v3013_v55 = vadd.f32 %v1944_v0, %v996_v39 }
 0x17d   : > { %v2985_v45 = vpop.f32.mrb[8].mxu1 }
 0x17e   : > { %v3008_v29 = vadd.f32 %v3007_v41, %v2985_v45  ;;  %v2151_v13 = vpop.f32.mrb[9].mxu1 }
 0x17f   : > { %v3010_v63 = vadd.f32 %v3009_v30, %v2151_v13  ;;  %v2986_v48 = vpop.f32.mrb[10].mxu1 }
 0x180   : > { %v2187_v49 = vadd.f32 %v3008_v29, %v2636_v44  ;;  %v3012_v53 = vadd.f32 %v3011_v8, %v2986_v48  ;;  %v2154_v52 = vpop.f32.mrb[11].mxu1  ;;  %v2981_v62 = vpop.f32.mrb[0].mxu0 }
 0x181   : > { %v2185_v26 = vadd.f32 %v3010_v63, %v2636_v44  ;;  %v3014_v47 = vadd.f32 %v3013_v55, %v2154_v52  ;;  %v3003_v59 = vadd.f32 %v2981_v62, %v2861_v35  ;;  %v2135_v3 = vpop.f32.mrb[1].mxu0 }
 0x182   : > { %v2188_v58 = vadd.f32 %v3012_v53, %v2636_v44  ;;  %v2195_v5 = vmax.f32 %v2187_v49, 0.0  ;;  %v3004_v7 = vadd.f32 %v2135_v3, %v977_v51  ;;  %v2982_v34 = vpop.f32.mrb[2].mxu0 }
 0x183   : > { %v2186_v4 = vadd.f32 %v3014_v47, %v2636_v44  ;;  %v2183_v27 = vadd.f32 %v3003_v59, %v2636_v44  ;;  %v2193_v16 = vmax.f32 %v2185_v26, 0.0  ;;  %v3005_v24 = vadd.f32 %v2982_v34, %v2862_v31  ;;  %v2138_v61 = vpop.f32.mrb[3].mxu0 }
 0x184   : > { %v2196_v17 = vmax.f32 %v2188_v58, 0.0  ;;  %v2181_v38 = vadd.f32 %v3004_v7, %v2636_v44  ;;  %v3006_v6 = vadd.f32 %v2138_v61, %v980_v57 }
 0x185   : > { %v2194_v46 = vmax.f32 %v2186_v4, 0.0  ;;  %v2184_v15 = vadd.f32 %v3005_v24, %v2636_v44  ;;  %v2191_v14 = vmax.f32 %v2183_v27, 0.0 }
 0x186   : > { %v2658_v50 = vpack.c.bf16 %v2196_v17, %v2195_v5  ;;  %v2182_v10 = vadd.f32 %v3006_v6, %v2636_v44  ;;  %v2189_v18 = vmax.f32 %v2181_v38, 0.0 }
 0x187   : > { %v2653_v56 = vpack.c.bf16 %v2194_v46, %v2193_v16  ;;  %v2192_v54 = vmax.f32 %v2184_v15, 0.0 }
 0x188   : > { %2662 = vst [vmem:[%s192_s8 + $0x18] sm:$0xff] %v2658_v50   ;;  %v2190_v19 = vmax.f32 %v2182_v10, 0.0 }
 0x189   : > { %2661 = vst [vmem:[%s192_s8 + $0x10] sm:$0xff] %v2653_v56   ;;  %v2648_v20 = vpack.c.bf16 %v2192_v54, %v2191_v14 }
 0x18a   : > { %v2643_v22 = vpack.c.bf16 %v2190_v19, %v2189_v18 }
 0x18b   : > { %2660 = vst [vmem:[%s192_s8 + $0x8] sm:$0xff] %v2648_v20  }
 0x18c   : > { %2644 = vst [vmem:[%s192_s8] sm:$0xff] %v2643_v22  }
 0x18d PF: > { %s13_s14 = sadd.s32 1, %s3198_s14   ;;  %s3816_s12 = smov %s3194_s13 }
 0x18e   : > { %p10_p5 = scmp.ge.s32.totalorder %s13_s14, 4   ;;  %s3817_s13 = smov %s3819_s15 }
 0x190   :  { %12 = sbr.rel (!%p10_p5) target bundleno = 2 (0x2), region = 73 }

// kernel: model_forward.8
= control target key start
LH: loop header
LB: loop body
LE: loop exit
PB: predicated region body
PF: predicated region fallthrough
CT: control target
= control target key end

     0   :  { %s3352_s15 = smov 0   ;;  %s3354_s16 = smov 0   ;;  %s3947_s0 = inlined_call_operand.vmem [shape: bf16[2,10,10,128], index: 0, kind: input, shape index: {}]   ;;  %s3948_s1 = inlined_call_operand.vmem [shape: bf16[9,128,128], index: 1, kind: input, shape index: {}]   ;;  %s3949_s2 = inlined_call_operand.vmem [shape: f32[1,128], index: 2, kind: input, shape index: {}]   ;;  %s3950_s3 = inlined_call_operand.vmem [shape: bf16[2,8,8,128], index: 3, kind: input, shape index: {}]   ;;  %s3951_s4 = inlined_call_operand.vmem [shape: bf16[2,8,8,128], index: 4, kind: output, shape index: {}]  }
   0x1   :  { %s3356_s17 = smov 0  }
   0x2 LB: > { %s26_s18 = sadd.s32 1, %s3321_s16  ;;  %p2413_p0 = scmp.ge.s32.totalorder %s3325_s17, 1  ;;  %s3325_s17 = sphi %s3356_s17, %s14_s17   ;;  %s3321_s16 = sphi %s3354_s16, %s3957_s16   ;;  %s3317_s15 = sphi %s3352_s15, %s3956_s15  }
   0x3   : > { %p28_p1 = scmp.ge.s32.totalorder %s26_s18, 2  ;;  %p193_p2 = scmp.lt.s32.totalorder %s3325_s17, 3 }
   0x5   : > { %s3959_s18 = smov (%p28_p1, %s26_s18), 0  ;;  %p194_p3 = pnand %p2413_p0, %p193_p2 }
   0x6   : > { %v3219_v0 = vld [vmem:[%s3948_s1 + $0x40] sm:$0xff] (!%p194_p3)   ;;  %p232_p4 = scmp.lt.s32.totalorder (!%p194_p3), %s3317_s15, 1  ;;  %v3221_v2 = vld [vmem:[%s3948_s1 + $0x48] sm:$0xff] (!%p194_p3)   ;;  %v3223_v4 = vld [vmem:[%s3948_s1 + $0x50] sm:$0xff] (!%p194_p3)   ;;  %vm310_vm0 = vsmask.f32 (!%p194_p3), 3328 }
   0x7   : > { %197 = sbr.rel (%p194_p3) target bundleno = 399 (0x18f), region = 36  ;;  %v3220_v1 = vld [vmem:[%s3948_s1 + $0x100] sm:$0xff] (!%p194_p3)   ;;  %2898 = vmatprep.subr.bf16.mxu1 (!%p194_p3), %v3219_v0  ;;  %v3222_v3 = vld [vmem:[%s3948_s1 + $0x108] sm:$0xff] (!%p194_p3)   ;;  %v3224_v5 = vld [vmem:[%s3948_s1 + $0x110] sm:$0xff] (!%p194_p3)   ;;  %vm311_vm1 = vsmask.f32 (!%p194_p3), 7440 }
   0x8   : > { %2994 = vmatprep.subr.bf16.mxu0 (!%p194_p3), %v3220_v1  ;;  %2899 = vmatpush3.bf16.msra.mxu1 (!%p194_p3), %v3219_v0  ;;  %v3225_v6 = vld [vmem:[%s3948_s1 + $0x58] sm:$0xff] (!%p194_p3)   ;;  %v3227_v8 = vld [vmem:[%s3948_s1 + $0x60] sm:$0xff] (!%p194_p3)   ;;  %v3229_v10 = vld [vmem:[%s3948_s1 + $0x68] sm:$0xff] (!%p194_p3)   ;;  %vm732_vm3 = vcmask (!%p194_p3), 1042432   ;;  %vm733_vm4 = vcmask (!%p194_p3), 1046532  }
   0x9   : > { %2995 = vmatpush3.bf16.msra.mxu0 (!%p194_p3), %v3220_v1  ;;  %2900 = vmatprep.subr.bf16.mxu1 (!%p194_p3), %v3221_v2  ;;  %v3226_v7 = vld [vmem:[%s3948_s1 + $0x118] sm:$0xff] (!%p194_p3)   ;;  %v3228_v9 = vld [vmem:[%s3948_s1 + $0x120] sm:$0xff] (!%p194_p3)   ;;  %v3230_v14 = vld [vmem:[%s3948_s1 + $0x128] sm:$0xff] (!%p194_p3)  }
   0xa   : > { %2996 = vmatprep.subr.bf16.mxu0 (!%p194_p3), %v3222_v3  ;;  %v3231_v22 = vld [vmem:[%s3948_s1 + $0x70] sm:$0xff] (!%p194_p3)   ;;  %v3233_v37 = vld [vmem:[%s3948_s1 + $0x78] sm:$0xff] (!%p194_p3)   ;;  %vm3451_vm2 = vmor (!%p194_p3), %vm310_vm0, %vm311_vm1 }
   0xb   : > { %v3232_v23 = vld [vmem:[%s3948_s1 + $0x130] sm:$0xff] (!%p194_p3)   ;;  %v3234_v47 = vld [vmem:[%s3948_s1 + $0x138] sm:$0xff] (!%p194_p3)   ;;  %v3235_v63 = vld [vmem:[%s3948_s1] sm:$0xff] (!%p194_p3)  }
   0xc   : > { %2901 = vmatpush3.bf16.msra.mxu1 (!%p194_p3), %v3221_v2  ;;  %v3483_v1 = vld [vmem:[%s3948_s1 + $0x140] sm:$0xff] (!%p194_p3)   ;;  %vm3625_vm5 = vmor (!%p194_p3), %vm732_vm3, %vm733_vm4 }
   0xd   : > { %2997 = vmatpush3.bf16.msra.mxu0 (!%p194_p3), %v3222_v3  ;;  %2902 = vmatprep.subr.bf16.mxu1 (!%p194_p3), %v3223_v4  ;;  %v3299_v38 = vld [vmem:[%s3948_s1 + $0x220] sm:$0xff] (!%p194_p3)  }
   0xe   : > { %s3961_s15 = smov (!%p232_p4, %s3317_s15), 1  ;;  %2998 = vmatprep.subr.bf16.mxu0 %v3224_v5 }
   0xf   : > { %s3194_s9 = smul.u32 80, %s3961_s15 }
  0x10   : > { %2903 = vmatpush3.bf16.msra.mxu1 %v3223_v4 }
  0x11   : > { %2999 = vmatpush3.bf16.msra.mxu0 %v3224_v5  ;;  %2904 = vmatprep.subr.bf16.mxu1 %v3225_v6  ;;  %s3406_s20 = scalar_lea.vmem %s3947_s0, %s3194_s9 }
  0x12   : > { %3000 = vmatprep.subr.bf16.mxu0 %v3226_v7  ;;  %v3412_v11 = vld [vmem:[%s3406_s20] sm:$0xf]  ;;  %v3415_v12 = vld [vmem:[%s3406_s20 + $0x8] sm:$0xf]  ;;  %v3418_v13 = vld [vmem:[%s3406_s20 + $0x4] sm:$0x1] }
  0x13   : > { %v3424_v15 = vld [vmem:[%s3406_s20 + $0xc] sm:$0x1]  ;;  %v314_v16 = vshrl.u32 %v3412_v11, 16  ;;  %v317_v17 = vshll.u32 %v3412_v11, 16  ;;  %v323_v18 = vshll.u32 %v3418_v13, 16  ;;  %v328_v19 = vshrl.u32 %v3415_v12, 16 }
  0x14   : > { %2905 = vmatpush3.bf16.msra.mxu1 %v3225_v6  ;;  %v331_v20 = vshll.u32 %v3415_v12, 16  ;;  %v337_v21 = vshll.u32 %v3424_v15, 16  ;;  %v2531_v30 = vld [vmem:[%s3406_s20 + $0x8] sm:$0xf]  ;;  %v3440_v31 = vld [vmem:[%s3406_s20 + $0xc] sm:$0x1] }
  0x15   : > { %3001 = vmatpush3.bf16.msra.mxu0 %v3226_v7  ;;  %2906 = vmatprep.subr.bf16.mxu1 %v3227_v8  ;;  %v316_v24 = vrot.slane %v314_v16, 4  ;;  %v319_v25 = vrot.slane %v317_v17, 5  ;;  %v325_v26 = vrot.slane %v323_v18, 5  ;;  %v330_v27 = vrot.slane %v328_v19, 4  ;;  %v2533_v33 = vld [vmem:[%s3406_s20 + $0x10] sm:$0xf] }
  0x16   : > { %3002 = vmatprep.subr.bf16.mxu0 %v3228_v9  ;;  %v333_v28 = vrot.slane %v331_v20, 5  ;;  %v339_v29 = vrot.slane %v337_v21, 5  ;;  %v3444_v34 = vld [vmem:[%s3406_s20 + $0x14] sm:$0x1]  ;;  %v1112_v35 = vshrl.u32 %v2531_v30, 16  ;;  %v1115_v36 = vshll.u32 %v2531_v30, 16 }
  0x17   : > { %v320_v32 = vor.u32 %v319_v25, %v316_v24  ;;  %v1121_v40 = vshll.u32 %v3440_v31, 16  ;;  %v1126_v41 = vshrl.u32 %v2533_v33, 16  ;;  %v1129_v42 = vshll.u32 %v2533_v33, 16  ;;  %v3461_v51 = vld [vmem:[%s3406_s20 + $0x10] sm:$0xf] }
  0x18   : > { %2907 = vmatpush3.bf16.msra.mxu1 %v3227_v8  ;;  %v334_v39 = vor.u32 %v333_v28, %v330_v27  ;;  %v1114_v44 = vrot.slane %v1112_v35, 4  ;;  %v1117_v45 = vrot.slane %v1115_v36, 5  ;;  %v1135_v46 = vshll.u32 %v3444_v34, 16  ;;  %v3466_v55 = vld [vmem:[%s3406_s20 + $0x18] sm:$0xf] }
  0x19   : > { %3003 = vmatpush3.bf16.msra.mxu0 %v3228_v9  ;;  %2908 = vmatprep.subr.bf16.mxu1 %v3229_v10  ;;  %v321_v43 = vrot.slane %v320_v32, 4  ;;  %v1128_v49 = vrot.slane %v1126_v41, 4  ;;  %v1131_v50 = vrot.slane %v1129_v42, 5  ;;  %v1123_v54 = vrot.slane %v1121_v40, 5  ;;  %v3469_v56 = vld [vmem:[%s3406_s20 + $0x14] sm:$0x1] }
  0x1a   : > { %3004 = vmatprep.subr.bf16.mxu0 %v3230_v14  ;;  %v335_v48 = vrot.slane %v334_v39, 4  ;;  %v1118_v53 = vor.u32 %v1117_v45, %v1114_v44  ;;  %v1137_v59 = vrot.slane %v1135_v46, 5  ;;  %v3474_v60 = vld [vmem:[%s3406_s20 + $0x1c] sm:$0x1]  ;;  %v342_v61 = vshrl.u32 %v3461_v51, 16 }
  0x1b   : > { %v326_v52 = vsel %vm3451_vm2, %v321_v43, %v325_v26  ;;  %v1132_v58 = vor.u32 %v1131_v50, %v1128_v49  ;;  %v345_v2 = vshll.u32 %v3461_v51, 16  ;;  %v351_v3 = vshll.u32 %v3469_v56, 16  ;;  %v2535_v8 = vld [vmem:[%s3406_s20 + $0x18] sm:$0xf]  ;;  %v3494_v16 = vld [vmem:[%s3406_s20 + $0x1c] sm:$0x1] }
  0x1c   : > { %2909 = vmatpush3.bf16.msra.mxu1 %v3229_v10  ;;  %v340_v57 = vsel %vm3451_vm2, %v335_v48, %v339_v29  ;;  %v1119_v0 = vrot.slane %v1118_v53, 4  ;;  %v344_v5 = vrot.slane %v342_v61, 4  ;;  %v356_v6 = vshrl.u32 %v3466_v55, 16  ;;  %v2537_v17 = vld [vmem:[%s3406_s20 + $0x20] sm:$0xf]  ;;  %v3237_v43 = vld [vmem:[%s3948_s1 + $0x8] sm:$0xff]  }
  0x1d   : > { %3005 = vmatpush3.bf16.msra.mxu0 %v3230_v14  ;;  %2910 = vmatprep.subr.bf16.mxu1 %v3231_v22  ;;  %v2435_v62 = vcombine.low %v326_v52, %v340_v57  ;;  %v1133_v4 = vrot.slane %v1132_v58, 4  ;;  %v359_v7 = vshll.u32 %v3466_v55, 16  ;;  %v347_v10 = vrot.slane %v345_v2, 5  ;;  %v3500_v21 = vld [vmem:[%s3406_s20 + $0x24] sm:$0x1] }
  0x1e   : > { %3006 = vmatprep.subr.bf16.mxu0 %v3232_v23  ;;  %v1124_v9 = vsel %vm3451_vm2, %v1119_v0, %v1123_v54  ;;  %v365_v14 = vshll.u32 %v3474_v60, 16  ;;  %v358_v19 = vrot.slane %v356_v6, 4  ;;  %v353_v24 = vrot.slane %v351_v3, 5  ;;  %v3238_v54 = vld [vmem:[%s3948_s1 + $0x148] sm:$0xff]   ;;  %v3530_v0 = vld [vmem:[%s3406_s20 + $0x24] sm:$0x1] }
  0x1f   : > { %2914 = vmatprep.mubr.bf16.mxu1 %v2435_v62  ;;  %v1138_v18 = vsel %vm3451_vm2, %v1133_v4, %v1137_v59  ;;  %v361_v20 = vrot.slane %v359_v7, 5  ;;  %v1140_v27 = vshrl.u32 %v2535_v8, 16  ;;  %v1143_v28 = vshll.u32 %v2535_v8, 16  ;;  %v3239_v59 = vld [vmem:[%s3948_s1 + $0x10] sm:$0xff]   ;;  %v3524_v62 = vld [vmem:[%s3406_s20 + $0x20] sm:$0xf] }
  0x20   : > { %2911 = vmatpush3.bf16.msra.mxu1 %v3231_v22  ;;  %v2563_v22 = vcombine.low %v1124_v9, %v1138_v18  ;;  %v367_v25 = vrot.slane %v365_v14, 5  ;;  %v1149_v29 = vshll.u32 %v3494_v16, 16  ;;  %v1154_v32 = vshrl.u32 %v2537_v17, 16  ;;  %v3533_v2 = vld [vmem:[%s3406_s20 + $0x2c] sm:$0x1]  ;;  %v3240_v9 = vld [vmem:[%s3948_s1 + $0x150] sm:$0xff]  }
  0x21   : > { %3007 = vmatpush3.bf16.msra.mxu0 %v3232_v23  ;;  %2912 = vmatprep.subr.bf16.mxu1 %v3233_v37  ;;  %v348_v23 = vor.u32 %v347_v10, %v344_v5  ;;  %v362_v26 = vor.u32 %v361_v20, %v358_v19  ;;  %v1157_v33 = vshll.u32 %v2537_v17, 16  ;;  %v1163_v35 = vshll.u32 %v3500_v21, 16  ;;  %v3241_v10 = vld [vmem:[%s3948_s1 + $0x18] sm:$0xff]  }
  0x22   : > { %3008 = vmatprep.subr.bf16.mxu0 %v3234_v47  ;;  %3010 = vmatprep.mubr.bf16.mxu0 %v2563_v22  ;;  %v1145_v39 = vrot.slane %v1143_v28, 5  ;;  %v1156_v41 = vrot.slane %v1154_v32, 4  ;;  %v1151_v46 = vrot.slane %v1149_v29, 5  ;;  %v1403_v57 = vrot.slane %v3440_v31, 5  ;;  %v3242_v29 = vld [vmem:[%s3948_s1 + $0x158] sm:$0xff]  }
  0x23   : > { %v349_v30 = vrot.slane %v348_v23, 4  ;;  %v363_v36 = vrot.slane %v362_v26, 4  ;;  %v1159_v42 = vrot.slane %v1157_v33, 5  ;;  %v370_v3 = vshrl.u32 %v3524_v62, 16  ;;  %v2539_v23 = vld [vmem:[%s3406_s20 + $0x28] sm:$0xf] }
  0x24   : > { %2913 = vmatpush3.bf16.msra.mxu1 %v3233_v37  ;;  %v1142_v37 = vrot.slane %v1140_v27, 4  ;;  %v373_v4 = vshll.u32 %v3524_v62, 16  ;;  %v379_v5 = vshll.u32 %v3530_v0, 16  ;;  %v393_v8 = vshll.u32 %v3533_v2, 16  ;;  %v3554_v26 = vld [vmem:[%s3406_s20 + $0x34] sm:$0x1] }
  0x25   : > { %3009 = vmatpush3.bf16.msra.mxu0 %v3234_v47  ;;  %2922 = vmatprep.subr.bf16.mxu1 %v3235_v63  ;;  %v354_v40 = vsel %vm3451_vm2, %v349_v30, %v353_v24  ;;  %v368_v44 = vsel %vm3451_vm2, %v363_v36, %v367_v25  ;;  %v1165_v47 = vrot.slane %v1163_v35, 5  ;;  %v1160_v49 = vor.u32 %v1159_v42, %v1156_v41  ;;  %v3550_v24 = vld [vmem:[%s3406_s20 + $0x2c] sm:$0x1]  ;;  %v2541_v25 = vld [vmem:[%s3406_s20 + $0x30] sm:$0xf]  ;;  %v3243_v30 = vld [vmem:[%s3948_s1 + $0x20] sm:$0xff]  }
  0x26   : > { %3018 = vmatprep.subr.bf16.mxu0 %v3483_v1  ;;  %v1146_v45 = vor.u32 %v1145_v39, %v1142_v37  ;;  %v2436_v48 = vcombine.low %v354_v40, %v368_v44  ;;  %v372_v14 = vrot.slane %v370_v3, 4  ;;  %v375_v17 = vrot.slane %v373_v4, 5 }
  0x27   : > { %v1161_v52 = vrot.slane %v1160_v49, 4  ;;  %v381_v18 = vrot.slane %v379_v5, 5  ;;  %v395_v22 = vrot.slane %v393_v8, 5  ;;  %v1168_v27 = vshrl.u32 %v2539_v23, 16  ;;  %v2543_v5 = vld [vmem:[%s3406_s20 + $0x38] sm:$0xf] }
  0x28   : > { %v1147_v50 = vrot.slane %v1146_v45, 4  ;;  %2915 = vmatmul.mubr.bf16.vlgmr.msra.gmra.mrb[0].mxu1 %v2436_v48  ;;  %v1171_v28 = vshll.u32 %v2539_v23, 16  ;;  %v1177_v33 = vshll.u32 %v3550_v24, 16  ;;  %v1182_v35 = vshrl.u32 %v2541_v25, 16 }
  0x29   : > { %2923 = vmatpush3.bf16.msra.mxu1 %v3235_v63  ;;  %v1166_v58 = vsel %vm3451_vm2, %v1161_v52, %v1165_v47  ;;  %v3527_v63 = vld [vmem:[%s3406_s20 + $0x28] sm:$0xf]  ;;  %v1185_v36 = vshll.u32 %v2541_v25, 16  ;;  %v1170_v39 = vrot.slane %v1168_v27, 4  ;;  %v1191_v41 = vshll.u32 %v3554_v26, 16 }
  0x2a   : > { %v1152_v53 = vsel %vm3451_vm2, %v1147_v50, %v1151_v46  ;;  %2924 = vmatprep.subr.bf16.mxu1 %v3237_v43  ;;  %v384_v6 = vshrl.u32 %v3527_v63, 16  ;;  %v387_v7 = vshll.u32 %v3527_v63, 16  ;;  %v1173_v40 = vrot.slane %v1171_v28, 5  ;;  %v3565_v46 = vld [vmem:[%s3406_s20 + $0x30] sm:$0xf] }
  0x2b   : > { %v2564_v61 = vcombine.low %v1152_v53, %v1166_v58  ;;  %v1184_v44 = vrot.slane %v1182_v35, 4  ;;  %v1187_v45 = vrot.slane %v1185_v36, 5  ;;  %v1193_v49 = vrot.slane %v1191_v41, 5  ;;  %v3570_v50 = vld [vmem:[%s3406_s20 + $0x38] sm:$0xf] }
  0x2c   : > { %v386_v19 = vrot.slane %v384_v6, 4  ;;  %v389_v20 = vrot.slane %v387_v7, 5  ;;  %v1174_v48 = vor.u32 %v1173_v40, %v1170_v39  ;;  %v3573_v52 = vld [vmem:[%s3406_s20 + $0x34] sm:$0x1]  ;;  %v398_v53 = vshrl.u32 %v3565_v46, 16  ;;  %v3245_v6 = vld [vmem:[%s3948_s1 + $0x28] sm:$0xff]  }
  0x2d   : > { %3011 = vmatmul.mubr.bf16.vlgmr.msra.gmra.mrb[0].mxu0 %v2564_v61  ;;  %2925 = vmatpush3.bf16.msra.mxu1 %v3237_v43  ;;  %v1179_v43 = vrot.slane %v1177_v33, 5  ;;  %v3582_v61 = vld [vmem:[%s3406_s20 + $0x3c] sm:$0x1]  ;;  %v401_v3 = vshll.u32 %v3565_v46, 16  ;;  %v407_v4 = vshll.u32 %v3573_v52, 16  ;;  %v1196_v28 = vshrl.u32 %v2543_v5, 16 }
  0x2e   : > { %3019 = vmatpush3.bf16.msra.mxu0 %v3483_v1  ;;  %2926 = vmatprep.subr.bf16.mxu1 %v3239_v59  ;;  %v376_v1 = vor.u32 %v375_v17, %v372_v14  ;;  %v390_v32 = vor.u32 %v389_v20, %v386_v19  ;;  %v1175_v8 = vrot.slane %v1174_v48, 4  ;;  %v412_v14 = vshrl.u32 %v3570_v50, 16  ;;  %v3592_v17 = vld [vmem:[%s3406_s20 + $0x3c] sm:$0x1]  ;;  %v3600_v27 = vld [vmem:[%s3406_s20 + $0x44] sm:$0x1] }
  0x2f   : > { %3020 = vmatprep.subr.bf16.mxu0 %v3238_v54  ;;  %v403_v19 = vrot.slane %v401_v3, 5  ;;  %v409_v20 = vrot.slane %v407_v4, 5  ;;  %v421_v25 = vshll.u32 %v3582_v61, 16  ;;  %v1199_v36 = vshll.u32 %v2543_v5, 16 }
  0x30   : > { %v377_v37 = vrot.slane %v376_v1, 4  ;;  %v391_v42 = vrot.slane %v390_v32, 4  ;;  %v1180_v23 = vsel %vm3451_vm2, %v1175_v8, %v1179_v43  ;;  %v414_v1 = vrot.slane %v412_v14, 4 }
  0x31   : > { %2927 = vmatpush3.bf16.msra.mxu1 %v3239_v59  ;;  %v1188_v59 = vor.u32 %v1187_v45, %v1184_v44  ;;  %v423_v40 = vrot.slane %v421_v25, 5  ;;  %v1198_v41 = vrot.slane %v1196_v28, 4  ;;  %v1201_v45 = vrot.slane %v1199_v36, 5  ;;  %v2577_v25 = vld [vmem:[%s3406_s20 + $0x18] sm:$0xe] }
  0x32   : > { %3021 = vmatpush3.bf16.msra.mxu0 %v3238_v54  ;;  %2928 = vmatprep.subr.bf16.mxu1 %v3241_v10  ;;  %v382_v47 = vsel %vm3451_vm2, %v377_v37, %v381_v18  ;;  %v3244_v54 = vld [vmem:[%s3948_s1 + $0x160] sm:$0xff]   ;;  %v396_v58 = vsel %vm3451_vm2, %v391_v42, %v395_v22  ;;  %v415_v22 = vshll.u32 %v3570_v50, 16  ;;  %v3247_v37 = vld [vmem:[%s3948_s1 + $0x30] sm:$0xff]   ;;  %v1205_v42 = vshll.u32 %v3592_v17, 16  ;;  %v3250_v28 = vld [vmem:[%s3948_s1 + $0x178] sm:$0xff]  }
  0x33   : > { %3022 = vmatprep.subr.bf16.mxu0 %v3240_v9  ;;  %v2437_v7 = vcombine.low %v382_v47, %v396_v58  ;;  %v1189_v18 = vrot.slane %v1188_v59, 4  ;;  %v1407_v47 = vrot.slane %v3444_v34, 5  ;;  %v1411_v48 = vrot.slane %v3494_v16, 5  ;;  %v3248_v58 = vld [vmem:[%s3948_s1 + $0x170] sm:$0xff]  }
  0x34   : > { %v417_v35 = vrot.slane %v415_v22, 5  ;;  %v1202_v4 = vor.u32 %v1201_v45, %v1198_v41  ;;  %v1207_v34 = vrot.slane %v1205_v42, 5  ;;  %v1415_v22 = vrot.slane %v3500_v21, 5  ;;  %v3253_v41 = vld [vmem:[%s3948_s1 + $0x180] sm:$0xff]  }
  0x35   : > { %2929 = vmatpush3.bf16.msra.mxu1 %v3241_v10  ;;  %v400_v10 = vrot.slane %v398_v53, 4  ;;  %2918 = vmatprep.mubr.bf16.mxu1 %v2437_v7  ;;  %v1194_v32 = vsel %vm3451_vm2, %v1189_v18, %v1193_v49  ;;  %v1219_v53 = vshll.u32 %v3600_v27, 16  ;;  %v2575_v7 = vld [vmem:[%s3406_s20 + $0x8] sm:$0xe]  ;;  %v2585_v36 = vrot.slane %v2577_v25, 9 }
  0x36   : > { %3023 = vmatpush3.bf16.msra.mxu0 %v3240_v9  ;;  %2930 = vmatprep.subr.bf16.mxu1 %v3243_v30  ;;  %v2545_v9 = vld [vmem:[%s3406_s20 + $0x40] sm:$0xf]  ;;  %v2565_v39 = vcombine.low %v1180_v23, %v1194_v32  ;;  %v418_v44 = vor.u32 %v417_v35, %v414_v1  ;;  %v2583_v14 = vrot.slane %v2575_v7, 9  ;;  %v1203_v18 = vrot.slane %v1202_v4, 4 }
  0x37   : > { %3024 = vmatprep.subr.bf16.mxu0 %v3242_v29  ;;  %v404_v33 = vor.u32 %v403_v19, %v400_v10  ;;  %v1213_v49 = vshll.u32 %v2545_v9, 16  ;;  %v2576_v10 = vld [vmem:[%s3406_s20 + $0x10] sm:$0xe]  ;;  %v2447_v19 = vcombine.low %v3412_v11, %v3415_v12  ;;  %v1221_v1 = vrot.slane %v1219_v53, 5  ;;  %v2578_v12 = vld [vmem:[%s3406_s20 + $0x20] sm:$0xe] }
  0x38   : > { %3014 = vmatprep.mubr.bf16.mxu0 %v2565_v39  ;;  %v419_v3 = vrot.slane %v418_v44, 4  ;;  %v1404_v32 = vsel %vm3625_vm5, %v2583_v14, %v1403_v57  ;;  %v1208_v21 = vsel %vm3451_vm2, %v1203_v18, %v1207_v34  ;;  %v3252_v35 = vld [vmem:[%s3948_s1 + $0x80] sm:$0xff]   ;;  %v1412_v42 = vsel %vm3625_vm5, %v2585_v36, %v1411_v48  ;;  %v3257_v44 = vld [vmem:[%s3948_s1 + $0x90] sm:$0xff]  }
  0x39   : > { %2931 = vmatpush3.bf16.msra.mxu1 %v3243_v30  ;;  %v3246_v30 = vld [vmem:[%s3948_s1 + $0x168] sm:$0xff]   ;;  %v405_v43 = vrot.slane %v404_v33, 4  ;;  %v1215_v16 = vrot.slane %v1213_v49, 5  ;;  %v1419_v45 = vrot.slane %v3550_v24, 5  ;;  %v1427_v53 = vrot.slane %v3592_v17, 5  ;;  %v3261_v18 = vld [vmem:[%s3948_s1 + $0xa0] sm:$0xff]  }
  0x3a   : > { %3025 = vmatpush3.bf16.msra.mxu0 %v3242_v29  ;;  %2932 = vmatprep.subr.bf16.mxu1 %v3245_v6  ;;  %v1210_v29 = vshrl.u32 %v2545_v9, 16  ;;  %v1431_v24 = vrot.slane %v3600_v27, 5  ;;  %v741_v34 = vrot.slane %v3424_v15, 5  ;;  %v745_v17 = vrot.slane %v3469_v56, 5  ;;  %v709_v15 = vld [vmem:[%s3406_s20 + $0x8] sm:$0xe] }
  0x3b   : > { %3026 = vmatprep.subr.bf16.mxu0 %v3244_v54  ;;  %v410_v59 = vsel %vm3451_vm2, %v405_v43, %v409_v20  ;;  %v2584_v20 = vrot.slane %v2576_v10, 9  ;;  %v3255_v43 = vld [vmem:[%s3948_s1 + $0x88] sm:$0xff]   ;;  %v3258_v10 = vld [vmem:[%s3948_s1 + $0x190] sm:$0xff]   ;;  %v2460_v14 = vrot.slane %v709_v15, 9  ;;  %v753_v36 = vrot.slane %v3530_v0, 5  ;;  %v3271_v0 = vld [vmem:[%s3948_s1 + $0xc0] sm:$0xff]  }
  0x3c   : > { %v1212_v5 = vrot.slane %v1210_v29, 4  ;;  %v1423_v29 = vrot.slane %v3554_v26, 5  ;;  %v2450_v26 = vcombine.low %v3565_v46, %v3570_v50  ;;  %v3259_v46 = vld [vmem:[%s3948_s1 + $0x98] sm:$0xff]   ;;  %v3276_v15 = vld [vmem:[%s3948_s1 + $0x1c8] sm:$0xff]  }
  0x3d   : > { %2933 = vmatpush3.bf16.msra.mxu1 %v3245_v6  ;;  %v3249_v6 = vld [vmem:[%s3948_s1 + $0x38] sm:$0xff]   ;;  %v1408_v11 = vsel %vm3625_vm5, %v2584_v20, %v1407_v47 }
  0x3e   : > { %3027 = vmatpush3.bf16.msra.mxu0 %v3244_v54  ;;  %2934 = vmatprep.subr.bf16.mxu1 %v3247_v37  ;;  %v424_v54 = vsel %vm3451_vm2, %v419_v3, %v423_v40  ;;  %v1216_v23 = vor.u32 %v1215_v16, %v1212_v5  ;;  %v2607_v57 = vcombine.low %v1404_v32, %v1408_v11  ;;  %v708_v16 = vld [vmem:[%s3406_s20] sm:$0xe]  ;;  %v3260_v20 = vld [vmem:[%s3948_s1 + $0x198] sm:$0xff]  }
  0x3f   : > { %3028 = vmatprep.subr.bf16.mxu0 %v3246_v30  ;;  %v2438_v9 = vcombine.low %v410_v59, %v424_v54  ;;  %v2448_v40 = vcombine.low %v3461_v51, %v3466_v55  ;;  %v2449_v51 = vcombine.low %v3524_v62, %v3527_v63  ;;  %v737_v55 = vrot.slane %v3418_v13, 5  ;;  %v3256_v62 = vld [vmem:[%s3948_s1 + $0x188] sm:$0xff]   ;;  %v2580_v63 = vld [vmem:[%s3406_s20 + $0x30] sm:$0xe]  ;;  %v2582_v59 = vld [vmem:[%s3406_s20 + $0x40] sm:$0xe] }
  0x40   : > { %v1217_v33 = vrot.slane %v1216_v23, 4  ;;  %v2579_v13 = vld [vmem:[%s3406_s20 + $0x28] sm:$0xe]  ;;  %v2588_v49 = vrot.slane %v2580_v63, 9  ;;  %v2590_v7 = vrot.slane %v2582_v59, 9  ;;  %v2459_v56 = vrot.slane %v708_v16, 9 }
  0x41   : > { %2935 = vmatpush3.bf16.msra.mxu1 %v3247_v37  ;;  %v2586_v37 = vrot.slane %v2578_v12, 9  ;;  %v2587_v48 = vrot.slane %v2579_v13, 9  ;;  %v749_v54 = vrot.slane %v3474_v60, 5  ;;  %v710_v23 = vld [vmem:[%s3406_s20 + $0x10] sm:$0xe] }
  0x42   : > { %3029 = vmatpush3.bf16.msra.mxu0 %v3246_v30  ;;  %2919 = vmatmul.mubr.bf16.gmra.mrb[4].mxu1 %v2438_v9  ;;  %v1222_v31 = vsel %vm3451_vm2, %v1217_v33, %v1221_v1  ;;  %v1424_v4 = vsel %vm3625_vm5, %v2588_v49, %v1423_v29  ;;  %v742_v9 = vsel %vm3625_vm5, %v2460_v14, %v741_v34  ;;  %v711_v60 = vld [vmem:[%s3406_s20 + $0x18] sm:$0xe]  ;;  %v2461_v25 = vrot.slane %v710_v23, 9  ;;  %v3263_v33 = vld [vmem:[%s3948_s1 + $0xa8] sm:$0xff]  }
  0x43   : > { %3030 = vmatprep.subr.bf16.mxu0 %v3248_v58  ;;  %2936 = vmatprep.subr.bf16.mxu1 %v3249_v6  ;;  %v2566_v39 = vcombine.low %v1208_v21, %v1222_v31  ;;  %v1416_v30 = vsel %vm3625_vm5, %v2586_v37, %v1415_v22  ;;  %v1420_v3 = vsel %vm3625_vm5, %v2587_v48, %v1419_v45  ;;  %v3272_v32 = vld [vmem:[%s3406_s20 + $0x10] ss:$8 sps:$4 sm:$0xff]   ;;  %v761_v29 = vrot.slane %v3573_v52, 5  ;;  %v3275_v49 = vld [vmem:[%s3948_s1 + $0xc8] sm:$0xff]  }
  0x44   : > { %2938 = vmatprep.mubr.bf16.mxu1 %v2447_v19  ;;  %v2608_v47 = vcombine.low %v1412_v42, %v1416_v30  ;;  %v2609_v27 = vcombine.low %v1420_v3, %v1424_v4  ;;  %v738_v19 = vsel %vm3625_vm5, %v2459_v56, %v737_v55  ;;  %v746_v11 = vsel %vm3625_vm5, %v2461_v25, %v745_v17  ;;  %v3266_v31 = vld [vmem:[%s3948_s1 + $0xb0] sm:$0xff]   ;;  %v3269_v37 = vld [vmem:[%s3948_s1 + $0xb8] sm:$0xff]   ;;  %v2661_v25 = vld [vmem:[%s3406_s20 + $0x28] sm:$0xf] }
  0x45   : > { %2937 = vmatpush3.bf16.msra.mxu1 %v3249_v6  ;;  %3015 = vmatmul.mubr.bf16.gmra.mrb[4].mxu0 %v2566_v39  ;;  %v1432_v6 = vsel %vm3625_vm5, %v2590_v7, %v1431_v24  ;;  %v2483_v1 = vcombine.low %v738_v19, %v742_v9  ;;  %v712_v39 = vld [vmem:[%s3406_s20 + $0x20] sm:$0xe]  ;;  %v3270_v45 = vld [vmem:[%s3948_s1 + $0x1b8] sm:$0xff]   ;;  %v3764_v24 = vld [vmem:[%s3406_s20 + $0x14] sm:$0x1] }
  0x46   : > { %3031 = vmatpush3.bf16.msra.mxu0 %v3248_v58  ;;  %2946 = vmatprep.subr.bf16.mxu1 %v3252_v35  ;;  %v2581_v58 = vld [vmem:[%s3406_s20 + $0x38] sm:$0xe]  ;;  %v2463_v42 = vrot.slane %v712_v39, 9  ;;  %v1787_v59 = vshll.u32 %v3764_v24, 16  ;;  %v3274_v7 = vld [vmem:[%s3406_s20 + $0x20] ss:$8 sps:$4 sm:$0xff]  }
  0x47   : > { %3032 = vmatprep.subr.bf16.mxu0 %v3250_v28  ;;  %3034 = vmatprep.mubr.bf16.mxu0 %v2607_v57  ;;  %v2589_v5 = vrot.slane %v2581_v58, 9  ;;  %v3264_v57 = vld [vmem:[%s3948_s1 + $0x1a8] sm:$0xff]   ;;  %v2657_v52 = vld [vmem:[%s3406_s20 + $0x18] sm:$0xf]  ;;  %v3278_v9 = vld [vmem:[%s3948_s1 + $0x1d0] sm:$0xff]  }
  0x48   : > { %v1792_v3 = vshrl.u32 %v2657_v52, 16  ;;  %v1795_v4 = vshll.u32 %v2657_v52, 16  ;;  %v3285_v56 = vld [vmem:[%s3406_s20 + $0x30] ss:$8 sps:$4 sm:$0xff]   ;;  %v3284_v52 = vld [vmem:[%s3948_s1 + $0x1e8] sm:$0xff]  }
  0x49   : > { %v1428_v50 = vsel %vm3625_vm5, %v2589_v5, %v1427_v53  ;;  %v2655_v53 = vld [vmem:[%s3406_s20 + $0x10] sm:$0xf]  ;;  %v3279_v23 = vld [vmem:[%s3948_s1 + $0xd8] sm:$0xff]  }
  0x4a   : > { %3033 = vmatpush3.bf16.msra.mxu0 %v3250_v28  ;;  %2939 = vmatmul.mubr.bf16.vlgmr.msra.gmra.mrb[0].mxu1 %v2448_v40  ;;  %v2610_v22 = vcombine.low %v1428_v50, %v1432_v6  ;;  %v2462_v28 = vrot.slane %v711_v60, 9  ;;  %v713_v40 = vld [vmem:[%s3406_s20 + $0x28] sm:$0xe]  ;;  %v1781_v58 = vshll.u32 %v2655_v53, 16  ;;  %v1794_v50 = vrot.slane %v1792_v3, 4 }
  0x4b   : > { %3042 = vmatprep.subr.bf16.mxu0 %v3253_v41  ;;  %2947 = vmatpush3.bf16.msra.mxu1 %v3252_v35  ;;  %v3262_v35 = vld [vmem:[%s3948_s1 + $0x1a0] sm:$0xff]   ;;  %v2464_v30 = vrot.slane %v713_v40, 9  ;;  %v1797_v6 = vrot.slane %v1795_v4, 5 }
  0x4c   : > { %2948 = vmatprep.subr.bf16.mxu1 %v3255_v43  ;;  %2942 = vmatprep.mubr.bf16.mxu1 %v2449_v51  ;;  %v750_v12 = vsel %vm3625_vm5, %v2462_v28, %v749_v54  ;;  %v714_v51 = vld [vmem:[%s3406_s20 + $0x30] sm:$0xe]  ;;  %v1783_v16 = vrot.slane %v1781_v58, 5  ;;  %v1789_v54 = vrot.slane %v1787_v59, 5 }
  0x4d   : > { %3035 = vmatmul.mubr.bf16.vlgmr.msra.gmra.mrb[0].mxu0 %v2608_v47  ;;  %v2484_v21 = vcombine.low %v746_v11, %v750_v12  ;;  %v765_v47 = vrot.slane %v3582_v61, 5  ;;  %v2465_v63 = vrot.slane %v714_v51, 9  ;;  %v3768_v61 = vld [vmem:[%s3406_s20 + $0x1c] sm:$0x1]  ;;  %v3287_v11 = vld [vmem:[%s3406_s20 + $0x40] ss:$8 sps:$4 sm:$0xff]  }
  0x4e   : > { %3043 = vmatpush3.bf16.msra.mxu0 %v3253_v41  ;;  %3038 = vmatprep.mubr.bf16.mxu0 %v2609_v27  ;;  %v757_v41 = vrot.slane %v3533_v2, 5  ;;  %v754_v2 = vsel %vm3625_vm5, %v2463_v42, %v753_v36  ;;  %v1801_v5 = vshll.u32 %v3768_v61, 16  ;;  %v2663_v12 = vld [vmem:[%s3406_s20 + $0x30] sm:$0xf]  ;;  %v1823_v36 = vshll.u32 %v2661_v25, 16 }
  0x4f   : > { %2949 = vmatpush3.bf16.msra.mxu1 %v3255_v43  ;;  %3044 = vmatprep.subr.bf16.mxu0 %v3256_v62  ;;  %v3267_v43 = vld [vmem:[%s3948_s1 + $0x1b0] sm:$0xff]   ;;  %v762_v34 = vsel %vm3625_vm5, %v2465_v63, %v761_v29  ;;  %v1834_v40 = vshrl.u32 %v2663_v12, 16  ;;  %v3813_v51 = vld [vmem:[%s3406_s20 + $0x24] sm:$0x1] }
  0x50   : > { %2950 = vmatprep.subr.bf16.mxu1 %v3257_v44  ;;  %v758_v55 = vsel %vm3625_vm5, %v2464_v30, %v757_v41  ;;  %v1803_v19 = vrot.slane %v1801_v5, 5  ;;  %v1837_v41 = vshll.u32 %v2663_v12, 16  ;;  %v1825_v29 = vrot.slane %v1823_v36, 5  ;;  %v2669_v5 = vld [vmem:[%s3406_s20 + $0x48] sm:$0xf]  ;;  %v3290_v12 = vld [vmem:[%s3948_s1 + $0x1f8] sm:$0xff]  }
  0x51   : > { %v2485_v13 = vcombine.low %v754_v2, %v758_v55  ;;  %v3816_v2 = vld [vmem:[%s3406_s20 + $0x2c] sm:$0x1]  ;;  %v1815_v58 = vshll.u32 %v3813_v51, 16 }
  0x52   : > { %2943 = vmatmul.mubr.bf16.gmra.mrb[4].mxu1 %v2450_v26  ;;  %3045 = vmatpush3.bf16.msra.mxu0 %v3256_v62  ;;  %v3273_v62 = vld [vmem:[%s3948_s1 + $0x1c0] sm:$0xff]   ;;  %v1778_v26 = vshrl.u32 %v2655_v53, 16  ;;  %v1839_v63 = vrot.slane %v1837_v41, 5  ;;  %v1829_v59 = vshll.u32 %v3816_v2, 16 }
  0x53   : > { %2951 = vmatpush3.bf16.msra.mxu1 %v3257_v44  ;;  %3046 = vmatprep.subr.bf16.mxu0 %v3258_v10  ;;  %v715_v44 = vld [vmem:[%s3406_s20 + $0x38] sm:$0xe]  ;;  %v2667_v53 = vld [vmem:[%s3406_s20 + $0x40] sm:$0xf] }
  0x54   : > { %2952 = vmatprep.subr.bf16.mxu1 %v3259_v46  ;;  %2962 = vmatprep.mubr.bf16.mxu1 %v2483_v1  ;;  %v2466_v48 = vrot.slane %v715_v44, 9  ;;  %v1780_v27 = vrot.slane %v1778_v26, 4  ;;  %v2659_v1 = vld [vmem:[%s3406_s20 + $0x20] sm:$0xf]  ;;  %v3286_v26 = vld [vmem:[%s3948_s1 + $0xf0] sm:$0xff]  }
  0x55   : > { %3039 = vmatmul.mubr.bf16.gmra.mrb[4].mxu0 %v2610_v22 }
  0x56   : > { %3047 = vmatpush3.bf16.msra.mxu0 %v3258_v10  ;;  %3058 = vmatprep.mubr.bf16.mxu0 %v3272_v32  ;;  %v766_v17 = vsel %vm3625_vm5, %v2466_v48, %v765_v47  ;;  %v1784_v10 = vor.u32 %v1783_v16, %v1780_v27  ;;  %v3819_v47 = vld [vmem:[%s3406_s20 + $0x34] sm:$0x1]  ;;  %v1865_v27 = vshll.u32 %v2667_v53, 16 }
  0x57   : > { %2953 = vmatpush3.bf16.msra.mxu1 %v3259_v46  ;;  %3048 = vmatprep.subr.bf16.mxu0 %v3260_v20  ;;  %v3277_v46 = vld [vmem:[%s3948_s1 + $0xd0] sm:$0xff]   ;;  %v2486_v14 = vcombine.low %v762_v34, %v766_v17  ;;  %v1843_v3 = vshll.u32 %v3819_v47, 16  ;;  %v1862_v17 = vshrl.u32 %v2667_v53, 16  ;;  %v2700_v53 = vld [vmem:[%s3406_s20 + $0x18] sm:$0xe] }
  0x58   : > { %2954 = vmatprep.subr.bf16.mxu1 %v3261_v18  ;;  %v1785_v22 = vrot.slane %v1784_v10, 4 }
  0x5a   : > { %3049 = vmatpush3.bf16.msra.mxu0 %v3260_v20  ;;  %v3291_v20 = vld [vmem:[%s3406_s20 + $0x8] ss:$8 sps:$4 sm:$0xff]   ;;  %v1790_v28 = vsel %vm3451_vm2, %v1785_v22, %v1789_v54 }
  0x5b   : > { %2955 = vmatpush3.bf16.msra.mxu1 %v3261_v18  ;;  %3050 = vmatprep.subr.bf16.mxu0 %v3262_v35  ;;  %v1798_v18 = vor.u32 %v1797_v6, %v1794_v50  ;;  %v1876_v50 = vshrl.u32 %v2669_v5, 16  ;;  %v1879_v6 = vshll.u32 %v2669_v5, 16  ;;  %v2708_v5 = vrot.slane %v2700_v53, 9 }
  0x5c   : > { %2956 = vmatprep.subr.bf16.mxu1 %v3263_v33 }
  0x5d   : > { %v1799_v60 = vrot.slane %v1798_v18, 4  ;;  %v1831_v18 = vrot.slane %v1829_v59, 5  ;;  %v3296_v59 = vld [vmem:[%s3406_s20 + $0x38] ss:$8 sps:$4 sm:$0xff]  }
  0x5e   : > { %3051 = vmatpush3.bf16.msra.mxu0 %v3262_v35  ;;  %v1806_v35 = vshrl.u32 %v2659_v1, 16 }
  0x5f   : > { %2957 = vmatpush3.bf16.msra.mxu1 %v3263_v33  ;;  %3052 = vmatprep.subr.bf16.mxu0 %v3264_v57  ;;  %v1804_v32 = vsel %vm3451_vm2, %v1799_v60, %v1803_v19  ;;  %v3281_v33 = vld [vmem:[%s3948_s1 + $0xe0] sm:$0xff]   ;;  %v3846_v60 = vld [vmem:[%s3406_s20 + $0x4c] sm:$0x1] }
  0x60   : > { %2958 = vmatprep.subr.bf16.mxu1 %v3266_v31  ;;  %v2687_v39 = vcombine.low %v1790_v28, %v1804_v32  ;;  %v1808_v55 = vrot.slane %v1806_v35, 4  ;;  %v1878_v28 = vrot.slane %v1876_v50, 4  ;;  %v1881_v32 = vrot.slane %v1879_v6, 5  ;;  %v3292_v35 = vld [vmem:[%s3406_s20 + $0x18] ss:$8 sps:$4 sm:$0xff]   ;;  %v3300_v6 = vld [vmem:[%s3948_s1 + $0x228] sm:$0xff]  }
  0x62   : > { %3053 = vmatpush3.bf16.msra.mxu0 %v3264_v57  ;;  %v1820_v57 = vshrl.u32 %v2661_v25, 16  ;;  %v1867_v25 = vrot.slane %v1865_v27, 5 }
  0x63   : > { %2959 = vmatpush3.bf16.msra.mxu1 %v3266_v31  ;;  %3054 = vmatprep.subr.bf16.mxu0 %v3267_v43  ;;  %v1809_v31 = vshll.u32 %v2659_v1, 16  ;;  %v1864_v1 = vrot.slane %v1862_v17, 4 }
  0x64   : > { %2960 = vmatprep.subr.bf16.mxu1 %v3269_v37 }
  0x65   : > { %v1811_v44 = vrot.slane %v1809_v31, 5 }
  0x66   : > { %3055 = vmatpush3.bf16.msra.mxu0 %v3267_v43  ;;  %v3282_v43 = vld [vmem:[%s3948_s1 + $0x1e0] sm:$0xff]  }
  0x67   : > { %2961 = vmatpush3.bf16.msra.mxu1 %v3269_v37  ;;  %3056 = vmatprep.subr.bf16.mxu0 %v3270_v45  ;;  %v3280_v37 = vld [vmem:[%s3948_s1 + $0x1d8] sm:$0xff]  }
  0x68   : > { %2970 = vmatprep.subr.bf16.mxu1 %v3271_v0 }
  0x6a   : > { %2963 = vmatmul.mubr.bf16.vlgmr.msra.gmra.mrb[0].mxu1 %v2484_v21  ;;  %3057 = vmatpush3.bf16.msra.mxu0 %v3270_v45  ;;  %v2665_v21 = vld [vmem:[%s3406_s20 + $0x38] sm:$0xf]  ;;  %v1822_v45 = vrot.slane %v1820_v57, 4 }
  0x6b   : > { %2971 = vmatpush3.bf16.msra.mxu1 %v3271_v0  ;;  %2966 = vmatprep.mubr.bf16.mxu1 %v2485_v13  ;;  %v1848_v42 = vshrl.u32 %v2665_v21, 16  ;;  %v1851_v30 = vshll.u32 %v2665_v21, 16  ;;  %v3283_v0 = vld [vmem:[%s3948_s1 + $0xe8] sm:$0xff]   ;;  %v1836_v13 = vrot.slane %v1834_v40, 4  ;;  %v2703_v21 = vld [vmem:[%s3406_s20 + $0x30] sm:$0xe] }
  0x6c   : > { %2972 = vmatprep.subr.bf16.mxu1 %v3275_v49  ;;  %3066 = vmatprep.subr.bf16.mxu0 %v3273_v62  ;;  %v1826_v34 = vor.u32 %v1825_v29, %v1822_v45 }
  0x6d   : > { %3059 = vmatmul.mubr.bf16.vlgmr.msra.gmra.mrb[0].mxu0 %v3274_v7  ;;  %v1850_v48 = vrot.slane %v1848_v42, 4  ;;  %v1812_v7 = vor.u32 %v1811_v44, %v1808_v55  ;;  %v1840_v16 = vor.u32 %v1839_v63, %v1836_v13  ;;  %v1868_v42 = vor.u32 %v1867_v25, %v1864_v1 }
  0x6e   : > { %3067 = vmatpush3.bf16.msra.mxu0 %v3273_v62  ;;  %3062 = vmatprep.mubr.bf16.mxu0 %v3285_v56  ;;  %v3822_v62 = vld [vmem:[%s3406_s20 + $0x3c] sm:$0x1]  ;;  %v3288_v56 = vld [vmem:[%s3948_s1 + $0x1f0] sm:$0xff]   ;;  %v1827_v54 = vrot.slane %v1826_v34, 4  ;;  %v2085_v55 = vrot.slane %v3819_v47, 5  ;;  %v2077_v25 = vrot.slane %v3813_v51, 5 }
  0x6f   : > { %2973 = vmatpush3.bf16.msra.mxu1 %v3275_v49  ;;  %3068 = vmatprep.subr.bf16.mxu0 %v3276_v15  ;;  %v1853_v49 = vrot.slane %v1851_v30, 5  ;;  %v1857_v4 = vshll.u32 %v3822_v62, 16  ;;  %v1813_v10 = vrot.slane %v1812_v7, 4  ;;  %v1841_v19 = vrot.slane %v1840_v16, 4  ;;  %v3298_v16 = vld [vmem:[%s3948_s1 + $0x218] sm:$0xff]  }
  0x70   : > { %2974 = vmatprep.subr.bf16.mxu1 %v3277_v46  ;;  %v1832_v57 = vsel %vm3451_vm2, %v1827_v54, %v1831_v18  ;;  %v1882_v30 = vor.u32 %v1881_v32, %v1878_v28  ;;  %v2089_v45 = vrot.slane %v3822_v62, 5  ;;  %v2073_v7 = vrot.slane %v3768_v61, 5 }
  0x71   : > { %v2097_v54 = vrot.slane %v3846_v60, 5  ;;  %v2081_v32 = vrot.slane %v3816_v2, 5 }
  0x72   : > { %2967 = vmatmul.mubr.bf16.gmra.mrb[4].mxu1 %v2486_v14  ;;  %3069 = vmatpush3.bf16.msra.mxu0 %v3276_v15  ;;  %v3289_v15 = vld [vmem:[%s3948_s1 + $0xf8] sm:$0xff]   ;;  %v1817_v14 = vrot.slane %v1815_v58, 5  ;;  %v3297_v58 = vld [vmem:[%s3948_s1 + $0x210] sm:$0xff]   ;;  %v2074_v61 = vsel %vm3625_vm5, %v2708_v5, %v2073_v7 }
  0x73   : > { %2975 = vmatpush3.bf16.msra.mxu1 %v3277_v46  ;;  %2986 = vmatprep.mubr.bf16.mxu1 %v3291_v20  ;;  %v1854_v46 = vor.u32 %v1853_v49, %v1850_v48  ;;  %v1845_v20 = vrot.slane %v1843_v3, 5  ;;  %v2699_v49 = vld [vmem:[%s3406_s20 + $0x10] sm:$0xe] }
  0x74   : > { %2976 = vmatprep.subr.bf16.mxu1 %v3279_v23  ;;  %3070 = vmatprep.subr.bf16.mxu0 %v3278_v9  ;;  %v1818_v31 = vsel %vm3451_vm2, %v1813_v10, %v1817_v14  ;;  %v2707_v3 = vrot.slane %v2699_v49, 9  ;;  %v2706_v10 = vld [vmem:[%s3406_s20 + $0x48] sm:$0xe] }
  0x75   : > { %3063 = vmatmul.mubr.bf16.gmra.mrb[4].mxu0 %v3287_v11  ;;  %v1855_v22 = vrot.slane %v1854_v46, 4  ;;  %v3293_v11 = vld [vmem:[%s3948_s1 + $0x200] sm:$0xff]   ;;  %v1846_v40 = vsel %vm3451_vm2, %v1841_v19, %v1845_v20  ;;  %v2688_v29 = vcombine.low %v1818_v31, %v1832_v57  ;;  %v2714_v19 = vrot.slane %v2706_v10, 9  ;;  %v3302_v20 = vld [vmem:[%s3948_s1 + $0x238] sm:$0xff]  }
  0x76   : > { %3071 = vmatpush3.bf16.msra.mxu0 %v3278_v9  ;;  %3082 = vmatprep.mubr.bf16.mxu0 %v2687_v39  ;;  %v1859_v9 = vrot.slane %v1857_v4, 5  ;;  %v3295_v39 = vld [vmem:[%s3406_s20 + $0x28] ss:$8 sps:$4 sm:$0xff]   ;;  %v2069_v4 = vrot.slane %v3764_v24, 5 }
  0x77   : > { %2977 = vmatpush3.bf16.msra.mxu1 %v3279_v23  ;;  %3072 = vmatprep.subr.bf16.mxu0 %v3280_v37  ;;  %v3843_v23 = vld [vmem:[%s3406_s20 + $0x44] sm:$0x1] }
  0x78   : > { %2978 = vmatprep.subr.bf16.mxu1 %v3281_v33  ;;  %v1871_v36 = vshll.u32 %v3843_v23, 16  ;;  %v1860_v41 = vsel %vm3451_vm2, %v1855_v22, %v1859_v9  ;;  %v2070_v24 = vsel %vm3625_vm5, %v2707_v3, %v2069_v4  ;;  %v2093_v14 = vrot.slane %v3843_v23, 5  ;;  %v2701_v22 = vld [vmem:[%s3406_s20 + $0x20] sm:$0xe]  ;;  %v2702_v9 = vld [vmem:[%s3406_s20 + $0x28] sm:$0xe] }
  0x79   : > { %v2689_v13 = vcombine.low %v1846_v40, %v1860_v41  ;;  %v2731_v50 = vcombine.low %v2070_v24, %v2074_v61  ;;  %v2098_v23 = vsel %vm3625_vm5, %v2714_v19, %v2097_v54  ;;  %v2710_v28 = vrot.slane %v2702_v9, 9 }
  0x7a   : > { %3073 = vmatpush3.bf16.msra.mxu0 %v3280_v37  ;;  %v1885_v37 = vshll.u32 %v3846_v60, 16  ;;  %v1873_v63 = vrot.slane %v1871_v36, 5  ;;  %v2709_v60 = vrot.slane %v2701_v22, 9 }
  0x7b   : > { %2979 = vmatpush3.bf16.msra.mxu1 %v3281_v33  ;;  %3074 = vmatprep.subr.bf16.mxu0 %v3282_v43  ;;  %v2704_v33 = vld [vmem:[%s3406_s20 + $0x38] sm:$0xe] }
  0x7c   : > { %2980 = vmatprep.subr.bf16.mxu1 %v3283_v0  ;;  %v2712_v44 = vrot.slane %v2704_v33, 9  ;;  %v1887_v48 = vrot.slane %v1885_v37, 5 }
  0x7e   : > { %3075 = vmatpush3.bf16.msra.mxu0 %v3282_v43  ;;  %v3294_v43 = vld [vmem:[%s3948_s1 + $0x208] sm:$0xff]   ;;  %v2090_v62 = vsel %vm3625_vm5, %v2712_v44, %v2089_v45 }
  0x7f   : > { %2981 = vmatpush3.bf16.msra.mxu1 %v3283_v0  ;;  %3076 = vmatprep.subr.bf16.mxu0 %v3284_v52  ;;  %v2711_v0 = vrot.slane %v2703_v21, 9  ;;  %v2082_v21 = vsel %vm3625_vm5, %v2710_v28, %v2081_v32 }
  0x80   : > { %2982 = vmatprep.subr.bf16.mxu1 %v3286_v26 }
  0x81   : > { %v2086_v47 = vsel %vm3625_vm5, %v2711_v0, %v2085_v55 }
  0x82   : > { %3077 = vmatpush3.bf16.msra.mxu0 %v3284_v52  ;;  %v1869_v52 = vrot.slane %v1868_v42, 4  ;;  %v2733_v34 = vcombine.low %v2086_v47, %v2090_v62 }
  0x83   : > { %2983 = vmatpush3.bf16.msra.mxu1 %v3286_v26  ;;  %3078 = vmatprep.subr.bf16.mxu0 %v3288_v56  ;;  %v1883_v26 = vrot.slane %v1882_v30, 4 }
  0x84   : > { %2984 = vmatprep.subr.bf16.mxu1 %v3289_v15  ;;  %v1874_v17 = vsel %vm3451_vm2, %v1869_v52, %v1873_v63 }
  0x85   : > { %v1888_v27 = vsel %vm3451_vm2, %v1883_v26, %v1887_v48 }
  0x86   : > { %3079 = vmatpush3.bf16.msra.mxu0 %v3288_v56  ;;  %v2690_v46 = vcombine.low %v1874_v17, %v1888_v27  ;;  %v2705_v56 = vld [vmem:[%s3406_s20 + $0x40] sm:$0xe]  ;;  %s2746_s20 = sshll.u32 %s3961_s15, 5 }
  0x87   : > { %2985 = vmatpush3.bf16.msra.mxu1 %v3289_v15  ;;  %3080 = vmatprep.subr.bf16.mxu0 %v3290_v12  ;;  %v3301_v15 = vld [vmem:[%s3948_s1 + $0x230] sm:$0xff]   ;;  %v2713_v18 = vrot.slane %v2705_v56, 9  ;;  %s245_s21 = scalar_lea.vmem %s3950_s3, %s2746_s20  ;;  %s255_s26 = scalar_lea.vmem %s3951_s4, %s2746_s20 }
  0x88   : > { %3114 = vmatprep.subr.bf16.mxu1 %v3293_v11  ;;  %v2786_v44 = vld [vmem:[%s245_s21 + $0x18] sm:$0xff]   ;;  %v2785_v45 = vld [vmem:[%s245_s21 + $0x10] sm:$0xff]   ;;  %v2784_v47 = vld [vmem:[%s245_s21 + $0x8] sm:$0xff]  }
  0x89   : > { %v2094_v1 = vsel %vm3625_vm5, %v2713_v18, %v2093_v14  ;;  %v2762_v63 = vunpack.c.l.bf16 %v2786_v44  ;;  %v2758_v53 = vunpack.c.l.bf16 %v2785_v45  ;;  %v2749_v4 = vld [vmem:[%s245_s21] sm:$0xff]   ;;  %v2759_v7 = vunpack.c.h.bf16 %v2785_v45 }
  0x8a   : > { %2987 = vmatmul.mubr.bf16.vlgmr.msra.gmra.mrb[0].mxu1 %v3292_v35  ;;  %3081 = vmatpush3.bf16.msra.mxu0 %v3290_v12  ;;  %v2078_v12 = vsel %vm3625_vm5, %v2709_v60, %v2077_v25  ;;  %v2754_v24 = vunpack.c.l.bf16 %v2784_v47  ;;  %v2755_v56 = vunpack.c.h.bf16 %v2784_v47  ;;  %v2751_v19 = vunpack.c.h.bf16 %v2749_v4 }
  0x8b   : > { %3122 = vmatpush3.bf16.msra.mxu1 %v3293_v11  ;;  %2990 = vmatprep.mubr.bf16.mxu1 %v3295_v39  ;;  %v2732_v33 = vcombine.low %v2078_v12, %v2082_v21 }
  0x8c   : > { %3115 = vmatprep.subr.bf16.mxu1 %v3294_v43  ;;  %3090 = vmatprep.subr.bf16.mxu0 %v3293_v11 }
  0x8d   : > { %3083 = vmatmul.mubr.bf16.vlgmr.msra.gmra.mrb[0].mxu0 %v2688_v29  ;;  %v2743_v29 = vld [vmem:[%s3949_s2] ss:$0 sm:$0xff] }
  0x8e   : > { %3091 = vmatpush3.bf16.msra.mxu0 %v3293_v11  ;;  %3086 = vmatprep.mubr.bf16.mxu0 %v2689_v13  ;;  %v2734_v11 = vcombine.low %v2094_v1, %v2098_v23 }
  0x8f   : > { %3123 = vmatpush3.bf16.msra.mxu1 %v3294_v43  ;;  %3092 = vmatprep.subr.bf16.mxu0 %v3294_v43 }
  0x90   : > { %3116 = vmatprep.subr.bf16.mxu1 %v3297_v58 }
  0x92   : > { %2991 = vmatmul.mubr.bf16.gmra.mrb[4].mxu1 %v3296_v59  ;;  %3093 = vmatpush3.bf16.msra.mxu0 %v3294_v43 }
  0x93   : > { %3124 = vmatpush3.bf16.msra.mxu1 %v3297_v58  ;;  %3110 = vmatprep.mubr.bf16.mxu1 %v2733_v34 }
  0x94   : > { %3117 = vmatprep.subr.bf16.mxu1 %v3298_v16  ;;  %3094 = vmatprep.subr.bf16.mxu0 %v3297_v58 }
  0x95   : > { %3087 = vmatmul.mubr.bf16.gmra.mrb[4].mxu0 %v2690_v46 }
  0x96   : > { %3095 = vmatpush3.bf16.msra.mxu0 %v3297_v58  ;;  %3106 = vmatprep.mubr.bf16.mxu0 %v2731_v50  ;;  %v2763_v58 = vunpack.c.h.bf16 %v2786_v44 }
  0x97   : > { %3125 = vmatpush3.bf16.msra.mxu1 %v3298_v16  ;;  %3096 = vmatprep.subr.bf16.mxu0 %v3298_v16 }
  0x98   : > { %3118 = vmatprep.subr.bf16.mxu1 %v3299_v38 }
  0x9a   : > { %3097 = vmatpush3.bf16.msra.mxu0 %v3298_v16 }
  0x9b   : > { %3126 = vmatpush3.bf16.msra.mxu1 %v3299_v38  ;;  %3098 = vmatprep.subr.bf16.mxu0 %v3299_v38 }
  0x9c   : > { %3119 = vmatprep.subr.bf16.mxu1 %v3300_v6 }
  0x9e   : > { %3099 = vmatpush3.bf16.msra.mxu0 %v3299_v38 }
  0x9f   : > { %3127 = vmatpush3.bf16.msra.mxu1 %v3300_v6  ;;  %3100 = vmatprep.subr.bf16.mxu0 %v3300_v6 }
  0xa0   : > { %3120 = vmatprep.subr.bf16.mxu1 %v3301_v15 }
  0xa2   : > { %3101 = vmatpush3.bf16.msra.mxu0 %v3300_v6  ;;  %v2750_v6 = vunpack.c.l.bf16 %v2749_v4 }
  0xa3   : > { %3128 = vmatpush3.bf16.msra.mxu1 %v3301_v15  ;;  %3102 = vmatprep.subr.bf16.mxu0 %v3301_v15 }
  0xa4   : > { %3121 = vmatprep.subr.bf16.mxu1 %v3302_v20 }
  0xa6   : > { %3103 = vmatpush3.bf16.msra.mxu0 %v3301_v15 }
  0xa7   : > { %3129 = vmatpush3.bf16.msra.mxu1 %v3302_v20  ;;  %3104 = vmatprep.subr.bf16.mxu0 %v3302_v20 }
  0xaa   : > { %3111 = vmatmul.mubr.bf16.vlgmr.msra.gmra.mrb[8].mxu1 %v2734_v11  ;;  %3105 = vmatpush3.bf16.msra.mxu0 %v3302_v20 }
  0xad   : > { %3107 = vmatmul.mubr.bf16.vlgmr.msra.gmra.mrb[0].mxu0 %v2732_v33 }
 0x15d   : > { %v2988_v35 = vpop.f32.mrb[0].mxu1 }
 0x15e   : > { %v1056_v51 = vpop.f32.mrb[1].mxu1 }
 0x15f   : > { %v2989_v2 = vpop.f32.mrb[2].mxu1 }
 0x160   : > { %v1059_v31 = vpop.f32.mrb[3].mxu1 }
 0x165   : > { %v2992_v57 = vpop.f32.mrb[4].mxu1 }
 0x166   : > { %v1072_v36 = vpop.f32.mrb[5].mxu1 }
 0x167   : > { %v2993_v37 = vpop.f32.mrb[6].mxu1 }
 0x168   : > { %v1075_v39 = vpop.f32.mrb[7].mxu1  ;;  %v3088_v40 = vpop.f32.mrb[4].mxu0 }
 0x169   : > { %v3134_v41 = vadd.f32 %v3088_v40, %v2992_v57  ;;  %v2020_v42 = vpop.f32.mrb[5].mxu0 }
 0x16a   : > { %v3136_v8 = vadd.f32 %v2020_v42, %v1072_v36  ;;  %v3089_v30 = vpop.f32.mrb[6].mxu0 }
 0x16b   : > { %v3138_v43 = vadd.f32 %v3089_v30, %v2993_v37  ;;  %v2023_v0 = vpop.f32.mrb[7].mxu0 }
 0x16c   : > { %v3140_v55 = vadd.f32 %v2023_v0, %v1075_v39 }
 0x17d   : > { %v3112_v13 = vpop.f32.mrb[8].mxu1 }
 0x17e   : > { %v3135_v48 = vadd.f32 %v3134_v41, %v3112_v13  ;;  %v2230_v49 = vpop.f32.mrb[9].mxu1 }
 0x17f   : > { %v3137_v52 = vadd.f32 %v3136_v8, %v2230_v49  ;;  %v3113_v26 = vpop.f32.mrb[10].mxu1 }
 0x180   : > { %v2266_v62 = vadd.f32 %v3135_v48, %v2743_v29  ;;  %v3139_v59 = vadd.f32 %v3138_v43, %v3113_v26  ;;  %v2233_v3 = vpop.f32.mrb[11].mxu1  ;;  %v3108_v17 = vpop.f32.mrb[0].mxu0 }
 0x181   : > { %v2264_v5 = vadd.f32 %v3137_v52, %v2743_v29  ;;  %v3141_v34 = vadd.f32 %v3140_v55, %v2233_v3  ;;  %v3130_v61 = vadd.f32 %v3108_v17, %v2988_v35  ;;  %v2214_v46 = vpop.f32.mrb[1].mxu0 }
 0x182   : > { %v2274_v27 = vadd.f32 %v2762_v63, %v2266_v62  ;;  %v2267_v16 = vadd.f32 %v3139_v59, %v2743_v29  ;;  %v3131_v15 = vadd.f32 %v2214_v46, %v1056_v51  ;;  %v3109_v10 = vpop.f32.mrb[2].mxu0 }
 0x183   : > { %v2272_v38 = vadd.f32 %v2758_v53, %v2264_v5  ;;  %v2265_v50 = vadd.f32 %v3141_v34, %v2743_v29  ;;  %v2262_v54 = vadd.f32 %v3130_v61, %v2743_v29  ;;  %v3132_v18 = vadd.f32 %v3109_v10, %v2989_v2  ;;  %v2217_v20 = vpop.f32.mrb[3].mxu0 }
 0x184   : > { %v2275_v14 = vadd.f32 %v2763_v58, %v2267_v16  ;;  %v2282_v9 = vmax.f32 %v2274_v27, 0.0  ;;  %v2260_v1 = vadd.f32 %v3131_v15, %v2743_v29  ;;  %v3133_v60 = vadd.f32 %v2217_v20, %v1059_v31 }
 0x185   : > { %v2273_v22 = vadd.f32 %v2759_v7, %v2265_v50  ;;  %v2270_v25 = vadd.f32 %v2754_v24, %v2262_v54  ;;  %v2280_v28 = vmax.f32 %v2272_v38, 0.0  ;;  %v2263_v32 = vadd.f32 %v3132_v18, %v2743_v29 }
 0x186   : > { %v2283_v23 = vmax.f32 %v2275_v14, 0.0  ;;  %v2268_v12 = vadd.f32 %v2750_v6, %v2260_v1  ;;  %v2261_v33 = vadd.f32 %v3133_v60, %v2743_v29 }
 0x187   : > { %v2281_v11 = vmax.f32 %v2273_v22, 0.0  ;;  %v2271_v35 = vadd.f32 %v2755_v56, %v2263_v32  ;;  %v2278_v57 = vmax.f32 %v2270_v25, 0.0 }
 0x188   : > { %v2782_v21 = vpack.c.bf16 %v2283_v23, %v2282_v9  ;;  %v2269_v2 = vadd.f32 %v2751_v19, %v2261_v33  ;;  %v2276_v31 = vmax.f32 %v2268_v12, 0.0 }
 0x189   : > { %v2777_v51 = vpack.c.bf16 %v2281_v11, %v2280_v28  ;;  %v2279_v36 = vmax.f32 %v2271_v35, 0.0 }
 0x18a   : > { %2789 = vst [vmem:[%s255_s26 + $0x18] sm:$0xff] %v2782_v21   ;;  %v2277_v37 = vmax.f32 %v2269_v2, 0.0 }
 0x18b   : > { %2788 = vst [vmem:[%s255_s26 + $0x10] sm:$0xff] %v2777_v51   ;;  %v2772_v39 = vpack.c.bf16 %v2279_v36, %v2278_v57 }
 0x18c   : > { %v2767_v40 = vpack.c.bf16 %v2277_v37, %v2276_v31 }
 0x18d   : > { %2787 = vst [vmem:[%s255_s26 + $0x8] sm:$0xff] %v2772_v39  }
 0x18e   : > { %2768 = vst [vmem:[%s255_s26] sm:$0xff] %v2767_v40  }
 0x18f PF: > { %s14_s17 = sadd.s32 1, %s3325_s17   ;;  %s3956_s15 = smov %s3321_s16 }
 0x190   : > { %p11_p5 = scmp.ge.s32.totalorder %s14_s17, 4   ;;  %s3957_s16 = smov %s3959_s18 }
 0x192   :  { %13 = sbr.rel (!%p11_p5) target bundleno = 2 (0x2), region = 80 }

// kernel: model_forward.11
= control target key start
LH: loop header
LB: loop body
LE: loop exit
PB: predicated region body
PF: predicated region fallthrough
CT: control target
= control target key end

     0   :  { %s3181_s12 = smov 0   ;;  %s3183_s13 = smov 0   ;;  %s3769_s0 = inlined_call_operand.vmem [shape: bf16[2,10,10,128], index: 0, kind: input, shape index: {}]   ;;  %s3770_s1 = inlined_call_operand.vmem [shape: bf16[9,128,128], index: 1, kind: input, shape index: {}]   ;;  %s3771_s2 = inlined_call_operand.vmem [shape: f32[1,128], index: 2, kind: input, shape index: {}]   ;;  %s3772_s3 = inlined_call_operand.vmem [shape: f32[2,8,8,128], index: 3, kind: output, shape index: {}]  }
   0x1   :  { %s3185_s14 = smov 0  }
   0x2 LB: > { %s25_s15 = sadd.s32 1, %s3155_s13  ;;  %p2292_p0 = scmp.ge.s32.totalorder %s3159_s14, 1  ;;  %s3159_s14 = sphi %s3185_s14, %s13_s14   ;;  %s3155_s13 = sphi %s3183_s13, %s3778_s13   ;;  %s3151_s12 = sphi %s3181_s12, %s3777_s12  }
   0x3   : > { %p27_p1 = scmp.ge.s32.totalorder %s25_s15, 2  ;;  %p151_p2 = scmp.lt.s32.totalorder %s3159_s14, 3 }
   0x5   : > { %s3780_s15 = smov (%p27_p1, %s25_s15), 0  ;;  %p152_p3 = pnand %p2292_p0, %p151_p2 }
   0x6   : > { %v3053_v0 = vld [vmem:[%s3770_s1 + $0x40] sm:$0xff] (!%p152_p3)   ;;  %p179_p4 = scmp.lt.s32.totalorder (!%p152_p3), %s3151_s12, 1  ;;  %v3055_v2 = vld [vmem:[%s3770_s1 + $0x48] sm:$0xff] (!%p152_p3)   ;;  %v3057_v4 = vld [vmem:[%s3770_s1 + $0x50] sm:$0xff] (!%p152_p3)   ;;  %vm231_vm0 = vsmask.f32 (!%p152_p3), 3328 }
   0x7   : > { %155 = sbr.rel (%p152_p3) target bundleno = 393 (0x189), region = 32  ;;  %v3054_v1 = vld [vmem:[%s3770_s1 + $0x100] sm:$0xff] (!%p152_p3)   ;;  %2732 = vmatprep.subr.bf16.mxu1 (!%p152_p3), %v3053_v0  ;;  %v3056_v3 = vld [vmem:[%s3770_s1 + $0x108] sm:$0xff] (!%p152_p3)   ;;  %v3058_v5 = vld [vmem:[%s3770_s1 + $0x110] sm:$0xff] (!%p152_p3)   ;;  %vm232_vm1 = vsmask.f32 (!%p152_p3), 7440 }
   0x8   : > { %2828 = vmatprep.subr.bf16.mxu0 (!%p152_p3), %v3054_v1  ;;  %2733 = vmatpush3.bf16.msra.mxu1 (!%p152_p3), %v3053_v0  ;;  %v3059_v6 = vld [vmem:[%s3770_s1 + $0x58] sm:$0xff] (!%p152_p3)   ;;  %v3061_v8 = vld [vmem:[%s3770_s1 + $0x60] sm:$0xff] (!%p152_p3)   ;;  %v3063_v10 = vld [vmem:[%s3770_s1 + $0x68] sm:$0xff] (!%p152_p3)   ;;  %vm653_vm3 = vcmask (!%p152_p3), 1042432   ;;  %vm654_vm4 = vcmask (!%p152_p3), 1046532  }
   0x9   : > { %2829 = vmatpush3.bf16.msra.mxu0 (!%p152_p3), %v3054_v1  ;;  %2734 = vmatprep.subr.bf16.mxu1 (!%p152_p3), %v3055_v2  ;;  %v3060_v7 = vld [vmem:[%s3770_s1 + $0x118] sm:$0xff] (!%p152_p3)   ;;  %v3062_v9 = vld [vmem:[%s3770_s1 + $0x120] sm:$0xff] (!%p152_p3)   ;;  %v3064_v14 = vld [vmem:[%s3770_s1 + $0x128] sm:$0xff] (!%p152_p3)  }
   0xa   : > { %2830 = vmatprep.subr.bf16.mxu0 (!%p152_p3), %v3056_v3  ;;  %v3065_v22 = vld [vmem:[%s3770_s1 + $0x70] sm:$0xff] (!%p152_p3)   ;;  %v3067_v37 = vld [vmem:[%s3770_s1 + $0x78] sm:$0xff] (!%p152_p3)   ;;  %vm3280_vm2 = vmor (!%p152_p3), %vm231_vm0, %vm232_vm1 }
   0xb   : > { %v3066_v23 = vld [vmem:[%s3770_s1 + $0x130] sm:$0xff] (!%p152_p3)   ;;  %v3068_v47 = vld [vmem:[%s3770_s1 + $0x138] sm:$0xff] (!%p152_p3)   ;;  %v3069_v63 = vld [vmem:[%s3770_s1] sm:$0xff] (!%p152_p3)  }
   0xc   : > { %2735 = vmatpush3.bf16.msra.mxu1 (!%p152_p3), %v3055_v2  ;;  %v3312_v1 = vld [vmem:[%s3770_s1 + $0x140] sm:$0xff] (!%p152_p3)   ;;  %vm3454_vm5 = vmor (!%p152_p3), %vm653_vm3, %vm654_vm4 }
   0xd   : > { %2831 = vmatpush3.bf16.msra.mxu0 (!%p152_p3), %v3056_v3  ;;  %2736 = vmatprep.subr.bf16.mxu1 (!%p152_p3), %v3057_v4  ;;  %v3133_v38 = vld [vmem:[%s3770_s1 + $0x220] sm:$0xff] (!%p152_p3)  }
   0xe   : > { %s3782_s12 = smov (!%p179_p4, %s3151_s12), 1  ;;  %2832 = vmatprep.subr.bf16.mxu0 %v3058_v5 }
   0xf   : > { %s3028_s5 = smul.u32 80, %s3782_s12 }
  0x10   : > { %2737 = vmatpush3.bf16.msra.mxu1 %v3057_v4 }
  0x11   : > { %2833 = vmatpush3.bf16.msra.mxu0 %v3058_v5  ;;  %2738 = vmatprep.subr.bf16.mxu1 %v3059_v6  ;;  %s3235_s16 = scalar_lea.vmem %s3769_s0, %s3028_s5 }
  0x12   : > { %2834 = vmatprep.subr.bf16.mxu0 %v3060_v7  ;;  %v3241_v11 = vld [vmem:[%s3235_s16] sm:$0xf]  ;;  %v3244_v12 = vld [vmem:[%s3235_s16 + $0x8] sm:$0xf]  ;;  %v3247_v13 = vld [vmem:[%s3235_s16 + $0x4] sm:$0x1] }
  0x13   : > { %v3253_v15 = vld [vmem:[%s3235_s16 + $0xc] sm:$0x1]  ;;  %v235_v16 = vshrl.u32 %v3241_v11, 16  ;;  %v238_v17 = vshll.u32 %v3241_v11, 16  ;;  %v244_v18 = vshll.u32 %v3247_v13, 16  ;;  %v249_v19 = vshrl.u32 %v3244_v12, 16 }
  0x14   : > { %2739 = vmatpush3.bf16.msra.mxu1 %v3059_v6  ;;  %v252_v20 = vshll.u32 %v3244_v12, 16  ;;  %v258_v21 = vshll.u32 %v3253_v15, 16  ;;  %v2408_v30 = vld [vmem:[%s3235_s16 + $0x8] sm:$0xf]  ;;  %v3269_v31 = vld [vmem:[%s3235_s16 + $0xc] sm:$0x1] }
  0x15   : > { %2835 = vmatpush3.bf16.msra.mxu0 %v3060_v7  ;;  %2740 = vmatprep.subr.bf16.mxu1 %v3061_v8  ;;  %v237_v24 = vrot.slane %v235_v16, 4  ;;  %v240_v25 = vrot.slane %v238_v17, 5  ;;  %v246_v26 = vrot.slane %v244_v18, 5  ;;  %v251_v27 = vrot.slane %v249_v19, 4  ;;  %v2410_v33 = vld [vmem:[%s3235_s16 + $0x10] sm:$0xf] }
  0x16   : > { %2836 = vmatprep.subr.bf16.mxu0 %v3062_v9  ;;  %v254_v28 = vrot.slane %v252_v20, 5  ;;  %v260_v29 = vrot.slane %v258_v21, 5  ;;  %v3273_v34 = vld [vmem:[%s3235_s16 + $0x14] sm:$0x1]  ;;  %v1033_v35 = vshrl.u32 %v2408_v30, 16  ;;  %v1036_v36 = vshll.u32 %v2408_v30, 16 }
  0x17   : > { %v241_v32 = vor.u32 %v240_v25, %v237_v24  ;;  %v1042_v40 = vshll.u32 %v3269_v31, 16  ;;  %v1047_v41 = vshrl.u32 %v2410_v33, 16  ;;  %v1050_v42 = vshll.u32 %v2410_v33, 16  ;;  %v3290_v51 = vld [vmem:[%s3235_s16 + $0x10] sm:$0xf] }
  0x18   : > { %2741 = vmatpush3.bf16.msra.mxu1 %v3061_v8  ;;  %v255_v39 = vor.u32 %v254_v28, %v251_v27  ;;  %v1035_v44 = vrot.slane %v1033_v35, 4  ;;  %v1038_v45 = vrot.slane %v1036_v36, 5  ;;  %v1056_v46 = vshll.u32 %v3273_v34, 16  ;;  %v3295_v55 = vld [vmem:[%s3235_s16 + $0x18] sm:$0xf] }
  0x19   : > { %2837 = vmatpush3.bf16.msra.mxu0 %v3062_v9  ;;  %2742 = vmatprep.subr.bf16.mxu1 %v3063_v10  ;;  %v242_v43 = vrot.slane %v241_v32, 4  ;;  %v1049_v49 = vrot.slane %v1047_v41, 4  ;;  %v1052_v50 = vrot.slane %v1050_v42, 5  ;;  %v1044_v54 = vrot.slane %v1042_v40, 5  ;;  %v3298_v56 = vld [vmem:[%s3235_s16 + $0x14] sm:$0x1] }
  0x1a   : > { %2838 = vmatprep.subr.bf16.mxu0 %v3064_v14  ;;  %v256_v48 = vrot.slane %v255_v39, 4  ;;  %v1039_v53 = vor.u32 %v1038_v45, %v1035_v44  ;;  %v1058_v59 = vrot.slane %v1056_v46, 5  ;;  %v3303_v60 = vld [vmem:[%s3235_s16 + $0x1c] sm:$0x1]  ;;  %v263_v61 = vshrl.u32 %v3290_v51, 16 }
  0x1b   : > { %v247_v52 = vsel %vm3280_vm2, %v242_v43, %v246_v26  ;;  %v1053_v58 = vor.u32 %v1052_v50, %v1049_v49  ;;  %v266_v2 = vshll.u32 %v3290_v51, 16  ;;  %v272_v3 = vshll.u32 %v3298_v56, 16  ;;  %v2412_v8 = vld [vmem:[%s3235_s16 + $0x18] sm:$0xf]  ;;  %v3323_v16 = vld [vmem:[%s3235_s16 + $0x1c] sm:$0x1] }
  0x1c   : > { %2743 = vmatpush3.bf16.msra.mxu1 %v3063_v10  ;;  %v261_v57 = vsel %vm3280_vm2, %v256_v48, %v260_v29  ;;  %v1040_v0 = vrot.slane %v1039_v53, 4  ;;  %v265_v5 = vrot.slane %v263_v61, 4  ;;  %v277_v6 = vshrl.u32 %v3295_v55, 16  ;;  %v2414_v17 = vld [vmem:[%s3235_s16 + $0x20] sm:$0xf]  ;;  %v3071_v43 = vld [vmem:[%s3770_s1 + $0x8] sm:$0xff]  }
  0x1d   : > { %2839 = vmatpush3.bf16.msra.mxu0 %v3064_v14  ;;  %2744 = vmatprep.subr.bf16.mxu1 %v3065_v22  ;;  %v2312_v62 = vcombine.low %v247_v52, %v261_v57  ;;  %v1054_v4 = vrot.slane %v1053_v58, 4  ;;  %v280_v7 = vshll.u32 %v3295_v55, 16  ;;  %v268_v10 = vrot.slane %v266_v2, 5  ;;  %v3329_v21 = vld [vmem:[%s3235_s16 + $0x24] sm:$0x1] }
  0x1e   : > { %2840 = vmatprep.subr.bf16.mxu0 %v3066_v23  ;;  %v1045_v9 = vsel %vm3280_vm2, %v1040_v0, %v1044_v54  ;;  %v286_v14 = vshll.u32 %v3303_v60, 16  ;;  %v279_v19 = vrot.slane %v277_v6, 4  ;;  %v274_v24 = vrot.slane %v272_v3, 5  ;;  %v3072_v54 = vld [vmem:[%s3770_s1 + $0x148] sm:$0xff]   ;;  %v3359_v0 = vld [vmem:[%s3235_s16 + $0x24] sm:$0x1] }
  0x1f   : > { %2748 = vmatprep.mubr.bf16.mxu1 %v2312_v62  ;;  %v1059_v18 = vsel %vm3280_vm2, %v1054_v4, %v1058_v59  ;;  %v282_v20 = vrot.slane %v280_v7, 5  ;;  %v1061_v27 = vshrl.u32 %v2412_v8, 16  ;;  %v1064_v28 = vshll.u32 %v2412_v8, 16  ;;  %v3073_v59 = vld [vmem:[%s3770_s1 + $0x10] sm:$0xff]   ;;  %v3353_v62 = vld [vmem:[%s3235_s16 + $0x20] sm:$0xf] }
  0x20   : > { %2745 = vmatpush3.bf16.msra.mxu1 %v3065_v22  ;;  %v2440_v22 = vcombine.low %v1045_v9, %v1059_v18  ;;  %v288_v25 = vrot.slane %v286_v14, 5  ;;  %v1070_v29 = vshll.u32 %v3323_v16, 16  ;;  %v1075_v32 = vshrl.u32 %v2414_v17, 16  ;;  %v3362_v2 = vld [vmem:[%s3235_s16 + $0x2c] sm:$0x1]  ;;  %v3074_v9 = vld [vmem:[%s3770_s1 + $0x150] sm:$0xff]  }
  0x21   : > { %2841 = vmatpush3.bf16.msra.mxu0 %v3066_v23  ;;  %2746 = vmatprep.subr.bf16.mxu1 %v3067_v37  ;;  %v269_v23 = vor.u32 %v268_v10, %v265_v5  ;;  %v283_v26 = vor.u32 %v282_v20, %v279_v19  ;;  %v1078_v33 = vshll.u32 %v2414_v17, 16  ;;  %v1084_v35 = vshll.u32 %v3329_v21, 16  ;;  %v3075_v10 = vld [vmem:[%s3770_s1 + $0x18] sm:$0xff]  }
  0x22   : > { %2842 = vmatprep.subr.bf16.mxu0 %v3068_v47  ;;  %2844 = vmatprep.mubr.bf16.mxu0 %v2440_v22  ;;  %v1066_v39 = vrot.slane %v1064_v28, 5  ;;  %v1077_v41 = vrot.slane %v1075_v32, 4  ;;  %v1072_v46 = vrot.slane %v1070_v29, 5  ;;  %v1324_v57 = vrot.slane %v3269_v31, 5  ;;  %v3076_v29 = vld [vmem:[%s3770_s1 + $0x158] sm:$0xff]  }
  0x23   : > { %v270_v30 = vrot.slane %v269_v23, 4  ;;  %v284_v36 = vrot.slane %v283_v26, 4  ;;  %v1080_v42 = vrot.slane %v1078_v33, 5  ;;  %v291_v3 = vshrl.u32 %v3353_v62, 16  ;;  %v2416_v23 = vld [vmem:[%s3235_s16 + $0x28] sm:$0xf] }
  0x24   : > { %2747 = vmatpush3.bf16.msra.mxu1 %v3067_v37  ;;  %v1063_v37 = vrot.slane %v1061_v27, 4  ;;  %v294_v4 = vshll.u32 %v3353_v62, 16  ;;  %v300_v5 = vshll.u32 %v3359_v0, 16  ;;  %v314_v8 = vshll.u32 %v3362_v2, 16  ;;  %v3383_v26 = vld [vmem:[%s3235_s16 + $0x34] sm:$0x1] }
  0x25   : > { %2843 = vmatpush3.bf16.msra.mxu0 %v3068_v47  ;;  %2756 = vmatprep.subr.bf16.mxu1 %v3069_v63  ;;  %v275_v40 = vsel %vm3280_vm2, %v270_v30, %v274_v24  ;;  %v289_v44 = vsel %vm3280_vm2, %v284_v36, %v288_v25  ;;  %v1086_v47 = vrot.slane %v1084_v35, 5  ;;  %v1081_v49 = vor.u32 %v1080_v42, %v1077_v41  ;;  %v3379_v24 = vld [vmem:[%s3235_s16 + $0x2c] sm:$0x1]  ;;  %v2418_v25 = vld [vmem:[%s3235_s16 + $0x30] sm:$0xf]  ;;  %v3077_v30 = vld [vmem:[%s3770_s1 + $0x20] sm:$0xff]  }
  0x26   : > { %2852 = vmatprep.subr.bf16.mxu0 %v3312_v1  ;;  %v1067_v45 = vor.u32 %v1066_v39, %v1063_v37  ;;  %v2313_v48 = vcombine.low %v275_v40, %v289_v44  ;;  %v293_v14 = vrot.slane %v291_v3, 4  ;;  %v296_v17 = vrot.slane %v294_v4, 5 }
  0x27   : > { %v1082_v52 = vrot.slane %v1081_v49, 4  ;;  %v302_v18 = vrot.slane %v300_v5, 5  ;;  %v316_v22 = vrot.slane %v314_v8, 5  ;;  %v1089_v27 = vshrl.u32 %v2416_v23, 16  ;;  %v2420_v5 = vld [vmem:[%s3235_s16 + $0x38] sm:$0xf] }
  0x28   : > { %v1068_v50 = vrot.slane %v1067_v45, 4  ;;  %2749 = vmatmul.mubr.bf16.vlgmr.msra.gmra.mrb[0].mxu1 %v2313_v48  ;;  %v1092_v28 = vshll.u32 %v2416_v23, 16  ;;  %v1098_v33 = vshll.u32 %v3379_v24, 16  ;;  %v1103_v35 = vshrl.u32 %v2418_v25, 16 }
  0x29   : > { %2757 = vmatpush3.bf16.msra.mxu1 %v3069_v63  ;;  %v1087_v58 = vsel %vm3280_vm2, %v1082_v52, %v1086_v47  ;;  %v3356_v63 = vld [vmem:[%s3235_s16 + $0x28] sm:$0xf]  ;;  %v1106_v36 = vshll.u32 %v2418_v25, 16  ;;  %v1091_v39 = vrot.slane %v1089_v27, 4  ;;  %v1112_v41 = vshll.u32 %v3383_v26, 16 }
  0x2a   : > { %v1073_v53 = vsel %vm3280_vm2, %v1068_v50, %v1072_v46  ;;  %2758 = vmatprep.subr.bf16.mxu1 %v3071_v43  ;;  %v305_v6 = vshrl.u32 %v3356_v63, 16  ;;  %v308_v7 = vshll.u32 %v3356_v63, 16  ;;  %v1094_v40 = vrot.slane %v1092_v28, 5  ;;  %v3394_v46 = vld [vmem:[%s3235_s16 + $0x30] sm:$0xf] }
  0x2b   : > { %v2441_v61 = vcombine.low %v1073_v53, %v1087_v58  ;;  %v1105_v44 = vrot.slane %v1103_v35, 4  ;;  %v1108_v45 = vrot.slane %v1106_v36, 5  ;;  %v1114_v49 = vrot.slane %v1112_v41, 5  ;;  %v3399_v50 = vld [vmem:[%s3235_s16 + $0x38] sm:$0xf] }
  0x2c   : > { %v307_v19 = vrot.slane %v305_v6, 4  ;;  %v310_v20 = vrot.slane %v308_v7, 5  ;;  %v1095_v48 = vor.u32 %v1094_v40, %v1091_v39  ;;  %v3402_v52 = vld [vmem:[%s3235_s16 + $0x34] sm:$0x1]  ;;  %v319_v53 = vshrl.u32 %v3394_v46, 16  ;;  %v3079_v6 = vld [vmem:[%s3770_s1 + $0x28] sm:$0xff]  }
  0x2d   : > { %2845 = vmatmul.mubr.bf16.vlgmr.msra.gmra.mrb[0].mxu0 %v2441_v61  ;;  %2759 = vmatpush3.bf16.msra.mxu1 %v3071_v43  ;;  %v1100_v43 = vrot.slane %v1098_v33, 5  ;;  %v3411_v61 = vld [vmem:[%s3235_s16 + $0x3c] sm:$0x1]  ;;  %v322_v3 = vshll.u32 %v3394_v46, 16  ;;  %v328_v4 = vshll.u32 %v3402_v52, 16  ;;  %v1117_v28 = vshrl.u32 %v2420_v5, 16 }
  0x2e   : > { %2853 = vmatpush3.bf16.msra.mxu0 %v3312_v1  ;;  %2760 = vmatprep.subr.bf16.mxu1 %v3073_v59  ;;  %v297_v1 = vor.u32 %v296_v17, %v293_v14  ;;  %v311_v32 = vor.u32 %v310_v20, %v307_v19  ;;  %v1096_v8 = vrot.slane %v1095_v48, 4  ;;  %v333_v14 = vshrl.u32 %v3399_v50, 16  ;;  %v3421_v17 = vld [vmem:[%s3235_s16 + $0x3c] sm:$0x1]  ;;  %v3429_v27 = vld [vmem:[%s3235_s16 + $0x44] sm:$0x1] }
  0x2f   : > { %2854 = vmatprep.subr.bf16.mxu0 %v3072_v54  ;;  %v324_v19 = vrot.slane %v322_v3, 5  ;;  %v330_v20 = vrot.slane %v328_v4, 5  ;;  %v342_v25 = vshll.u32 %v3411_v61, 16  ;;  %v1120_v36 = vshll.u32 %v2420_v5, 16 }
  0x30   : > { %v298_v37 = vrot.slane %v297_v1, 4  ;;  %v312_v42 = vrot.slane %v311_v32, 4  ;;  %v1101_v23 = vsel %vm3280_vm2, %v1096_v8, %v1100_v43  ;;  %v335_v1 = vrot.slane %v333_v14, 4 }
  0x31   : > { %2761 = vmatpush3.bf16.msra.mxu1 %v3073_v59  ;;  %v1109_v59 = vor.u32 %v1108_v45, %v1105_v44  ;;  %v344_v40 = vrot.slane %v342_v25, 5  ;;  %v1119_v41 = vrot.slane %v1117_v28, 4  ;;  %v1122_v45 = vrot.slane %v1120_v36, 5  ;;  %v2454_v25 = vld [vmem:[%s3235_s16 + $0x18] sm:$0xe] }
  0x32   : > { %2855 = vmatpush3.bf16.msra.mxu0 %v3072_v54  ;;  %2762 = vmatprep.subr.bf16.mxu1 %v3075_v10  ;;  %v303_v47 = vsel %vm3280_vm2, %v298_v37, %v302_v18  ;;  %v3078_v54 = vld [vmem:[%s3770_s1 + $0x160] sm:$0xff]   ;;  %v317_v58 = vsel %vm3280_vm2, %v312_v42, %v316_v22  ;;  %v336_v22 = vshll.u32 %v3399_v50, 16  ;;  %v3081_v37 = vld [vmem:[%s3770_s1 + $0x30] sm:$0xff]   ;;  %v1126_v42 = vshll.u32 %v3421_v17, 16  ;;  %v3084_v28 = vld [vmem:[%s3770_s1 + $0x178] sm:$0xff]  }
  0x33   : > { %2856 = vmatprep.subr.bf16.mxu0 %v3074_v9  ;;  %v2314_v7 = vcombine.low %v303_v47, %v317_v58  ;;  %v1110_v18 = vrot.slane %v1109_v59, 4  ;;  %v1328_v47 = vrot.slane %v3273_v34, 5  ;;  %v1332_v48 = vrot.slane %v3323_v16, 5  ;;  %v3082_v58 = vld [vmem:[%s3770_s1 + $0x170] sm:$0xff]  }
  0x34   : > { %v338_v35 = vrot.slane %v336_v22, 5  ;;  %v1123_v4 = vor.u32 %v1122_v45, %v1119_v41  ;;  %v1128_v34 = vrot.slane %v1126_v42, 5  ;;  %v1336_v22 = vrot.slane %v3329_v21, 5  ;;  %v3087_v41 = vld [vmem:[%s3770_s1 + $0x180] sm:$0xff]  }
  0x35   : > { %2763 = vmatpush3.bf16.msra.mxu1 %v3075_v10  ;;  %v321_v10 = vrot.slane %v319_v53, 4  ;;  %2752 = vmatprep.mubr.bf16.mxu1 %v2314_v7  ;;  %v1115_v32 = vsel %vm3280_vm2, %v1110_v18, %v1114_v49  ;;  %v1140_v53 = vshll.u32 %v3429_v27, 16  ;;  %v2452_v7 = vld [vmem:[%s3235_s16 + $0x8] sm:$0xe]  ;;  %v2462_v36 = vrot.slane %v2454_v25, 9 }
  0x36   : > { %2857 = vmatpush3.bf16.msra.mxu0 %v3074_v9  ;;  %2764 = vmatprep.subr.bf16.mxu1 %v3077_v30  ;;  %v2422_v9 = vld [vmem:[%s3235_s16 + $0x40] sm:$0xf]  ;;  %v2442_v39 = vcombine.low %v1101_v23, %v1115_v32  ;;  %v339_v44 = vor.u32 %v338_v35, %v335_v1  ;;  %v2460_v14 = vrot.slane %v2452_v7, 9  ;;  %v1124_v18 = vrot.slane %v1123_v4, 4 }
  0x37   : > { %2858 = vmatprep.subr.bf16.mxu0 %v3076_v29  ;;  %v325_v33 = vor.u32 %v324_v19, %v321_v10  ;;  %v1134_v49 = vshll.u32 %v2422_v9, 16  ;;  %v2453_v10 = vld [vmem:[%s3235_s16 + $0x10] sm:$0xe]  ;;  %v2324_v19 = vcombine.low %v3241_v11, %v3244_v12  ;;  %v1142_v1 = vrot.slane %v1140_v53, 5  ;;  %v2455_v12 = vld [vmem:[%s3235_s16 + $0x20] sm:$0xe] }
  0x38   : > { %2848 = vmatprep.mubr.bf16.mxu0 %v2442_v39  ;;  %v340_v3 = vrot.slane %v339_v44, 4  ;;  %v1325_v32 = vsel %vm3454_vm5, %v2460_v14, %v1324_v57  ;;  %v1129_v21 = vsel %vm3280_vm2, %v1124_v18, %v1128_v34  ;;  %v3086_v35 = vld [vmem:[%s3770_s1 + $0x80] sm:$0xff]   ;;  %v1333_v42 = vsel %vm3454_vm5, %v2462_v36, %v1332_v48  ;;  %v3091_v44 = vld [vmem:[%s3770_s1 + $0x90] sm:$0xff]  }
  0x39   : > { %2765 = vmatpush3.bf16.msra.mxu1 %v3077_v30  ;;  %v3080_v30 = vld [vmem:[%s3770_s1 + $0x168] sm:$0xff]   ;;  %v326_v43 = vrot.slane %v325_v33, 4  ;;  %v1136_v16 = vrot.slane %v1134_v49, 5  ;;  %v1340_v45 = vrot.slane %v3379_v24, 5  ;;  %v1348_v53 = vrot.slane %v3421_v17, 5  ;;  %v3095_v18 = vld [vmem:[%s3770_s1 + $0xa0] sm:$0xff]  }
  0x3a   : > { %2859 = vmatpush3.bf16.msra.mxu0 %v3076_v29  ;;  %2766 = vmatprep.subr.bf16.mxu1 %v3079_v6  ;;  %v1131_v29 = vshrl.u32 %v2422_v9, 16  ;;  %v1352_v24 = vrot.slane %v3429_v27, 5  ;;  %v662_v34 = vrot.slane %v3253_v15, 5  ;;  %v666_v17 = vrot.slane %v3298_v56, 5  ;;  %v630_v15 = vld [vmem:[%s3235_s16 + $0x8] sm:$0xe] }
  0x3b   : > { %2860 = vmatprep.subr.bf16.mxu0 %v3078_v54  ;;  %v331_v59 = vsel %vm3280_vm2, %v326_v43, %v330_v20  ;;  %v2461_v20 = vrot.slane %v2453_v10, 9  ;;  %v3089_v43 = vld [vmem:[%s3770_s1 + $0x88] sm:$0xff]   ;;  %v3092_v10 = vld [vmem:[%s3770_s1 + $0x190] sm:$0xff]   ;;  %v2337_v14 = vrot.slane %v630_v15, 9  ;;  %v674_v36 = vrot.slane %v3359_v0, 5  ;;  %v3105_v0 = vld [vmem:[%s3770_s1 + $0xc0] sm:$0xff]  }
  0x3c   : > { %v1133_v5 = vrot.slane %v1131_v29, 4  ;;  %v1344_v29 = vrot.slane %v3383_v26, 5  ;;  %v2327_v26 = vcombine.low %v3394_v46, %v3399_v50  ;;  %v3093_v46 = vld [vmem:[%s3770_s1 + $0x98] sm:$0xff]   ;;  %v3110_v15 = vld [vmem:[%s3770_s1 + $0x1c8] sm:$0xff]  }
  0x3d   : > { %2767 = vmatpush3.bf16.msra.mxu1 %v3079_v6  ;;  %v3083_v6 = vld [vmem:[%s3770_s1 + $0x38] sm:$0xff]   ;;  %v1329_v11 = vsel %vm3454_vm5, %v2461_v20, %v1328_v47 }
  0x3e   : > { %2861 = vmatpush3.bf16.msra.mxu0 %v3078_v54  ;;  %2768 = vmatprep.subr.bf16.mxu1 %v3081_v37  ;;  %v345_v54 = vsel %vm3280_vm2, %v340_v3, %v344_v40  ;;  %v1137_v23 = vor.u32 %v1136_v16, %v1133_v5  ;;  %v2484_v57 = vcombine.low %v1325_v32, %v1329_v11  ;;  %v629_v16 = vld [vmem:[%s3235_s16] sm:$0xe]  ;;  %v3094_v20 = vld [vmem:[%s3770_s1 + $0x198] sm:$0xff]  }
  0x3f   : > { %2862 = vmatprep.subr.bf16.mxu0 %v3080_v30  ;;  %v2315_v9 = vcombine.low %v331_v59, %v345_v54  ;;  %v2325_v40 = vcombine.low %v3290_v51, %v3295_v55  ;;  %v2326_v51 = vcombine.low %v3353_v62, %v3356_v63  ;;  %v658_v55 = vrot.slane %v3247_v13, 5  ;;  %v3090_v62 = vld [vmem:[%s3770_s1 + $0x188] sm:$0xff]   ;;  %v2457_v63 = vld [vmem:[%s3235_s16 + $0x30] sm:$0xe]  ;;  %v2459_v59 = vld [vmem:[%s3235_s16 + $0x40] sm:$0xe] }
  0x40   : > { %v1138_v33 = vrot.slane %v1137_v23, 4  ;;  %v2456_v13 = vld [vmem:[%s3235_s16 + $0x28] sm:$0xe]  ;;  %v2465_v49 = vrot.slane %v2457_v63, 9  ;;  %v2467_v7 = vrot.slane %v2459_v59, 9  ;;  %v2336_v56 = vrot.slane %v629_v16, 9 }
  0x41   : > { %2769 = vmatpush3.bf16.msra.mxu1 %v3081_v37  ;;  %v2463_v37 = vrot.slane %v2455_v12, 9  ;;  %v2464_v48 = vrot.slane %v2456_v13, 9  ;;  %v670_v54 = vrot.slane %v3303_v60, 5  ;;  %v631_v23 = vld [vmem:[%s3235_s16 + $0x10] sm:$0xe] }
  0x42   : > { %2863 = vmatpush3.bf16.msra.mxu0 %v3080_v30  ;;  %2753 = vmatmul.mubr.bf16.gmra.mrb[4].mxu1 %v2315_v9  ;;  %v1143_v31 = vsel %vm3280_vm2, %v1138_v33, %v1142_v1  ;;  %v1345_v4 = vsel %vm3454_vm5, %v2465_v49, %v1344_v29  ;;  %v663_v9 = vsel %vm3454_vm5, %v2337_v14, %v662_v34  ;;  %v632_v60 = vld [vmem:[%s3235_s16 + $0x18] sm:$0xe]  ;;  %v2338_v25 = vrot.slane %v631_v23, 9  ;;  %v3097_v33 = vld [vmem:[%s3770_s1 + $0xa8] sm:$0xff]  }
  0x43   : > { %2864 = vmatprep.subr.bf16.mxu0 %v3082_v58  ;;  %2770 = vmatprep.subr.bf16.mxu1 %v3083_v6  ;;  %v2443_v39 = vcombine.low %v1129_v21, %v1143_v31  ;;  %v1337_v30 = vsel %vm3454_vm5, %v2463_v37, %v1336_v22  ;;  %v1341_v3 = vsel %vm3454_vm5, %v2464_v48, %v1340_v45  ;;  %v3106_v32 = vld [vmem:[%s3235_s16 + $0x10] ss:$8 sps:$4 sm:$0xff]   ;;  %v682_v29 = vrot.slane %v3402_v52, 5  ;;  %v3109_v49 = vld [vmem:[%s3770_s1 + $0xc8] sm:$0xff]  }
  0x44   : > { %2772 = vmatprep.mubr.bf16.mxu1 %v2324_v19  ;;  %v2485_v47 = vcombine.low %v1333_v42, %v1337_v30  ;;  %v2486_v27 = vcombine.low %v1341_v3, %v1345_v4  ;;  %v659_v19 = vsel %vm3454_vm5, %v2336_v56, %v658_v55  ;;  %v667_v11 = vsel %vm3454_vm5, %v2338_v25, %v666_v17  ;;  %v3100_v31 = vld [vmem:[%s3770_s1 + $0xb0] sm:$0xff]   ;;  %v3103_v37 = vld [vmem:[%s3770_s1 + $0xb8] sm:$0xff]   ;;  %v2538_v25 = vld [vmem:[%s3235_s16 + $0x28] sm:$0xf] }
  0x45   : > { %2771 = vmatpush3.bf16.msra.mxu1 %v3083_v6  ;;  %2849 = vmatmul.mubr.bf16.gmra.mrb[4].mxu0 %v2443_v39  ;;  %v1353_v6 = vsel %vm3454_vm5, %v2467_v7, %v1352_v24  ;;  %v2360_v1 = vcombine.low %v659_v19, %v663_v9  ;;  %v633_v39 = vld [vmem:[%s3235_s16 + $0x20] sm:$0xe]  ;;  %v3104_v45 = vld [vmem:[%s3770_s1 + $0x1b8] sm:$0xff]   ;;  %v3593_v24 = vld [vmem:[%s3235_s16 + $0x14] sm:$0x1] }
  0x46   : > { %2865 = vmatpush3.bf16.msra.mxu0 %v3082_v58  ;;  %2780 = vmatprep.subr.bf16.mxu1 %v3086_v35  ;;  %v2458_v58 = vld [vmem:[%s3235_s16 + $0x38] sm:$0xe]  ;;  %v2340_v42 = vrot.slane %v633_v39, 9  ;;  %v1708_v59 = vshll.u32 %v3593_v24, 16  ;;  %v3108_v7 = vld [vmem:[%s3235_s16 + $0x20] ss:$8 sps:$4 sm:$0xff]  }
  0x47   : > { %2866 = vmatprep.subr.bf16.mxu0 %v3084_v28  ;;  %2868 = vmatprep.mubr.bf16.mxu0 %v2484_v57  ;;  %v2466_v5 = vrot.slane %v2458_v58, 9  ;;  %v3098_v57 = vld [vmem:[%s3770_s1 + $0x1a8] sm:$0xff]   ;;  %v2534_v52 = vld [vmem:[%s3235_s16 + $0x18] sm:$0xf]  ;;  %v3112_v9 = vld [vmem:[%s3770_s1 + $0x1d0] sm:$0xff]  }
  0x48   : > { %v1713_v3 = vshrl.u32 %v2534_v52, 16  ;;  %v1716_v4 = vshll.u32 %v2534_v52, 16  ;;  %v3119_v56 = vld [vmem:[%s3235_s16 + $0x30] ss:$8 sps:$4 sm:$0xff]   ;;  %v3118_v52 = vld [vmem:[%s3770_s1 + $0x1e8] sm:$0xff]  }
  0x49   : > { %v1349_v50 = vsel %vm3454_vm5, %v2466_v5, %v1348_v53  ;;  %v2532_v53 = vld [vmem:[%s3235_s16 + $0x10] sm:$0xf]  ;;  %v3113_v23 = vld [vmem:[%s3770_s1 + $0xd8] sm:$0xff]  }
  0x4a   : > { %2867 = vmatpush3.bf16.msra.mxu0 %v3084_v28  ;;  %2773 = vmatmul.mubr.bf16.vlgmr.msra.gmra.mrb[0].mxu1 %v2325_v40  ;;  %v2487_v22 = vcombine.low %v1349_v50, %v1353_v6  ;;  %v2339_v28 = vrot.slane %v632_v60, 9  ;;  %v634_v40 = vld [vmem:[%s3235_s16 + $0x28] sm:$0xe]  ;;  %v1702_v58 = vshll.u32 %v2532_v53, 16  ;;  %v1715_v50 = vrot.slane %v1713_v3, 4 }
  0x4b   : > { %2876 = vmatprep.subr.bf16.mxu0 %v3087_v41  ;;  %2781 = vmatpush3.bf16.msra.mxu1 %v3086_v35  ;;  %v3096_v35 = vld [vmem:[%s3770_s1 + $0x1a0] sm:$0xff]   ;;  %v2341_v30 = vrot.slane %v634_v40, 9  ;;  %v1718_v6 = vrot.slane %v1716_v4, 5 }
  0x4c   : > { %2782 = vmatprep.subr.bf16.mxu1 %v3089_v43  ;;  %2776 = vmatprep.mubr.bf16.mxu1 %v2326_v51  ;;  %v671_v12 = vsel %vm3454_vm5, %v2339_v28, %v670_v54  ;;  %v635_v51 = vld [vmem:[%s3235_s16 + $0x30] sm:$0xe]  ;;  %v1704_v16 = vrot.slane %v1702_v58, 5  ;;  %v1710_v54 = vrot.slane %v1708_v59, 5 }
  0x4d   : > { %2869 = vmatmul.mubr.bf16.vlgmr.msra.gmra.mrb[0].mxu0 %v2485_v47  ;;  %v2361_v21 = vcombine.low %v667_v11, %v671_v12  ;;  %v686_v47 = vrot.slane %v3411_v61, 5  ;;  %v2342_v63 = vrot.slane %v635_v51, 9  ;;  %v3597_v61 = vld [vmem:[%s3235_s16 + $0x1c] sm:$0x1]  ;;  %v3121_v11 = vld [vmem:[%s3235_s16 + $0x40] ss:$8 sps:$4 sm:$0xff]  }
  0x4e   : > { %2877 = vmatpush3.bf16.msra.mxu0 %v3087_v41  ;;  %2872 = vmatprep.mubr.bf16.mxu0 %v2486_v27  ;;  %v678_v41 = vrot.slane %v3362_v2, 5  ;;  %v675_v2 = vsel %vm3454_vm5, %v2340_v42, %v674_v36  ;;  %v1722_v5 = vshll.u32 %v3597_v61, 16  ;;  %v2540_v12 = vld [vmem:[%s3235_s16 + $0x30] sm:$0xf]  ;;  %v1744_v36 = vshll.u32 %v2538_v25, 16 }
  0x4f   : > { %2783 = vmatpush3.bf16.msra.mxu1 %v3089_v43  ;;  %2878 = vmatprep.subr.bf16.mxu0 %v3090_v62  ;;  %v3101_v43 = vld [vmem:[%s3770_s1 + $0x1b0] sm:$0xff]   ;;  %v683_v34 = vsel %vm3454_vm5, %v2342_v63, %v682_v29  ;;  %v1755_v40 = vshrl.u32 %v2540_v12, 16  ;;  %v3642_v51 = vld [vmem:[%s3235_s16 + $0x24] sm:$0x1] }
  0x50   : > { %2784 = vmatprep.subr.bf16.mxu1 %v3091_v44  ;;  %v679_v55 = vsel %vm3454_vm5, %v2341_v30, %v678_v41  ;;  %v1724_v19 = vrot.slane %v1722_v5, 5  ;;  %v1758_v41 = vshll.u32 %v2540_v12, 16  ;;  %v1746_v29 = vrot.slane %v1744_v36, 5  ;;  %v2546_v5 = vld [vmem:[%s3235_s16 + $0x48] sm:$0xf]  ;;  %v3124_v12 = vld [vmem:[%s3770_s1 + $0x1f8] sm:$0xff]  }
  0x51   : > { %v2362_v13 = vcombine.low %v675_v2, %v679_v55  ;;  %v3645_v2 = vld [vmem:[%s3235_s16 + $0x2c] sm:$0x1]  ;;  %v1736_v58 = vshll.u32 %v3642_v51, 16 }
  0x52   : > { %2777 = vmatmul.mubr.bf16.gmra.mrb[4].mxu1 %v2327_v26  ;;  %2879 = vmatpush3.bf16.msra.mxu0 %v3090_v62  ;;  %v3107_v62 = vld [vmem:[%s3770_s1 + $0x1c0] sm:$0xff]   ;;  %v1699_v26 = vshrl.u32 %v2532_v53, 16  ;;  %v1760_v63 = vrot.slane %v1758_v41, 5  ;;  %v1750_v59 = vshll.u32 %v3645_v2, 16 }
  0x53   : > { %2785 = vmatpush3.bf16.msra.mxu1 %v3091_v44  ;;  %2880 = vmatprep.subr.bf16.mxu0 %v3092_v10  ;;  %v636_v44 = vld [vmem:[%s3235_s16 + $0x38] sm:$0xe]  ;;  %v2544_v53 = vld [vmem:[%s3235_s16 + $0x40] sm:$0xf] }
  0x54   : > { %2786 = vmatprep.subr.bf16.mxu1 %v3093_v46  ;;  %2796 = vmatprep.mubr.bf16.mxu1 %v2360_v1  ;;  %v2343_v48 = vrot.slane %v636_v44, 9  ;;  %v1701_v27 = vrot.slane %v1699_v26, 4  ;;  %v2536_v1 = vld [vmem:[%s3235_s16 + $0x20] sm:$0xf]  ;;  %v3120_v26 = vld [vmem:[%s3770_s1 + $0xf0] sm:$0xff]  }
  0x55   : > { %2873 = vmatmul.mubr.bf16.gmra.mrb[4].mxu0 %v2487_v22 }
  0x56   : > { %2881 = vmatpush3.bf16.msra.mxu0 %v3092_v10  ;;  %2892 = vmatprep.mubr.bf16.mxu0 %v3106_v32  ;;  %v687_v17 = vsel %vm3454_vm5, %v2343_v48, %v686_v47  ;;  %v1705_v10 = vor.u32 %v1704_v16, %v1701_v27  ;;  %v3648_v47 = vld [vmem:[%s3235_s16 + $0x34] sm:$0x1]  ;;  %v1786_v27 = vshll.u32 %v2544_v53, 16 }
  0x57   : > { %2787 = vmatpush3.bf16.msra.mxu1 %v3093_v46  ;;  %2882 = vmatprep.subr.bf16.mxu0 %v3094_v20  ;;  %v3111_v46 = vld [vmem:[%s3770_s1 + $0xd0] sm:$0xff]   ;;  %v2363_v14 = vcombine.low %v683_v34, %v687_v17  ;;  %v1764_v3 = vshll.u32 %v3648_v47, 16  ;;  %v1783_v17 = vshrl.u32 %v2544_v53, 16  ;;  %v2577_v53 = vld [vmem:[%s3235_s16 + $0x18] sm:$0xe] }
  0x58   : > { %2788 = vmatprep.subr.bf16.mxu1 %v3095_v18  ;;  %v1706_v22 = vrot.slane %v1705_v10, 4 }
  0x5a   : > { %2883 = vmatpush3.bf16.msra.mxu0 %v3094_v20  ;;  %v3125_v20 = vld [vmem:[%s3235_s16 + $0x8] ss:$8 sps:$4 sm:$0xff]   ;;  %v1711_v28 = vsel %vm3280_vm2, %v1706_v22, %v1710_v54 }
  0x5b   : > { %2789 = vmatpush3.bf16.msra.mxu1 %v3095_v18  ;;  %2884 = vmatprep.subr.bf16.mxu0 %v3096_v35  ;;  %v1719_v18 = vor.u32 %v1718_v6, %v1715_v50  ;;  %v1797_v50 = vshrl.u32 %v2546_v5, 16  ;;  %v1800_v6 = vshll.u32 %v2546_v5, 16  ;;  %v2585_v5 = vrot.slane %v2577_v53, 9 }
  0x5c   : > { %2790 = vmatprep.subr.bf16.mxu1 %v3097_v33 }
  0x5d   : > { %v1720_v60 = vrot.slane %v1719_v18, 4  ;;  %v1752_v18 = vrot.slane %v1750_v59, 5  ;;  %v3130_v59 = vld [vmem:[%s3235_s16 + $0x38] ss:$8 sps:$4 sm:$0xff]  }
  0x5e   : > { %2885 = vmatpush3.bf16.msra.mxu0 %v3096_v35  ;;  %v1727_v35 = vshrl.u32 %v2536_v1, 16 }
  0x5f   : > { %2791 = vmatpush3.bf16.msra.mxu1 %v3097_v33  ;;  %2886 = vmatprep.subr.bf16.mxu0 %v3098_v57  ;;  %v1725_v32 = vsel %vm3280_vm2, %v1720_v60, %v1724_v19  ;;  %v3115_v33 = vld [vmem:[%s3770_s1 + $0xe0] sm:$0xff]   ;;  %v3675_v60 = vld [vmem:[%s3235_s16 + $0x4c] sm:$0x1] }
  0x60   : > { %2792 = vmatprep.subr.bf16.mxu1 %v3100_v31  ;;  %v2564_v39 = vcombine.low %v1711_v28, %v1725_v32  ;;  %v1729_v55 = vrot.slane %v1727_v35, 4  ;;  %v1799_v28 = vrot.slane %v1797_v50, 4  ;;  %v1802_v32 = vrot.slane %v1800_v6, 5  ;;  %v3126_v35 = vld [vmem:[%s3235_s16 + $0x18] ss:$8 sps:$4 sm:$0xff]   ;;  %v3134_v6 = vld [vmem:[%s3770_s1 + $0x228] sm:$0xff]  }
  0x62   : > { %2887 = vmatpush3.bf16.msra.mxu0 %v3098_v57  ;;  %v1741_v57 = vshrl.u32 %v2538_v25, 16  ;;  %v1788_v25 = vrot.slane %v1786_v27, 5 }
  0x63   : > { %2793 = vmatpush3.bf16.msra.mxu1 %v3100_v31  ;;  %2888 = vmatprep.subr.bf16.mxu0 %v3101_v43  ;;  %v1730_v31 = vshll.u32 %v2536_v1, 16  ;;  %v1785_v1 = vrot.slane %v1783_v17, 4 }
  0x64   : > { %2794 = vmatprep.subr.bf16.mxu1 %v3103_v37 }
  0x65   : > { %v1732_v44 = vrot.slane %v1730_v31, 5 }
  0x66   : > { %2889 = vmatpush3.bf16.msra.mxu0 %v3101_v43  ;;  %v3116_v43 = vld [vmem:[%s3770_s1 + $0x1e0] sm:$0xff]  }
  0x67   : > { %2795 = vmatpush3.bf16.msra.mxu1 %v3103_v37  ;;  %2890 = vmatprep.subr.bf16.mxu0 %v3104_v45  ;;  %v3114_v37 = vld [vmem:[%s3770_s1 + $0x1d8] sm:$0xff]  }
  0x68   : > { %2804 = vmatprep.subr.bf16.mxu1 %v3105_v0 }
  0x6a   : > { %2797 = vmatmul.mubr.bf16.vlgmr.msra.gmra.mrb[0].mxu1 %v2361_v21  ;;  %2891 = vmatpush3.bf16.msra.mxu0 %v3104_v45  ;;  %v2542_v21 = vld [vmem:[%s3235_s16 + $0x38] sm:$0xf]  ;;  %v1743_v45 = vrot.slane %v1741_v57, 4 }
  0x6b   : > { %2805 = vmatpush3.bf16.msra.mxu1 %v3105_v0  ;;  %2800 = vmatprep.mubr.bf16.mxu1 %v2362_v13  ;;  %v1769_v42 = vshrl.u32 %v2542_v21, 16  ;;  %v1772_v30 = vshll.u32 %v2542_v21, 16  ;;  %v3117_v0 = vld [vmem:[%s3770_s1 + $0xe8] sm:$0xff]   ;;  %v1757_v13 = vrot.slane %v1755_v40, 4  ;;  %v2580_v21 = vld [vmem:[%s3235_s16 + $0x30] sm:$0xe] }
  0x6c   : > { %2806 = vmatprep.subr.bf16.mxu1 %v3109_v49  ;;  %2900 = vmatprep.subr.bf16.mxu0 %v3107_v62  ;;  %v1747_v34 = vor.u32 %v1746_v29, %v1743_v45 }
  0x6d   : > { %2893 = vmatmul.mubr.bf16.vlgmr.msra.gmra.mrb[0].mxu0 %v3108_v7  ;;  %v1771_v48 = vrot.slane %v1769_v42, 4  ;;  %v1733_v7 = vor.u32 %v1732_v44, %v1729_v55  ;;  %v1761_v16 = vor.u32 %v1760_v63, %v1757_v13  ;;  %v1789_v42 = vor.u32 %v1788_v25, %v1785_v1 }
  0x6e   : > { %2901 = vmatpush3.bf16.msra.mxu0 %v3107_v62  ;;  %2896 = vmatprep.mubr.bf16.mxu0 %v3119_v56  ;;  %v3651_v62 = vld [vmem:[%s3235_s16 + $0x3c] sm:$0x1]  ;;  %v3122_v56 = vld [vmem:[%s3770_s1 + $0x1f0] sm:$0xff]   ;;  %v1748_v54 = vrot.slane %v1747_v34, 4  ;;  %v2006_v55 = vrot.slane %v3648_v47, 5  ;;  %v1998_v25 = vrot.slane %v3642_v51, 5 }
  0x6f   : > { %2807 = vmatpush3.bf16.msra.mxu1 %v3109_v49  ;;  %2902 = vmatprep.subr.bf16.mxu0 %v3110_v15  ;;  %v1774_v49 = vrot.slane %v1772_v30, 5  ;;  %v1778_v4 = vshll.u32 %v3651_v62, 16  ;;  %v1734_v10 = vrot.slane %v1733_v7, 4  ;;  %v1762_v19 = vrot.slane %v1761_v16, 4  ;;  %v3132_v16 = vld [vmem:[%s3770_s1 + $0x218] sm:$0xff]  }
  0x70   : > { %2808 = vmatprep.subr.bf16.mxu1 %v3111_v46  ;;  %v1753_v57 = vsel %vm3280_vm2, %v1748_v54, %v1752_v18  ;;  %v1803_v30 = vor.u32 %v1802_v32, %v1799_v28  ;;  %v2010_v45 = vrot.slane %v3651_v62, 5  ;;  %v1994_v7 = vrot.slane %v3597_v61, 5 }
  0x71   : > { %v2018_v54 = vrot.slane %v3675_v60, 5  ;;  %v2002_v32 = vrot.slane %v3645_v2, 5 }
  0x72   : > { %2801 = vmatmul.mubr.bf16.gmra.mrb[4].mxu1 %v2363_v14  ;;  %2903 = vmatpush3.bf16.msra.mxu0 %v3110_v15  ;;  %v3123_v15 = vld [vmem:[%s3770_s1 + $0xf8] sm:$0xff]   ;;  %v1738_v14 = vrot.slane %v1736_v58, 5  ;;  %v3131_v58 = vld [vmem:[%s3770_s1 + $0x210] sm:$0xff]   ;;  %v1995_v61 = vsel %vm3454_vm5, %v2585_v5, %v1994_v7 }
  0x73   : > { %2809 = vmatpush3.bf16.msra.mxu1 %v3111_v46  ;;  %2820 = vmatprep.mubr.bf16.mxu1 %v3125_v20  ;;  %v1775_v46 = vor.u32 %v1774_v49, %v1771_v48  ;;  %v1766_v20 = vrot.slane %v1764_v3, 5  ;;  %v2576_v49 = vld [vmem:[%s3235_s16 + $0x10] sm:$0xe] }
  0x74   : > { %2810 = vmatprep.subr.bf16.mxu1 %v3113_v23  ;;  %2904 = vmatprep.subr.bf16.mxu0 %v3112_v9  ;;  %v1739_v31 = vsel %vm3280_vm2, %v1734_v10, %v1738_v14  ;;  %v2584_v3 = vrot.slane %v2576_v49, 9  ;;  %v2583_v10 = vld [vmem:[%s3235_s16 + $0x48] sm:$0xe] }
  0x75   : > { %2897 = vmatmul.mubr.bf16.gmra.mrb[4].mxu0 %v3121_v11  ;;  %v1776_v22 = vrot.slane %v1775_v46, 4  ;;  %v3127_v11 = vld [vmem:[%s3770_s1 + $0x200] sm:$0xff]   ;;  %v1767_v40 = vsel %vm3280_vm2, %v1762_v19, %v1766_v20  ;;  %v2565_v29 = vcombine.low %v1739_v31, %v1753_v57  ;;  %v2591_v19 = vrot.slane %v2583_v10, 9  ;;  %v3136_v20 = vld [vmem:[%s3770_s1 + $0x238] sm:$0xff]  }
  0x76   : > { %2905 = vmatpush3.bf16.msra.mxu0 %v3112_v9  ;;  %2916 = vmatprep.mubr.bf16.mxu0 %v2564_v39  ;;  %v1780_v9 = vrot.slane %v1778_v4, 5  ;;  %v3129_v39 = vld [vmem:[%s3235_s16 + $0x28] ss:$8 sps:$4 sm:$0xff]   ;;  %v1990_v4 = vrot.slane %v3593_v24, 5 }
  0x77   : > { %2811 = vmatpush3.bf16.msra.mxu1 %v3113_v23  ;;  %2906 = vmatprep.subr.bf16.mxu0 %v3114_v37  ;;  %v3672_v23 = vld [vmem:[%s3235_s16 + $0x44] sm:$0x1] }
  0x78   : > { %2812 = vmatprep.subr.bf16.mxu1 %v3115_v33  ;;  %v1792_v36 = vshll.u32 %v3672_v23, 16  ;;  %v1781_v41 = vsel %vm3280_vm2, %v1776_v22, %v1780_v9  ;;  %v1991_v24 = vsel %vm3454_vm5, %v2584_v3, %v1990_v4  ;;  %v2014_v14 = vrot.slane %v3672_v23, 5  ;;  %v2578_v22 = vld [vmem:[%s3235_s16 + $0x20] sm:$0xe]  ;;  %v2579_v9 = vld [vmem:[%s3235_s16 + $0x28] sm:$0xe] }
  0x79   : > { %v2566_v13 = vcombine.low %v1767_v40, %v1781_v41  ;;  %v2608_v50 = vcombine.low %v1991_v24, %v1995_v61  ;;  %v2019_v23 = vsel %vm3454_vm5, %v2591_v19, %v2018_v54  ;;  %v2587_v28 = vrot.slane %v2579_v9, 9 }
  0x7a   : > { %2907 = vmatpush3.bf16.msra.mxu0 %v3114_v37  ;;  %v1806_v37 = vshll.u32 %v3675_v60, 16  ;;  %v1794_v63 = vrot.slane %v1792_v36, 5  ;;  %v2586_v60 = vrot.slane %v2578_v22, 9 }
  0x7b   : > { %2813 = vmatpush3.bf16.msra.mxu1 %v3115_v33  ;;  %2908 = vmatprep.subr.bf16.mxu0 %v3116_v43  ;;  %v2581_v33 = vld [vmem:[%s3235_s16 + $0x38] sm:$0xe] }
  0x7c   : > { %2814 = vmatprep.subr.bf16.mxu1 %v3117_v0  ;;  %v2589_v44 = vrot.slane %v2581_v33, 9  ;;  %v1808_v48 = vrot.slane %v1806_v37, 5 }
  0x7e   : > { %2909 = vmatpush3.bf16.msra.mxu0 %v3116_v43  ;;  %v3128_v43 = vld [vmem:[%s3770_s1 + $0x208] sm:$0xff]   ;;  %v2011_v62 = vsel %vm3454_vm5, %v2589_v44, %v2010_v45  ;;  %v2620_v44 = vld [vmem:[%s3771_s2] ss:$0 sm:$0xff] }
  0x7f   : > { %2815 = vmatpush3.bf16.msra.mxu1 %v3117_v0  ;;  %2910 = vmatprep.subr.bf16.mxu0 %v3118_v52  ;;  %v2588_v0 = vrot.slane %v2580_v21, 9  ;;  %v2003_v21 = vsel %vm3454_vm5, %v2587_v28, %v2002_v32 }
  0x80   : > { %2816 = vmatprep.subr.bf16.mxu1 %v3120_v26 }
  0x81   : > { %v2007_v47 = vsel %vm3454_vm5, %v2588_v0, %v2006_v55 }
  0x82   : > { %2911 = vmatpush3.bf16.msra.mxu0 %v3118_v52  ;;  %v1790_v52 = vrot.slane %v1789_v42, 4  ;;  %v2610_v34 = vcombine.low %v2007_v47, %v2011_v62 }
  0x83   : > { %2817 = vmatpush3.bf16.msra.mxu1 %v3120_v26  ;;  %2912 = vmatprep.subr.bf16.mxu0 %v3122_v56  ;;  %v1804_v26 = vrot.slane %v1803_v30, 4 }
  0x84   : > { %2818 = vmatprep.subr.bf16.mxu1 %v3123_v15  ;;  %v1795_v17 = vsel %vm3280_vm2, %v1790_v52, %v1794_v63 }
  0x85   : > { %v1809_v27 = vsel %vm3280_vm2, %v1804_v26, %v1808_v48 }
  0x86   : > { %2913 = vmatpush3.bf16.msra.mxu0 %v3122_v56  ;;  %v2567_v46 = vcombine.low %v1795_v17, %v1809_v27  ;;  %v2582_v56 = vld [vmem:[%s3235_s16 + $0x40] sm:$0xe]  ;;  %s2623_s16 = sshll.u32 %s3782_s12, 6 }
  0x87   : > { %2819 = vmatpush3.bf16.msra.mxu1 %v3123_v15  ;;  %2914 = vmatprep.subr.bf16.mxu0 %v3124_v12  ;;  %v3135_v15 = vld [vmem:[%s3770_s1 + $0x230] sm:$0xff]   ;;  %v2590_v18 = vrot.slane %v2582_v56, 9  ;;  %s192_s8 = scalar_lea.vmem %s3772_s3, %s2623_s16 }
  0x88   : > { %2948 = vmatprep.subr.bf16.mxu1 %v3127_v11 }
  0x89   : > { %v2015_v1 = vsel %vm3454_vm5, %v2590_v18, %v2014_v14 }
  0x8a   : > { %2821 = vmatmul.mubr.bf16.vlgmr.msra.gmra.mrb[0].mxu1 %v3126_v35  ;;  %2915 = vmatpush3.bf16.msra.mxu0 %v3124_v12  ;;  %v1999_v12 = vsel %vm3454_vm5, %v2586_v60, %v1998_v25 }
  0x8b   : > { %2956 = vmatpush3.bf16.msra.mxu1 %v3127_v11  ;;  %2824 = vmatprep.mubr.bf16.mxu1 %v3129_v39  ;;  %v2609_v33 = vcombine.low %v1999_v12, %v2003_v21 }
  0x8c   : > { %2949 = vmatprep.subr.bf16.mxu1 %v3128_v43  ;;  %2924 = vmatprep.subr.bf16.mxu0 %v3127_v11 }
  0x8d   : > { %2917 = vmatmul.mubr.bf16.vlgmr.msra.gmra.mrb[0].mxu0 %v2565_v29 }
  0x8e   : > { %2925 = vmatpush3.bf16.msra.mxu0 %v3127_v11  ;;  %2920 = vmatprep.mubr.bf16.mxu0 %v2566_v13  ;;  %v2611_v11 = vcombine.low %v2015_v1, %v2019_v23 }
  0x8f   : > { %2957 = vmatpush3.bf16.msra.mxu1 %v3128_v43  ;;  %2926 = vmatprep.subr.bf16.mxu0 %v3128_v43 }
  0x90   : > { %2950 = vmatprep.subr.bf16.mxu1 %v3131_v58 }
  0x92   : > { %2825 = vmatmul.mubr.bf16.gmra.mrb[4].mxu1 %v3130_v59  ;;  %2927 = vmatpush3.bf16.msra.mxu0 %v3128_v43 }
  0x93   : > { %2958 = vmatpush3.bf16.msra.mxu1 %v3131_v58  ;;  %2944 = vmatprep.mubr.bf16.mxu1 %v2610_v34 }
  0x94   : > { %2951 = vmatprep.subr.bf16.mxu1 %v3132_v16  ;;  %2928 = vmatprep.subr.bf16.mxu0 %v3131_v58 }
  0x95   : > { %2921 = vmatmul.mubr.bf16.gmra.mrb[4].mxu0 %v2567_v46 }
  0x96   : > { %2929 = vmatpush3.bf16.msra.mxu0 %v3131_v58  ;;  %2940 = vmatprep.mubr.bf16.mxu0 %v2608_v50 }
  0x97   : > { %2959 = vmatpush3.bf16.msra.mxu1 %v3132_v16  ;;  %2930 = vmatprep.subr.bf16.mxu0 %v3132_v16 }
  0x98   : > { %2952 = vmatprep.subr.bf16.mxu1 %v3133_v38 }
  0x9a   : > { %2931 = vmatpush3.bf16.msra.mxu0 %v3132_v16 }
  0x9b   : > { %2960 = vmatpush3.bf16.msra.mxu1 %v3133_v38  ;;  %2932 = vmatprep.subr.bf16.mxu0 %v3133_v38 }
  0x9c   : > { %2953 = vmatprep.subr.bf16.mxu1 %v3134_v6 }
  0x9e   : > { %2933 = vmatpush3.bf16.msra.mxu0 %v3133_v38 }
  0x9f   : > { %2961 = vmatpush3.bf16.msra.mxu1 %v3134_v6  ;;  %2934 = vmatprep.subr.bf16.mxu0 %v3134_v6 }
  0xa0   : > { %2954 = vmatprep.subr.bf16.mxu1 %v3135_v15 }
  0xa2   : > { %2935 = vmatpush3.bf16.msra.mxu0 %v3134_v6 }
  0xa3   : > { %2962 = vmatpush3.bf16.msra.mxu1 %v3135_v15  ;;  %2936 = vmatprep.subr.bf16.mxu0 %v3135_v15 }
  0xa4   : > { %2955 = vmatprep.subr.bf16.mxu1 %v3136_v20 }
  0xa6   : > { %2937 = vmatpush3.bf16.msra.mxu0 %v3135_v15 }
  0xa7   : > { %2963 = vmatpush3.bf16.msra.mxu1 %v3136_v20  ;;  %2938 = vmatprep.subr.bf16.mxu0 %v3136_v20 }
  0xaa   : > { %2945 = vmatmul.mubr.bf16.vlgmr.msra.gmra.mrb[8].mxu1 %v2611_v11  ;;  %2939 = vmatpush3.bf16.msra.mxu0 %v3136_v20 }
  0xad   : > { %2941 = vmatmul.mubr.bf16.vlgmr.msra.gmra.mrb[0].mxu0 %v2609_v33 }
 0x15d   : > { %v2822_v35 = vpop.f32.mrb[0].mxu1 }
 0x15e   : > { %v977_v51 = vpop.f32.mrb[1].mxu1 }
 0x15f   : > { %v2823_v31 = vpop.f32.mrb[2].mxu1 }
 0x160   : > { %v980_v2 = vpop.f32.mrb[3].mxu1 }
 0x165   : > { %v2826_v57 = vpop.f32.mrb[4].mxu1 }
 0x166   : > { %v993_v36 = vpop.f32.mrb[5].mxu1 }
 0x167   : > { %v2827_v37 = vpop.f32.mrb[6].mxu1 }
 0x168   : > { %v996_v39 = vpop.f32.mrb[7].mxu1  ;;  %v2922_v40 = vpop.f32.mrb[4].mxu0 }
 0x169   : > { %v2968_v41 = vadd.f32 %v2922_v40, %v2826_v57  ;;  %v1941_v42 = vpop.f32.mrb[5].mxu0 }
 0x16a   : > { %v2970_v30 = vadd.f32 %v1941_v42, %v993_v36  ;;  %v2923_v8 = vpop.f32.mrb[6].mxu0 }
 0x16b   : > { %v2972_v43 = vadd.f32 %v2923_v8, %v2827_v37  ;;  %v1944_v0 = vpop.f32.mrb[7].mxu0 }
 0x16c   : > { %v2974_v55 = vadd.f32 %v1944_v0, %v996_v39 }
 0x17d   : > { %v2946_v45 = vpop.f32.mrb[8].mxu1 }
 0x17e   : > { %v2969_v29 = vadd.f32 %v2968_v41, %v2946_v45  ;;  %v2151_v13 = vpop.f32.mrb[9].mxu1 }
 0x17f   : > { %v2971_v63 = vadd.f32 %v2970_v30, %v2151_v13  ;;  %v2947_v48 = vpop.f32.mrb[10].mxu1 }
 0x180   : > { %v2187_v49 = vadd.f32 %v2969_v29, %v2620_v44  ;;  %v2973_v53 = vadd.f32 %v2972_v43, %v2947_v48  ;;  %v2154_v52 = vpop.f32.mrb[11].mxu1  ;;  %v2942_v62 = vpop.f32.mrb[0].mxu0 }
 0x181   : > { %v2185_v26 = vadd.f32 %v2971_v63, %v2620_v44  ;;  %v2975_v47 = vadd.f32 %v2974_v55, %v2154_v52  ;;  %v2964_v59 = vadd.f32 %v2942_v62, %v2822_v35  ;;  %v2135_v3 = vpop.f32.mrb[1].mxu0 }
 0x182   : > { %2195 = vst [vmem:[%s192_s8 + $0x30] sm:$0xff] %v2187_v49  ;;  %v2188_v58 = vadd.f32 %v2973_v53, %v2620_v44  ;;  %v2965_v5 = vadd.f32 %v2135_v3, %v977_v51  ;;  %v2943_v7 = vpop.f32.mrb[2].mxu0 }
 0x183   : > { %2193 = vst [vmem:[%s192_s8 + $0x20] sm:$0xff] %v2185_v26  ;;  %v2186_v4 = vadd.f32 %v2975_v47, %v2620_v44  ;;  %v2183_v34 = vadd.f32 %v2964_v59, %v2620_v44  ;;  %v2966_v17 = vadd.f32 %v2943_v7, %v2823_v31  ;;  %v2138_v27 = vpop.f32.mrb[3].mxu0 }
 0x184   : > { %2196 = vst [vmem:[%s192_s8 + $0x38] sm:$0xff] %v2188_v58  ;;  %v2181_v16 = vadd.f32 %v2965_v5, %v2620_v44  ;;  %v2967_v24 = vadd.f32 %v2138_v27, %v980_v2 }
 0x185   : > { %2194 = vst [vmem:[%s192_s8 + $0x28] sm:$0xff] %v2186_v4  ;;  %2191 = vst [vmem:[%s192_s8 + $0x10] sm:$0xff] %v2183_v34  ;;  %v2184_v61 = vadd.f32 %v2966_v17, %v2620_v44 }
 0x186   : > { %2189 = vst [vmem:[%s192_s8] sm:$0xff] %v2181_v16  ;;  %v2182_v46 = vadd.f32 %v2967_v24, %v2620_v44 }
 0x187   : > { %2192 = vst [vmem:[%s192_s8 + $0x18] sm:$0xff] %v2184_v61 }
 0x188   : > { %2190 = vst [vmem:[%s192_s8 + $0x8] sm:$0xff] %v2182_v46 }
 0x189 PF: > { %s13_s14 = sadd.s32 1, %s3159_s14   ;;  %s3777_s12 = smov %s3155_s13 }
 0x18a   : > { %p10_p5 = scmp.ge.s32.totalorder %s13_s14, 4   ;;  %s3778_s13 = smov %s3780_s15 }
 0x18c   :  { %12 = sbr.rel (!%p10_p5) target bundleno = 2 (0x2), region = 73 }

</bundles_post_ra>
